<compile_context>
chip_gen: v5e
topology: v5e:2x2
jax: 0.10.0
libtpu: 0.0.40
codegen_flags: <defaults>
</compile_context>

<pallas_src>
import functools

import jax
import jax.numpy as jnp
from jax import lax
from jax.experimental import pallas as pl
from jax.experimental.pallas import tpu as pltpu

H = 64          # GRU hidden size / channel width of the network
TM_MAX = 512    # maximum M-tile for the matmul kernel


def _round_up(x, m):
    return (x + m - 1) // m * m


# ----------------------------------------------------------------------------
# Pallas kernel 1: single-pass matmul  O = act(A @ B + bias)
# ----------------------------------------------------------------------------
def _matmul_kernel(a_ref, b_ref, bias_ref, o_ref, *, act):
    y = jnp.dot(a_ref[...], b_ref[...], preferred_element_type=jnp.float32)
    y = y + bias_ref[...]
    if act == "relu":
        y = jnp.maximum(y, 0.0)
    elif act == "elu":                       # nn.ELU(alpha=0.1)
        y = jnp.where(y > 0, y, 0.1 * (jnp.exp(jnp.minimum(y, 0.0)) - 1.0))
    o_ref[...] = y.astype(o_ref.dtype)


def pallas_matmul(a, w_bf16, bias_f32, act="none", n_valid=None):
    """a: (M, Kc) f32; w: (Kp, Np) bf16, pre-padded; bias: (1, Np) f32."""
    M, Kc = a.shape
    Kp, Np = w_bf16.shape
    tm = min(TM_MAX, _round_up(max(M, 8), 8))
    Mp = _round_up(M, tm)
    if (Mp, Kp) != (M, Kc):
        a = jnp.pad(a, ((0, Mp - M), (0, Kp - Kc)))
    a = a.astype(jnp.bfloat16)

    out = pl.pallas_call(
        functools.partial(_matmul_kernel, act=act),
        out_shape=jax.ShapeDtypeStruct((Mp, Np), jnp.float32),
        grid_spec=pltpu.PrefetchScalarGridSpec(
            num_scalar_prefetch=0,
            grid=(Mp // tm,),
            in_specs=[
                pl.BlockSpec((tm, Kp), lambda i: (i, 0)),
                pl.BlockSpec((Kp, Np), lambda i: (0, 0)),
                pl.BlockSpec((1, Np), lambda i: (0, 0)),
            ],
            out_specs=pl.BlockSpec((tm, Np), lambda i: (i, 0)),
        ),
        compiler_params=pltpu.CompilerParams(
            dimension_semantics=("parallel",)),
    )(a, w_bf16, bias_f32)

    out = out[:M]
    if n_valid is not None and n_valid != Np:
        out = out[:, :n_valid]
    return out


# ----------------------------------------------------------------------------
# Pallas kernel 2: fused bidirectional GRU recurrence (PyTorch gate order r,z,n)
#   Hidden state is lane-dense (B, 2H) = (B, 128); gate columns are ordered
#   [r1 r2 | z1 z2 | n1 n2] and the hidden-to-hidden weight is block-diagonal,
#   so one (B,2H)x(2H,6H) MXU push per timestep computes all gates for both
#   directions.  Output stores are unmasked 128-lane stores.
# ----------------------------------------------------------------------------
def _bigru_kernel(gx_ref, whh_ref, bhh_ref, o_ref, h_ref):
    T = o_ref.shape[0]
    G = h_ref.shape[-1]                      # 2H (both directions)
    h_ref[...] = jnp.zeros_like(h_ref)

    def step(t, carry):
        h = h_ref[...]
        gh = jnp.dot(h.astype(jnp.bfloat16), whh_ref[...],
                     preferred_element_type=jnp.float32) + bhh_ref[...]
        gx = gx_ref[t]
        r = jax.nn.sigmoid(gx[:, 0:G] + gh[:, 0:G])
        z = jax.nn.sigmoid(gx[:, G:2 * G] + gh[:, G:2 * G])
        n = jnp.tanh(gx[:, 2 * G:3 * G] + r * gh[:, 2 * G:3 * G])
        hn = (1.0 - z) * n + z * h
        h_ref[...] = hn
        o_ref[t] = hn
        return carry

    lax.fori_loop(0, T, step, 0, unroll=True)


def bigru_forward(x, g):
    """x: (B, T, H) -> gru1(x) + gru2(flip_t(x)); the backward output is NOT
    flipped back before the sum, matching motif.py exactly."""
    B, T, Cin = x.shape
    gx = pallas_matmul(x.reshape(B * T, Cin), g["w_in"], g["b_in"])   # (B*T, 6H)
    gx = gx.reshape(B, T, 6 * H)
    # direction-2 gate columns consume the time-reversed sequence
    use_bwd = (jnp.arange(6 * H) % (2 * H)) >= H
    gx = jnp.where(use_bwd[None, None, :], gx[:, ::-1, :], gx)
    gx = gx.transpose(1, 0, 2)                                        # (T, B, 6H)

    vspec = pl.BlockSpec(memory_space=pltpu.MemorySpace.VMEM)
    out = pl.pallas_call(
        _bigru_kernel,
        out_shape=jax.ShapeDtypeStruct((T, B, 2 * H), jnp.float32),
        in_specs=[vspec, vspec, vspec],
        out_specs=vspec,
        scratch_shapes=[pltpu.VMEM((B, 2 * H), jnp.float32)],
    )(gx, g["w_hh"], g["b_hh"])
    o = out[..., :H] + out[..., H:]          # sum the two directions
    return o.transpose(1, 0, 2)              # (B, T, H)


# ----------------------------------------------------------------------------
# Plain-JAX glue (channels-last (B, L, C) everywhere)
# ----------------------------------------------------------------------------
def conv1d(x, conv, padding=0, act="none"):
    """x: (B, L, Cin); conv = prepared dict -> (B, Lout, Cout)."""
    B, L, Cin = x.shape
    K, Cout = conv["k"], conv["cout"]
    if padding:
        x = jnp.pad(x, ((0, 0), (padding, padding), (0, 0)))
    Lout = x.shape[1] - K + 1
    if K == 1:
        patches = x.reshape(B * Lout, Cin)
    else:
        patches = jnp.concatenate(
            [x[:, k:k + Lout, :] for k in range(K)], axis=-1
        ).reshape(B * Lout, K * Cin)
    out = pallas_matmul(patches, conv["w"], conv["b"], act=act, n_valid=Cout)
    return out.reshape(B, Lout, Cout)


def elu(x, alpha=0.1):
    return jnp.where(x > 0, x, alpha * (jnp.exp(jnp.minimum(x, 0.0)) - 1.0))


def maxpool1d(x, k):
    B, L, C = x.shape
    Lt = (L // k) * k
    return x[:, :Lt, :].reshape(B, L // k, k, C).max(axis=2)


def upsample_linear(x, out_size):
    """F.interpolate(mode='linear', align_corners=False), channels-last."""
    B, L, C = x.shape
    j = jnp.arange(out_size, dtype=jnp.float32)
    src = jnp.clip((j + 0.5) * (L / out_size) - 0.5, 0.0, L - 1)
    i0 = jnp.floor(src).astype(jnp.int32)
    i1 = jnp.minimum(i0 + 1, L - 1)
    frac = (src - i0.astype(jnp.float32))[None, :, None]
    return x[:, i0, :] * (1.0 - frac) + x[:, i1, :] * frac


def adaptive_avg_pool1d(x, S):
    B, L, C = x.shape
    outs = []
    for i in range(S):
        s = (i * L) // S
        e = -((-(i + 1) * L) // S)
        outs.append(x[:, s:e, :].mean(axis=1))
    return jnp.stack(outs, axis=1)           # (B, S, C)


# ----------------------------------------------------------------------------
# Sub-modules (BatchNorm already folded into conv weights where it follows one)
# ----------------------------------------------------------------------------
def rrb(x, p):
    x1 = conv1d(x, p["c1"])                               # 1x1 conv
    res = conv1d(x1, p["c2"], padding=1, act="relu")      # k3 conv + folded BN + ReLU
    res = conv1d(res, p["c3"], padding=1)                 # k3 conv
    return jnp.maximum(x1 + res, 0.0)


def sppm(x, p):
    size = x.shape[1]
    fusion = 0.0
    for S, ck in ((1, "c1"), (2, "c2"), (4, "c3")):
        pooled = adaptive_avg_pool1d(x, S)
        c = conv1d(pooled, p[ck], act="relu")             # 1x1 conv + folded BN + ReLU
        fusion = fusion + upsample_linear(c, size)
    return conv1d(fusion, p["c_out"], padding=1, act="relu")


def blend(x, p):
    # bn_relu_conv: BN precedes the conv, so it stays a cheap per-channel affine
    z = jnp.maximum(x * p["scale"][None, None, :] + p["shift"][None, None, :], 0.0)
    return conv1d(z, p["c"], padding=1)


def blend1(x, p):
    """bn_relu_conv with Cout=1: the k3 conv is a VPU weighted sum over 3
    shifted slices (avoids padding N from 1 -> 128 on the MXU)."""
    z = jnp.maximum(x * p["scale"][None, None, :] + p["shift"][None, None, :], 0.0)
    B, L, C = z.shape
    zp = jnp.pad(z, ((0, 0), (1, 1), (0, 0)))
    w = p["w"]                                            # (1, C, 3)
    out = jnp.zeros((B, L), jnp.float32)
    for k in range(3):
        out = out + jnp.einsum("blc,c->bl", zp[:, k:k + L, :], w[0, :, k])
    return out                                            # (B, L)


# ----------------------------------------------------------------------------
# NLDNN forward (channels-last internally; PyTorch I/O layout preserved)
# ----------------------------------------------------------------------------
def nldnn_forward(params, data):
    x = data.transpose(0, 2, 1)                      # (B, L, Cin)
    L_in = x.shape[1]

    out1 = conv1d(x, params["conv1"])                # no act: score is pre-ELU
    score = out1[0].T                                # (64, L1)
    out1 = elu(out1)
    out1 = maxpool1d(out1, 4)                        # dropout = identity (eval)
    skip2 = out1
    out1 = conv1d(out1, params["conv2"], act="elu")
    out1 = maxpool1d(out1, 4)
    skip3 = out1
    out1 = conv1d(out1, params["conv3"], act="elu")
    out1 = maxpool1d(out1, 2)                        # (B, T, 64)

    skip4 = bigru_forward(out1, params["gru"])       # gru_drop = identity (eval)

    up4 = sppm(skip4, params["sppm"])
    up4 = up4 + rrb(skip4, params["rrb4"])
    up4 = blend(up4, params["blend4"])

    up3 = upsample_linear(up4, skip3.shape[1])
    up3 = up3 + rrb(skip3, params["rrb3"])
    up3 = blend(up3, params["blend3"])

    up2 = upsample_linear(up3, skip2.shape[1])
    up2 = up2 + rrb(skip2, params["rrb2"])
    up2 = blend(up2, params["blend2"])

    up1 = upsample_linear(up2, L_in)
    out_dense = blend1(up1, params["blend1"])        # (B, L)
    return out_dense[0][None, :], score              # (1, L), (64, L1)


# ----------------------------------------------------------------------------
# One-time parameter preparation (outside the jitted hot path):
# BN folding, channels-last weight packing, 128-lane padding, bf16 cast.
# ----------------------------------------------------------------------------
def _bn_affine(bn, eps=1e-5):
    scale = bn["gamma"] / jnp.sqrt(bn["rv"] + eps)
    shift = bn["beta"] - bn["rm"] * scale
    return scale.astype(jnp.float32), shift.astype(jnp.float32)


def _prep_conv(w, b=None, bn=None):
    Cout, Cin, K = w.shape
    w = w.astype(jnp.float32)
    bias = jnp.zeros((Cout,), jnp.float32) if b is None else b.astype(jnp.float32)
    if bn is not None:                                   # fold eval-mode BN
        scale, shift = _bn_affine(bn)
        w = w * scale[:, None, None]
        bias = bias * scale + shift
    wmat = jnp.transpose(w, (2, 1, 0)).reshape(K * Cin, Cout)   # rows = k*Cin + c
    Kp = _round_up(K * Cin, 128)
    Np = _round_up(Cout, 128)
    w_p = jnp.pad(wmat, ((0, Kp - K * Cin), (0, Np - Cout))).astype(jnp.bfloat16)
    b_p = jnp.pad(bias, (0, Np - Cout)).reshape(1, Np)
    return dict(w=w_p, b=b_p, k=K, cout=Cout)


def _prep_gru(g1, g2):
    def split3(a):
        return a[:H], a[H:2 * H], a[2 * H:3 * H]

    w1r, w1z, w1n = split3(g1["wih"]); w2r, w2z, w2n = split3(g2["wih"])
    u1r, u1z, u1n = split3(g1["whh"]); u2r, u2z, u2n = split3(g2["whh"])
    b1r, b1z, b1n = split3(g1["bih"]); b2r, b2z, b2n = split3(g2["bih"])
    c1r, c1z, c1n = split3(g1["bhh"]); c2r, c2z, c2n = split3(g2["bhh"])

    # input projection: (H, 6H) with columns [r1 r2 | z1 z2 | n1 n2]
    w_in = jnp.concatenate([w1r.T, w2r.T, w1z.T, w2z.T, w1n.T, w2n.T], axis=1)
    b_in = jnp.concatenate([b1r, b2r, b1z, b2z, b1n, b2n])
    Kp = _round_up(H, 128)
    w_in = jnp.pad(w_in, ((0, Kp - H), (0, 0))).astype(jnp.bfloat16)
    b_in = b_in.reshape(1, 6 * H).astype(jnp.float32)

    # block-diagonal hidden weight: (2H, 6H)
    z = jnp.zeros((H, H), jnp.float32)
    top = jnp.concatenate([u1r.T, z, u1z.T, z, u1n.T, z], axis=1)
    bot = jnp.concatenate([z, u2r.T, z, u2z.T, z, u2n.T], axis=1)
    w_hh = jnp.concatenate([top, bot], axis=0).astype(jnp.bfloat16)
    b_hh = jnp.concatenate([c1r, c2r, c1z, c2z, c1n, c2n]).reshape(1, 6 * H)
    return dict(w_in=w_in, b_in=b_in, w_hh=w_hh, b_hh=b_hh.astype(jnp.float32))


def prepare_params(p):
    def prep_rrb(r):
        return dict(c1=_prep_conv(r["w1"], r["b1"]),
                    c2=_prep_conv(r["w2"], r["b2"], bn=r["bn"]),
                    c3=_prep_conv(r["w3"], r["b3"]))

    def prep_blend(bp):
        scale, shift = _bn_affine(bp["bn"])
        return dict(scale=scale, shift=shift, c=_prep_conv(bp["w"]))

    def prep_blend1(bp):
        scale, shift = _bn_affine(bp["bn"])
        return dict(scale=scale, shift=shift, w=bp["w"].astype(jnp.float32))

    sp = p["sppm"]
    return dict(
        conv1=_prep_conv(p["conv1_w"], p["conv1_b"]),
        conv2=_prep_conv(p["conv2_w"], p["conv2_b"]),
        conv3=_prep_conv(p["conv3_w"], p["conv3_b"]),
        gru=_prep_gru(p["gru1"], p["gru2"]),
        sppm=dict(c1=_prep_conv(sp["w1"], bn=sp["bn1"]),
                  c2=_prep_conv(sp["w2"], bn=sp["bn2"]),
                  c3=_prep_conv(sp["w3"], bn=sp["bn3"]),
                  c_out=_prep_conv(sp["w_out"], bn=sp["bn_out"])),
        rrb4=prep_rrb(p["rrb4"]), rrb3=prep_rrb(p["rrb3"]), rrb2=prep_rrb(p["rrb2"]),
        blend4=prep_blend(p["blend4"]), blend3=prep_blend(p["blend3"]),
        blend2=prep_blend(p["blend2"]), blend1=prep_blend1(p["blend1"]),
    )


# ----------------------------------------------------------------------------
# Deterministic parameter init (shapes from NLDNN.__init__, xavier-style)
# ----------------------------------------------------------------------------
def _xavier_conv(key, shape):
    cout, cin, k = shape
    limit = (6.0 / (cin * k + cout * k)) ** 0.5
    return jax.random.uniform(key, shape, jnp.float32, -limit, limit)


def init_params(key, dim=4, motiflen=20):
    keys = iter(jax.random.split(key, 64))
    nk = lambda: next(keys)

    def bn_p(c):
        return dict(gamma=jnp.ones((c,), jnp.float32),
                    beta=jnp.zeros((c,), jnp.float32),
                    rm=jnp.zeros((c,), jnp.float32),
                    rv=jnp.ones((c,), jnp.float32))

    def gru_p(h=64):
        s = 1.0 / (h ** 0.5)
        return dict(
            wih=jax.random.uniform(nk(), (3 * h, h), jnp.float32, -s, s),
            whh=jax.random.uniform(nk(), (3 * h, h), jnp.float32, -s, s),
            bih=jax.random.uniform(nk(), (3 * h,), jnp.float32, -s, s),
            bhh=jax.random.uniform(nk(), (3 * h,), jnp.float32, -s, s))

    def rrb_p():
        return dict(w1=_xavier_conv(nk(), (64, 64, 1)), b1=jnp.zeros((64,)),
                    w2=_xavier_conv(nk(), (64, 64, 3)), b2=jnp.zeros((64,)),
                    bn=bn_p(64),
                    w3=_xavier_conv(nk(), (64, 64, 3)), b3=jnp.zeros((64,)))

    def blend_p(cout):
        return dict(bn=bn_p(64), w=_xavier_conv(nk(), (cout, 64, 3)))

    return dict(
        conv1_w=_xavier_conv(nk(), (64, dim, motiflen)), conv1_b=jnp.zeros((64,)),
        conv2_w=_xavier_conv(nk(), (64, 64, 5)), conv2_b=jnp.zeros((64,)),
        conv3_w=_xavier_conv(nk(), (64, 64, 3)), conv3_b=jnp.zeros((64,)),
        gru1=gru_p(), gru2=gru_p(),
        sppm=dict(w1=_xavier_conv(nk(), (64, 64, 1)), bn1=bn_p(64),
                  w2=_xavier_conv(nk(), (64, 64, 1)), bn2=bn_p(64),
                  w3=_xavier_conv(nk(), (64, 64, 1)), bn3=bn_p(64),
                  w_out=_xavier_conv(nk(), (64, 64, 3)), bn_out=bn_p(64)),
        rrb4=rrb_p(), rrb3=rrb_p(), rrb2=rrb_p(),
        blend4=blend_p(64), blend3=blend_p(64),
        blend2=blend_p(64), blend1=blend_p(1),
    )


if __name__ == "__main__":
    key = jax.random.PRNGKey(0)
    pkey, dkey = jax.random.split(key)
    raw_params = init_params(pkey, dim=4, motiflen=20)
    prepped = prepare_params(raw_params)     # one-time prep, outside the jit

    # L=200 -> conv1:181 -> pool:45 -> conv2:41 -> pool:10 -> conv3:8 -> pool:4
    data = jax.random.normal(dkey, (2, 4, 200), dtype=jnp.float32)

    fwd = jax.jit(functools.partial(nldnn_forward, prepped))
    out_dense0, score0 = fwd(data)
    jax.block_until_ready(out_dense0)
    jax.block_until_ready(score0)

    assert out_dense0.shape == (1, 200), out_dense0.shape
    assert score0.shape == (64, 181), score0.shape
    assert jnp.all(jnp.isfinite(out_dense0)) and jnp.all(jnp.isfinite(score0))
    print("KERNEL_OK")
</pallas_src>

<mosaic_0001>
module attributes {stable_mosaic.version = 11 : i64} {
  func.func @_matmul_kernel(%arg0: i32, %arg1: memref<368x128xbf16, #tpu.memory_space<vmem>>, %arg2: memref<128x128xbf16, #tpu.memory_space<vmem>>, %arg3: memref<1x128xf32, #tpu.memory_space<vmem>>, %arg4: memref<368x128xf32, #tpu.memory_space<vmem>>) attributes {dimension_semantics = [#tpu.dimension_semantics<parallel>], iteration_bounds = array<i64: 1>, scalar_prefetch = 0 : i64, scratch_operands = 0 : i64, tpu.core_type = #tpu.core_type<tc>, window_params = [{transform_indices = @transform_0, window_bounds = array<i64: 368, 128>}, {pipeline_mode = #tpu.pipeline_mode<synchronous>, transform_indices = @transform_1, window_bounds = array<i64: 128, 128>}, {pipeline_mode = #tpu.pipeline_mode<synchronous>, transform_indices = @transform_2, window_bounds = array<i64: 1, 128>}, {transform_indices = @transform_3, window_bounds = array<i64: 368, 128>}]} {
    %c0 = arith.constant 0 : index
    %c0_0 = arith.constant 0 : index
    %0 = vector.load %arg1[%c0, %c0_0] : memref<368x128xbf16, #tpu.memory_space<vmem>>, vector<368x128xbf16>
    %c0_1 = arith.constant 0 : index
    %c0_2 = arith.constant 0 : index
    %1 = vector.load %arg2[%c0_1, %c0_2] : memref<128x128xbf16, #tpu.memory_space<vmem>>, vector<128x128xbf16>
    %cst = arith.constant dense<0.000000e+00> : vector<368x128xf32>
    %2 = tpu.matmul %0, %1, %cst {dimension_numbers = #tpu.dot_dimension_numbers<[1], [0], [0], [1], [0, 0, 1, 1], [], []>} : vector<368x128xbf16>, vector<128x128xbf16>, vector<368x128xf32> -> vector<368x128xf32>
    %c0_3 = arith.constant 0 : index
    %c0_4 = arith.constant 0 : index
    %3 = vector.load %arg3[%c0_3, %c0_4] : memref<1x128xf32, #tpu.memory_space<vmem>>, vector<1x128xf32>
    %4 = vector.broadcast %3 : vector<1x128xf32> to vector<368x128xf32>
    %5 = arith.addf %2, %4 : vector<368x128xf32>
    %c0_5 = arith.constant 0 : index
    %c0_6 = arith.constant 0 : index
    %6 = vector.load %arg4[%c0_5, %c0_6] : memref<368x128xf32, #tpu.memory_space<vmem>>, vector<368x128xf32>
    tpu.vector_store %arg4[%c0_5, %c0_6], %5 {strides = array<i32>} : memref<368x128xf32, #tpu.memory_space<vmem>>, vector<368x128xf32>,
    return
  }
  func.func @transform_0(%arg0: i32) -> (i32, i32) {
    %c0_i32 = arith.constant 0 : i32
    %c0_i32_0 = arith.constant 0 : i32
    return %arg0, %c0_i32 : i32, i32
  }
  func.func @transform_1(%arg0: i32) -> (i32, i32) {
    %c0_i32 = arith.constant 0 : i32
    %c0_i32_0 = arith.constant 0 : i32
    %c0_i32_1 = arith.constant 0 : i32
    return %c0_i32, %c0_i32_0 : i32, i32
  }
  func.func @transform_2(%arg0: i32) -> (i32, i32) {
    %c0_i32 = arith.constant 0 : i32
    %c0_i32_0 = arith.constant 0 : i32
    %c0_i32_1 = arith.constant 0 : i32
    return %c0_i32, %c0_i32_0 : i32, i32
  }
  func.func @transform_3(%arg0: i32) -> (i32, i32) {
    %c0_i32 = arith.constant 0 : i32
    %c0_i32_0 = arith.constant 0 : i32
    return %arg0, %c0_i32 : i32, i32
  }
}

module attributes {stable_mosaic.version = 11 : i64} {
  func.func @_matmul_kernel(%arg0: i32, %arg1: memref<96x128xbf16, #tpu.memory_space<vmem>>, %arg2: memref<128x128xbf16, #tpu.memory_space<vmem>>, %arg3: memref<1x128xf32, #tpu.memory_space<vmem>>, %arg4: memref<96x128xf32, #tpu.memory_space<vmem>>) attributes {dimension_semantics = [#tpu.dimension_semantics<parallel>], iteration_bounds = array<i64: 1>, scalar_prefetch = 0 : i64, scratch_operands = 0 : i64, tpu.core_type = #tpu.core_type<tc>, window_params = [{transform_indices = @transform_0, window_bounds = array<i64: 96, 128>}, {pipeline_mode = #tpu.pipeline_mode<synchronous>, transform_indices = @transform_1, window_bounds = array<i64: 128, 128>}, {pipeline_mode = #tpu.pipeline_mode<synchronous>, transform_indices = @transform_2, window_bounds = array<i64: 1, 128>}, {transform_indices = @transform_3, window_bounds = array<i64: 96, 128>}]} {
    %c0 = arith.constant 0 : index
    %c0_0 = arith.constant 0 : index
    %0 = vector.load %arg1[%c0, %c0_0] : memref<96x128xbf16, #tpu.memory_space<vmem>>, vector<96x128xbf16>
    %c0_1 = arith.constant 0 : index
    %c0_2 = arith.constant 0 : index
    %1 = vector.load %arg2[%c0_1, %c0_2] : memref<128x128xbf16, #tpu.memory_space<vmem>>, vector<128x128xbf16>
    %cst = arith.constant dense<0.000000e+00> : vector<96x128xf32>
    %2 = tpu.matmul %0, %1, %cst {dimension_numbers = #tpu.dot_dimension_numbers<[1], [0], [0], [1], [0, 0, 1, 1], [], []>} : vector<96x128xbf16>, vector<128x128xbf16>, vector<96x128xf32> -> vector<96x128xf32>
    %c0_3 = arith.constant 0 : index
    %c0_4 = arith.constant 0 : index
    %3 = vector.load %arg3[%c0_3, %c0_4] : memref<1x128xf32, #tpu.memory_space<vmem>>, vector<1x128xf32>
    %4 = vector.broadcast %3 : vector<1x128xf32> to vector<96x128xf32>
    %5 = arith.addf %2, %4 : vector<96x128xf32>
    %c0_5 = arith.constant 0 : index
    %c0_6 = arith.constant 0 : index
    %6 = vector.load %arg4[%c0_5, %c0_6] : memref<96x128xf32, #tpu.memory_space<vmem>>, vector<96x128xf32>
    tpu.vector_store %arg4[%c0_5, %c0_6], %5 {strides = array<i32>} : memref<96x128xf32, #tpu.memory_space<vmem>>, vector<96x128xf32>,
    return
  }
  func.func @transform_0(%arg0: i32) -> (i32, i32) {
    %c0_i32 = arith.constant 0 : i32
    %c0_i32_0 = arith.constant 0 : i32
    return %arg0, %c0_i32 : i32, i32
  }
  func.func @transform_1(%arg0: i32) -> (i32, i32) {
    %c0_i32 = arith.constant 0 : i32
    %c0_i32_0 = arith.constant 0 : i32
    %c0_i32_1 = arith.constant 0 : i32
    return %c0_i32, %c0_i32_0 : i32, i32
  }
  func.func @transform_2(%arg0: i32) -> (i32, i32) {
    %c0_i32 = arith.constant 0 : i32
    %c0_i32_0 = arith.constant 0 : i32
    %c0_i32_1 = arith.constant 0 : i32
    return %c0_i32, %c0_i32_0 : i32, i32
  }
  func.func @transform_3(%arg0: i32) -> (i32, i32) {
    %c0_i32 = arith.constant 0 : i32
    %c0_i32_0 = arith.constant 0 : i32
    return %arg0, %c0_i32 : i32, i32
  }
}

module attributes {stable_mosaic.version = 11 : i64} {
  func.func @_matmul_kernel(%arg0: i32, %arg1: memref<96x256xbf16, #tpu.memory_space<vmem>>, %arg2: memref<256x128xbf16, #tpu.memory_space<vmem>>, %arg3: memref<1x128xf32, #tpu.memory_space<vmem>>, %arg4: memref<96x128xf32, #tpu.memory_space<vmem>>) attributes {dimension_semantics = [#tpu.dimension_semantics<parallel>], iteration_bounds = array<i64: 1>, scalar_prefetch = 0 : i64, scratch_operands = 0 : i64, tpu.core_type = #tpu.core_type<tc>, window_params = [{transform_indices = @transform_0, window_bounds = array<i64: 96, 256>}, {pipeline_mode = #tpu.pipeline_mode<synchronous>, transform_indices = @transform_1, window_bounds = array<i64: 256, 128>}, {pipeline_mode = #tpu.pipeline_mode<synchronous>, transform_indices = @transform_2, window_bounds = array<i64: 1, 128>}, {transform_indices = @transform_3, window_bounds = array<i64: 96, 128>}]} {
    %c0 = arith.constant 0 : index
    %c0_0 = arith.constant 0 : index
    %0 = vector.load %arg1[%c0, %c0_0] : memref<96x256xbf16, #tpu.memory_space<vmem>>, vector<96x256xbf16>
    %c0_1 = arith.constant 0 : index
    %c0_2 = arith.constant 0 : index
    %1 = vector.load %arg2[%c0_1, %c0_2] : memref<256x128xbf16, #tpu.memory_space<vmem>>, vector<256x128xbf16>
    %cst = arith.constant dense<0.000000e+00> : vector<96x128xf32>
    %2 = tpu.matmul %0, %1, %cst {dimension_numbers = #tpu.dot_dimension_numbers<[1], [0], [0], [1], [0, 0, 1, 1], [], []>} : vector<96x256xbf16>, vector<256x128xbf16>, vector<96x128xf32> -> vector<96x128xf32>
    %c0_3 = arith.constant 0 : index
    %c0_4 = arith.constant 0 : index
    %3 = vector.load %arg3[%c0_3, %c0_4] : memref<1x128xf32, #tpu.memory_space<vmem>>, vector<1x128xf32>
    %4 = vector.broadcast %3 : vector<1x128xf32> to vector<96x128xf32>
    %5 = arith.addf %2, %4 : vector<96x128xf32>
    %cst_5 = arith.constant 0.000000e+00 : f32
    %6 = vector.broadcast %cst_5 : f32 to vector<96x128xf32>
    %7 = arith.maximumf %5, %6 : vector<96x128xf32>
    %c0_6 = arith.constant 0 : index
    %c0_7 = arith.constant 0 : index
    %8 = vector.load %arg4[%c0_6, %c0_7] : memref<96x128xf32, #tpu.memory_space<vmem>>, vector<96x128xf32>
    tpu.vector_store %arg4[%c0_6, %c0_7], %7 {strides = array<i32>} : memref<96x128xf32, #tpu.memory_space<vmem>>, vector<96x128xf32>,
    return
  }
  func.func @transform_0(%arg0: i32) -> (i32, i32) {
    %c0_i32 = arith.constant 0 : i32
    %c0_i32_0 = arith.constant 0 : i32
    return %arg0, %c0_i32 : i32, i32
  }
  func.func @transform_1(%arg0: i32) -> (i32, i32) {
    %c0_i32 = arith.constant 0 : i32
    %c0_i32_0 = arith.constant 0 : i32
    %c0_i32_1 = arith.constant 0 : i32
    return %c0_i32, %c0_i32_0 : i32, i32
  }
  func.func @transform_2(%arg0: i32) -> (i32, i32) {
    %c0_i32 = arith.constant 0 : i32
    %c0_i32_0 = arith.constant 0 : i32
    %c0_i32_1 = arith.constant 0 : i32
    return %c0_i32, %c0_i32_0 : i32, i32
  }
  func.func @transform_3(%arg0: i32) -> (i32, i32) {
    %c0_i32 = arith.constant 0 : i32
    %c0_i32_0 = arith.constant 0 : i32
    return %arg0, %c0_i32 : i32, i32
  }
}

module attributes {stable_mosaic.version = 11 : i64} {
  func.func @_matmul_kernel(%arg0: i32, %arg1: memref<96x256xbf16, #tpu.memory_space<vmem>>, %arg2: memref<256x128xbf16, #tpu.memory_space<vmem>>, %arg3: memref<1x128xf32, #tpu.memory_space<vmem>>, %arg4: memref<96x128xf32, #tpu.memory_space<vmem>>) attributes {dimension_semantics = [#tpu.dimension_semantics<parallel>], iteration_bounds = array<i64: 1>, scalar_prefetch = 0 : i64, scratch_operands = 0 : i64, tpu.core_type = #tpu.core_type<tc>, window_params = [{transform_indices = @transform_0, window_bounds = array<i64: 96, 256>}, {pipeline_mode = #tpu.pipeline_mode<synchronous>, transform_indices = @transform_1, window_bounds = array<i64: 256, 128>}, {pipeline_mode = #tpu.pipeline_mode<synchronous>, transform_indices = @transform_2, window_bounds = array<i64: 1, 128>}, {transform_indices = @transform_3, window_bounds = array<i64: 96, 128>}]} {
    %c0 = arith.constant 0 : index
    %c0_0 = arith.constant 0 : index
    %0 = vector.load %arg1[%c0, %c0_0] : memref<96x256xbf16, #tpu.memory_space<vmem>>, vector<96x256xbf16>
    %c0_1 = arith.constant 0 : index
    %c0_2 = arith.constant 0 : index
    %1 = vector.load %arg2[%c0_1, %c0_2] : memref<256x128xbf16, #tpu.memory_space<vmem>>, vector<256x128xbf16>
    %cst = arith.constant dense<0.000000e+00> : vector<96x128xf32>
    %2 = tpu.matmul %0, %1, %cst {dimension_numbers = #tpu.dot_dimension_numbers<[1], [0], [0], [1], [0, 0, 1, 1], [], []>} : vector<96x256xbf16>, vector<256x128xbf16>, vector<96x128xf32> -> vector<96x128xf32>
    %c0_3 = arith.constant 0 : index
    %c0_4 = arith.constant 0 : index
    %3 = vector.load %arg3[%c0_3, %c0_4] : memref<1x128xf32, #tpu.memory_space<vmem>>, vector<1x128xf32>
    %4 = vector.broadcast %3 : vector<1x128xf32> to vector<96x128xf32>
    %5 = arith.addf %2, %4 : vector<96x128xf32>
    %c0_5 = arith.constant 0 : index
    %c0_6 = arith.constant 0 : index
    %6 = vector.load %arg4[%c0_5, %c0_6] : memref<96x128xf32, #tpu.memory_space<vmem>>, vector<96x128xf32>
    tpu.vector_store %arg4[%c0_5, %c0_6], %5 {strides = array<i32>} : memref<96x128xf32, #tpu.memory_space<vmem>>, vector<96x128xf32>,
    return
  }
  func.func @transform_0(%arg0: i32) -> (i32, i32) {
    %c0_i32 = arith.constant 0 : i32
    %c0_i32_0 = arith.constant 0 : i32
    return %arg0, %c0_i32 : i32, i32
  }
  func.func @transform_1(%arg0: i32) -> (i32, i32) {
    %c0_i32 = arith.constant 0 : i32
    %c0_i32_0 = arith.constant 0 : i32
    %c0_i32_1 = arith.constant 0 : i32
    return %c0_i32, %c0_i32_0 : i32, i32
  }
  func.func @transform_2(%arg0: i32) -> (i32, i32) {
    %c0_i32 = arith.constant 0 : i32
    %c0_i32_0 = arith.constant 0 : i32
    %c0_i32_1 = arith.constant 0 : i32
    return %c0_i32, %c0_i32_0 : i32, i32
  }
  func.func @transform_3(%arg0: i32) -> (i32, i32) {
    %c0_i32 = arith.constant 0 : i32
    %c0_i32_0 = arith.constant 0 : i32
    return %arg0, %c0_i32 : i32, i32
  }
}

module attributes {stable_mosaic.version = 11 : i64} {
  func.func @_matmul_kernel(%arg0: i32, %arg1: memref<88x384xbf16, #tpu.memory_space<vmem>>, %arg2: memref<384x128xbf16, #tpu.memory_space<vmem>>, %arg3: memref<1x128xf32, #tpu.memory_space<vmem>>, %arg4: memref<88x128xf32, #tpu.memory_space<vmem>>) attributes {dimension_semantics = [#tpu.dimension_semantics<parallel>], iteration_bounds = array<i64: 1>, scalar_prefetch = 0 : i64, scratch_operands = 0 : i64, tpu.core_type = #tpu.core_type<tc>, window_params = [{transform_indices = @transform_0, window_bounds = array<i64: 88, 384>}, {pipeline_mode = #tpu.pipeline_mode<synchronous>, transform_indices = @transform_1, window_bounds = array<i64: 384, 128>}, {pipeline_mode = #tpu.pipeline_mode<synchronous>, transform_indices = @transform_2, window_bounds = array<i64: 1, 128>}, {transform_indices = @transform_3, window_bounds = array<i64: 88, 128>}]} {
    %c0 = arith.constant 0 : index
    %c0_0 = arith.constant 0 : index
    %0 = vector.load %arg1[%c0, %c0_0] : memref<88x384xbf16, #tpu.memory_space<vmem>>, vector<88x384xbf16>
    %c0_1 = arith.constant 0 : index
    %c0_2 = arith.constant 0 : index
    %1 = vector.load %arg2[%c0_1, %c0_2] : memref<384x128xbf16, #tpu.memory_space<vmem>>, vector<384x128xbf16>
    %cst = arith.constant dense<0.000000e+00> : vector<88x128xf32>
    %2 = tpu.matmul %0, %1, %cst {dimension_numbers = #tpu.dot_dimension_numbers<[1], [0], [0], [1], [0, 0, 1, 1], [], []>} : vector<88x384xbf16>, vector<384x128xbf16>, vector<88x128xf32> -> vector<88x128xf32>
    %c0_3 = arith.constant 0 : index
    %c0_4 = arith.constant 0 : index
    %3 = vector.load %arg3[%c0_3, %c0_4] : memref<1x128xf32, #tpu.memory_space<vmem>>, vector<1x128xf32>
    %4 = vector.broadcast %3 : vector<1x128xf32> to vector<88x128xf32>
    %5 = arith.addf %2, %4 : vector<88x128xf32>
    %cst_5 = arith.constant 0.000000e+00 : f32
    %6 = vector.broadcast %cst_5 : f32 to vector<88x128xf32>
    %7 = arith.cmpf ogt, %5, %6 : vector<88x128xf32>
    %cst_6 = arith.constant 0.000000e+00 : f32
    %8 = vector.broadcast %cst_6 : f32 to vector<88x128xf32>
    %9 = arith.minimumf %5, %8 : vector<88x128xf32>
    %10 = math.exp %9 : vector<88x128xf32>
    %cst_7 = arith.constant 1.000000e+00 : f32
    %11 = vector.broadcast %cst_7 : f32 to vector<88x128xf32>
    %12 = arith.subf %10, %11 : vector<88x128xf32>
    %cst_8 = arith.constant 1.000000e-01 : f32
    %13 = vector.broadcast %cst_8 : f32 to vector<88x128xf32>
    %14 = arith.mulf %13, %12 : vector<88x128xf32>
    %15 = arith.select %7, %5, %14 : vector<88x128xi1>, vector<88x128xf32>
    %c0_9 = arith.constant 0 : index
    %c0_10 = arith.constant 0 : index
    %16 = vector.load %arg4[%c0_9, %c0_10] : memref<88x128xf32, #tpu.memory_space<vmem>>, vector<88x128xf32>
    tpu.vector_store %arg4[%c0_9, %c0_10], %15 {strides = array<i32>} : memref<88x128xf32, #tpu.memory_space<vmem>>, vector<88x128xf32>,
    return
  }
  func.func @transform_0(%arg0: i32) -> (i32, i32) {
    %c0_i32 = arith.constant 0 : i32
    %c0_i32_0 = arith.constant 0 : i32
    return %arg0, %c0_i32 : i32, i32
  }
  func.func @transform_1(%arg0: i32) -> (i32, i32) {
    %c0_i32 = arith.constant 0 : i32
    %c0_i32_0 = arith.constant 0 : i32
    %c0_i32_1 = arith.constant 0 : i32
    return %c0_i32, %c0_i32_0 : i32, i32
  }
  func.func @transform_2(%arg0: i32) -> (i32, i32) {
    %c0_i32 = arith.constant 0 : i32
    %c0_i32_0 = arith.constant 0 : i32
    %c0_i32_1 = arith.constant 0 : i32
    return %c0_i32, %c0_i32_0 : i32, i32
  }
  func.func @transform_3(%arg0: i32) -> (i32, i32) {
    %c0_i32 = arith.constant 0 : i32
    %c0_i32_0 = arith.constant 0 : i32
    return %arg0, %c0_i32 : i32, i32
  }
}

module attributes {stable_mosaic.version = 11 : i64} {
  func.func @_matmul_kernel(%arg0: i32, %arg1: memref<16x256xbf16, #tpu.memory_space<vmem>>, %arg2: memref<256x128xbf16, #tpu.memory_space<vmem>>, %arg3: memref<1x128xf32, #tpu.memory_space<vmem>>, %arg4: memref<16x128xf32, #tpu.memory_space<vmem>>) attributes {dimension_semantics = [#tpu.dimension_semantics<parallel>], iteration_bounds = array<i64: 1>, scalar_prefetch = 0 : i64, scratch_operands = 0 : i64, tpu.core_type = #tpu.core_type<tc>, window_params = [{transform_indices = @transform_0, window_bounds = array<i64: 16, 256>}, {pipeline_mode = #tpu.pipeline_mode<synchronous>, transform_indices = @transform_1, window_bounds = array<i64: 256, 128>}, {pipeline_mode = #tpu.pipeline_mode<synchronous>, transform_indices = @transform_2, window_bounds = array<i64: 1, 128>}, {transform_indices = @transform_3, window_bounds = array<i64: 16, 128>}]} {
    %c0 = arith.constant 0 : index
    %c0_0 = arith.constant 0 : index
    %0 = vector.load %arg1[%c0, %c0_0] : memref<16x256xbf16, #tpu.memory_space<vmem>>, vector<16x256xbf16>
    %c0_1 = arith.constant 0 : index
    %c0_2 = arith.constant 0 : index
    %1 = vector.load %arg2[%c0_1, %c0_2] : memref<256x128xbf16, #tpu.memory_space<vmem>>, vector<256x128xbf16>
    %cst = arith.constant dense<0.000000e+00> : vector<16x128xf32>
    %2 = tpu.matmul %0, %1, %cst {dimension_numbers = #tpu.dot_dimension_numbers<[1], [0], [0], [1], [0, 0, 1, 1], [], []>} : vector<16x256xbf16>, vector<256x128xbf16>, vector<16x128xf32> -> vector<16x128xf32>
    %c0_3 = arith.constant 0 : index
    %c0_4 = arith.constant 0 : index
    %3 = vector.load %arg3[%c0_3, %c0_4] : memref<1x128xf32, #tpu.memory_space<vmem>>, vector<1x128xf32>
    %4 = vector.broadcast %3 : vector<1x128xf32> to vector<16x128xf32>
    %5 = arith.addf %2, %4 : vector<16x128xf32>
    %cst_5 = arith.constant 0.000000e+00 : f32
    %6 = vector.broadcast %cst_5 : f32 to vector<16x128xf32>
    %7 = arith.cmpf ogt, %5, %6 : vector<16x128xf32>
    %cst_6 = arith.constant 0.000000e+00 : f32
    %8 = vector.broadcast %cst_6 : f32 to vector<16x128xf32>
    %9 = arith.minimumf %5, %8 : vector<16x128xf32>
    %10 = math.exp %9 : vector<16x128xf32>
    %cst_7 = arith.constant 1.000000e+00 : f32
    %11 = vector.broadcast %cst_7 : f32 to vector<16x128xf32>
    %12 = arith.subf %10, %11 : vector<16x128xf32>
    %cst_8 = arith.constant 1.000000e-01 : f32
    %13 = vector.broadcast %cst_8 : f32 to vector<16x128xf32>
    %14 = arith.mulf %13, %12 : vector<16x128xf32>
    %15 = arith.select %7, %5, %14 : vector<16x128xi1>, vector<16x128xf32>
    %c0_9 = arith.constant 0 : index
    %c0_10 = arith.constant 0 : index
    %16 = vector.load %arg4[%c0_9, %c0_10] : memref<16x128xf32, #tpu.memory_space<vmem>>, vector<16x128xf32>
    tpu.vector_store %arg4[%c0_9, %c0_10], %15 {strides = array<i32>} : memref<16x128xf32, #tpu.memory_space<vmem>>, vector<16x128xf32>,
    return
  }
  func.func @transform_0(%arg0: i32) -> (i32, i32) {
    %c0_i32 = arith.constant 0 : i32
    %c0_i32_0 = arith.constant 0 : i32
    return %arg0, %c0_i32 : i32, i32
  }
  func.func @transform_1(%arg0: i32) -> (i32, i32) {
    %c0_i32 = arith.constant 0 : i32
    %c0_i32_0 = arith.constant 0 : i32
    %c0_i32_1 = arith.constant 0 : i32
    return %c0_i32, %c0_i32_0 : i32, i32
  }
  func.func @transform_2(%arg0: i32) -> (i32, i32) {
    %c0_i32 = arith.constant 0 : i32
    %c0_i32_0 = arith.constant 0 : i32
    %c0_i32_1 = arith.constant 0 : i32
    return %c0_i32, %c0_i32_0 : i32, i32
  }
  func.func @transform_3(%arg0: i32) -> (i32, i32) {
    %c0_i32 = arith.constant 0 : i32
    %c0_i32_0 = arith.constant 0 : i32
    return %arg0, %c0_i32 : i32, i32
  }
}

module attributes {stable_mosaic.version = 11 : i64} {
  func.func @_matmul_kernel(%arg0: i32, %arg1: memref<24x128xbf16, #tpu.memory_space<vmem>>, %arg2: memref<128x128xbf16, #tpu.memory_space<vmem>>, %arg3: memref<1x128xf32, #tpu.memory_space<vmem>>, %arg4: memref<24x128xf32, #tpu.memory_space<vmem>>) attributes {dimension_semantics = [#tpu.dimension_semantics<parallel>], iteration_bounds = array<i64: 1>, scalar_prefetch = 0 : i64, scratch_operands = 0 : i64, tpu.core_type = #tpu.core_type<tc>, window_params = [{transform_indices = @transform_0, window_bounds = array<i64: 24, 128>}, {pipeline_mode = #tpu.pipeline_mode<synchronous>, transform_indices = @transform_1, window_bounds = array<i64: 128, 128>}, {pipeline_mode = #tpu.pipeline_mode<synchronous>, transform_indices = @transform_2, window_bounds = array<i64: 1, 128>}, {transform_indices = @transform_3, window_bounds = array<i64: 24, 128>}]} {
    %c0 = arith.constant 0 : index
    %c0_0 = arith.constant 0 : index
    %0 = vector.load %arg1[%c0, %c0_0] : memref<24x128xbf16, #tpu.memory_space<vmem>>, vector<24x128xbf16>
    %c0_1 = arith.constant 0 : index
    %c0_2 = arith.constant 0 : index
    %1 = vector.load %arg2[%c0_1, %c0_2] : memref<128x128xbf16, #tpu.memory_space<vmem>>, vector<128x128xbf16>
    %cst = arith.constant dense<0.000000e+00> : vector<24x128xf32>
    %2 = tpu.matmul %0, %1, %cst {dimension_numbers = #tpu.dot_dimension_numbers<[1], [0], [0], [1], [0, 0, 1, 1], [], []>} : vector<24x128xbf16>, vector<128x128xbf16>, vector<24x128xf32> -> vector<24x128xf32>
    %c0_3 = arith.constant 0 : index
    %c0_4 = arith.constant 0 : index
    %3 = vector.load %arg3[%c0_3, %c0_4] : memref<1x128xf32, #tpu.memory_space<vmem>>, vector<1x128xf32>
    %4 = vector.broadcast %3 : vector<1x128xf32> to vector<24x128xf32>
    %5 = arith.addf %2, %4 : vector<24x128xf32>
    %c0_5 = arith.constant 0 : index
    %c0_6 = arith.constant 0 : index
    %6 = vector.load %arg4[%c0_5, %c0_6] : memref<24x128xf32, #tpu.memory_space<vmem>>, vector<24x128xf32>
    tpu.vector_store %arg4[%c0_5, %c0_6], %5 {strides = array<i32>} : memref<24x128xf32, #tpu.memory_space<vmem>>, vector<24x128xf32>,
    return
  }
  func.func @transform_0(%arg0: i32) -> (i32, i32) {
    %c0_i32 = arith.constant 0 : i32
    %c0_i32_0 = arith.constant 0 : i32
    return %arg0, %c0_i32 : i32, i32
  }
  func.func @transform_1(%arg0: i32) -> (i32, i32) {
    %c0_i32 = arith.constant 0 : i32
    %c0_i32_0 = arith.constant 0 : i32
    %c0_i32_1 = arith.constant 0 : i32
    return %c0_i32, %c0_i32_0 : i32, i32
  }
  func.func @transform_2(%arg0: i32) -> (i32, i32) {
    %c0_i32 = arith.constant 0 : i32
    %c0_i32_0 = arith.constant 0 : i32
    %c0_i32_1 = arith.constant 0 : i32
    return %c0_i32, %c0_i32_0 : i32, i32
  }
  func.func @transform_3(%arg0: i32) -> (i32, i32) {
    %c0_i32 = arith.constant 0 : i32
    %c0_i32_0 = arith.constant 0 : i32
    return %arg0, %c0_i32 : i32, i32
  }
}

module attributes {stable_mosaic.version = 11 : i64} {
  func.func @_matmul_kernel(%arg0: i32, %arg1: memref<8x128xbf16, #tpu.memory_space<vmem>>, %arg2: memref<128x384xbf16, #tpu.memory_space<vmem>>, %arg3: memref<1x384xf32, #tpu.memory_space<vmem>>, %arg4: memref<8x384xf32, #tpu.memory_space<vmem>>) attributes {dimension_semantics = [#tpu.dimension_semantics<parallel>], iteration_bounds = array<i64: 1>, scalar_prefetch = 0 : i64, scratch_operands = 0 : i64, tpu.core_type = #tpu.core_type<tc>, window_params = [{transform_indices = @transform_0, window_bounds = array<i64: 8, 128>}, {pipeline_mode = #tpu.pipeline_mode<synchronous>, transform_indices = @transform_1, window_bounds = array<i64: 128, 384>}, {pipeline_mode = #tpu.pipeline_mode<synchronous>, transform_indices = @transform_2, window_bounds = array<i64: 1, 384>}, {transform_indices = @transform_3, window_bounds = array<i64: 8, 384>}]} {
    %c0 = arith.constant 0 : index
    %c0_0 = arith.constant 0 : index
    %0 = vector.load %arg1[%c0, %c0_0] : memref<8x128xbf16, #tpu.memory_space<vmem>>, vector<8x128xbf16>
    %c0_1 = arith.constant 0 : index
    %c0_2 = arith.constant 0 : index
    %1 = vector.load %arg2[%c0_1, %c0_2] : memref<128x384xbf16, #tpu.memory_space<vmem>>, vector<128x384xbf16>
    %cst = arith.constant dense<0.000000e+00> : vector<8x384xf32>
    %2 = tpu.matmul %0, %1, %cst {dimension_numbers = #tpu.dot_dimension_numbers<[1], [0], [0], [1], [0, 0, 1, 1], [], []>} : vector<8x128xbf16>, vector<128x384xbf16>, vector<8x384xf32> -> vector<8x384xf32>
    %c0_3 = arith.constant 0 : index
    %c0_4 = arith.constant 0 : index
    %3 = vector.load %arg3[%c0_3, %c0_4] : memref<1x384xf32, #tpu.memory_space<vmem>>, vector<1x384xf32>
    %4 = vector.broadcast %3 : vector<1x384xf32> to vector<8x384xf32>
    %5 = arith.addf %2, %4 : vector<8x384xf32>
    %c0_5 = arith.constant 0 : index
    %c0_6 = arith.constant 0 : index
    %6 = vector.load %arg4[%c0_5, %c0_6] : memref<8x384xf32, #tpu.memory_space<vmem>>, vector<8x384xf32>
    tpu.vector_store %arg4[%c0_5, %c0_6], %5 {strides = array<i32>} : memref<8x384xf32, #tpu.memory_space<vmem>>, vector<8x384xf32>,
    return
  }
  func.func @transform_0(%arg0: i32) -> (i32, i32) {
    %c0_i32 = arith.constant 0 : i32
    %c0_i32_0 = arith.constant 0 : i32
    return %arg0, %c0_i32 : i32, i32
  }
  func.func @transform_1(%arg0: i32) -> (i32, i32) {
    %c0_i32 = arith.constant 0 : i32
    %c0_i32_0 = arith.constant 0 : i32
    %c0_i32_1 = arith.constant 0 : i32
    return %c0_i32, %c0_i32_0 : i32, i32
  }
  func.func @transform_2(%arg0: i32) -> (i32, i32) {
    %c0_i32 = arith.constant 0 : i32
    %c0_i32_0 = arith.constant 0 : i32
    %c0_i32_1 = arith.constant 0 : i32
    return %c0_i32, %c0_i32_0 : i32, i32
  }
  func.func @transform_3(%arg0: i32) -> (i32, i32) {
    %c0_i32 = arith.constant 0 : i32
    %c0_i32_0 = arith.constant 0 : i32
    return %arg0, %c0_i32 : i32, i32
  }
}

module attributes {stable_mosaic.version = 11 : i64} {
  func.func @_bigru_kernel(%arg0: memref<4x2x384xf32, #tpu.memory_space<vmem>>, %arg1: memref<128x384xbf16, #tpu.memory_space<vmem>>, %arg2: memref<1x384xf32, #tpu.memory_space<vmem>>, %arg3: memref<4x2x128xf32, #tpu.memory_space<vmem>>, %arg4: memref<2x128xf32, #tpu.memory_space<vmem>>) attributes {dimension_semantics = [], scalar_prefetch = 0 : i64, scratch_operands = 1 : i64, tpu.core_type = #tpu.core_type<tc>} {
    %cst = arith.constant 0.000000e+00 : f32
    %0 = vector.broadcast %cst : f32 to vector<2x128xf32>
    %c0 = arith.constant 0 : index
    %c0_0 = arith.constant 0 : index
    %1 = vector.load %arg4[%c0, %c0_0] : memref<2x128xf32, #tpu.memory_space<vmem>>, vector<2x128xf32>
    tpu.vector_store %arg4[%c0, %c0_0], %0 {strides = array<i32>} : memref<2x128xf32, #tpu.memory_space<vmem>>, vector<2x128xf32>,
    %c0_i32 = arith.constant 0 : i32
    %c0_1 = arith.constant 0 : index
    %c0_2 = arith.constant 0 : index
    %2 = vector.load %arg4[%c0_1, %c0_2] : memref<2x128xf32, #tpu.memory_space<vmem>>, vector<2x128xf32>
    %3 = arith.truncf %2 : vector<2x128xf32> to vector<2x128xbf16>
    %c0_3 = arith.constant 0 : index
    %c0_4 = arith.constant 0 : index
    %4 = vector.load %arg1[%c0_3, %c0_4] : memref<128x384xbf16, #tpu.memory_space<vmem>>, vector<128x384xbf16>
    %cst_5 = arith.constant dense<0.000000e+00> : vector<2x384xf32>
    %5 = tpu.matmul %3, %4, %cst_5 {dimension_numbers = #tpu.dot_dimension_numbers<[1], [0], [0], [1], [0, 0, 1, 1], [], []>} : vector<2x128xbf16>, vector<128x384xbf16>, vector<2x384xf32> -> vector<2x384xf32>
    %c0_6 = arith.constant 0 : index
    %c0_7 = arith.constant 0 : index
    %6 = vector.load %arg2[%c0_6, %c0_7] : memref<1x384xf32, #tpu.memory_space<vmem>>, vector<1x384xf32>
    %7 = vector.broadcast %6 : vector<1x384xf32> to vector<2x384xf32>
    %8 = arith.addf %5, %7 : vector<2x384xf32>
    %9 = arith.index_cast %c0_i32 : i32 to index
    %c0_8 = arith.constant 0 : index
    %c0_9 = arith.constant 0 : index
    %10 = vector.load %arg0[%9, %c0_8, %c0_9] : memref<4x2x384xf32, #tpu.memory_space<vmem>>, vector<1x2x384xf32>
    %11 = vector.shape_cast %10 : vector<1x2x384xf32> to vector<2x384xf32>
    %12 = vector.extract_strided_slice %11 {offsets = [0, 0], sizes = [2, 128], strides = [1, 1]} : vector<2x384xf32> to vector<2x128xf32>
    %13 = vector.extract_strided_slice %8 {offsets = [0, 0], sizes = [2, 128], strides = [1, 1]} : vector<2x384xf32> to vector<2x128xf32>
    %14 = arith.addf %12, %13 : vector<2x128xf32>
    %15 = arith.negf %14 : vector<2x128xf32>
    %16 = math.exp %15 : vector<2x128xf32>
    %cst_10 = arith.constant 1.000000e+00 : f32
    %17 = vector.broadcast %cst_10 : f32 to vector<2x128xf32>
    %18 = arith.addf %17, %16 : vector<2x128xf32>
    %19 = arith.divf %17, %18 : vector<2x128xf32>
    %20 = vector.extract_strided_slice %11 {offsets = [0, 128], sizes = [2, 128], strides = [1, 1]} : vector<2x384xf32> to vector<2x128xf32>
    %21 = vector.extract_strided_slice %8 {offsets = [0, 128], sizes = [2, 128], strides = [1, 1]} : vector<2x384xf32> to vector<2x128xf32>
    %22 = arith.addf %20, %21 : vector<2x128xf32>
    %23 = arith.negf %22 : vector<2x128xf32>
    %24 = math.exp %23 : vector<2x128xf32>
    %cst_11 = arith.constant 1.000000e+00 : f32
    %25 = vector.broadcast %cst_11 : f32 to vector<2x128xf32>
    %26 = arith.addf %25, %24 : vector<2x128xf32>
    %27 = arith.divf %25, %26 : vector<2x128xf32>
    %28 = vector.extract_strided_slice %11 {offsets = [0, 256], sizes = [2, 128], strides = [1, 1]} : vector<2x384xf32> to vector<2x128xf32>
    %29 = vector.extract_strided_slice %8 {offsets = [0, 256], sizes = [2, 128], strides = [1, 1]} : vector<2x384xf32> to vector<2x128xf32>
    %30 = arith.mulf %19, %29 : vector<2x128xf32>
    %31 = arith.addf %28, %30 : vector<2x128xf32>
    %32 = math.tanh %31 : vector<2x128xf32>
    %cst_12 = arith.constant 1.000000e+00 : f32
    %33 = vector.broadcast %cst_12 : f32 to vector<2x128xf32>
    %34 = arith.subf %33, %27 : vector<2x128xf32>
    %35 = arith.mulf %34, %32 : vector<2x128xf32>
    %36 = arith.mulf %27, %2 : vector<2x128xf32>
    %37 = arith.addf %35, %36 : vector<2x128xf32>
    %c0_13 = arith.constant 0 : index
    %c0_14 = arith.constant 0 : index
    %38 = vector.load %arg4[%c0_13, %c0_14] : memref<2x128xf32, #tpu.memory_space<vmem>>, vector<2x128xf32>
    tpu.vector_store %arg4[%c0_13, %c0_14], %37 {strides = array<i32>} : memref<2x128xf32, #tpu.memory_space<vmem>>, vector<2x128xf32>,
    %39 = arith.index_cast %c0_i32 : i32 to index
    %c0_15 = arith.constant 0 : index
    %c0_16 = arith.constant 0 : index
    %40 = vector.load %arg3[%39, %c0_15, %c0_16] : memref<4x2x128xf32, #tpu.memory_space<vmem>>, vector<1x2x128xf32>
    %41 = vector.shape_cast %40 : vector<1x2x128xf32> to vector<2x128xf32>
    %42 = vector.shape_cast %37 : vector<2x128xf32> to vector<1x2x128xf32>
    tpu.vector_store %arg3[%39, %c0_15, %c0_16], %42 {strides = array<i32>} : memref<4x2x128xf32, #tpu.memory_space<vmem>>, vector<1x2x128xf32>,
    %c1_i32 = arith.constant 1 : i32
    %c0_17 = arith.constant 0 : index
    %c0_18 = arith.constant 0 : index
    %43 = vector.load %arg4[%c0_17, %c0_18] : memref<2x128xf32, #tpu.memory_space<vmem>>, vector<2x128xf32>
    %44 = arith.truncf %43 : vector<2x128xf32> to vector<2x128xbf16>
    %c0_19 = arith.constant 0 : index
    %c0_20 = arith.constant 0 : index
    %45 = vector.load %arg1[%c0_19, %c0_20] : memref<128x384xbf16, #tpu.memory_space<vmem>>, vector<128x384xbf16>
    %cst_21 = arith.constant dense<0.000000e+00> : vector<2x384xf32>
    %46 = tpu.matmul %44, %45, %cst_21 {dimension_numbers = #tpu.dot_dimension_numbers<[1], [0], [0], [1], [0, 0, 1, 1], [], []>} : vector<2x128xbf16>, vector<128x384xbf16>, vector<2x384xf32> -> vector<2x384xf32>
    %c0_22 = arith.constant 0 : index
    %c0_23 = arith.constant 0 : index
    %47 = vector.load %arg2[%c0_22, %c0_23] : memref<1x384xf32, #tpu.memory_space<vmem>>, vector<1x384xf32>
    %48 = vector.broadcast %47 : vector<1x384xf32> to vector<2x384xf32>
    %49 = arith.addf %46, %48 : vector<2x384xf32>
    %50 = arith.index_cast %c1_i32 : i32 to index
    %c0_24 = arith.constant 0 : index
    %c0_25 = arith.constant 0 : index
    %51 = vector.load %arg0[%50, %c0_24, %c0_25] : memref<4x2x384xf32, #tpu.memory_space<vmem>>, vector<1x2x384xf32>
    %52 = vector.shape_cast %51 : vector<1x2x384xf32> to vector<2x384xf32>
    %53 = vector.extract_strided_slice %52 {offsets = [0, 0], sizes = [2, 128], strides = [1, 1]} : vector<2x384xf32> to vector<2x128xf32>
    %54 = vector.extract_strided_slice %49 {offsets = [0, 0], sizes = [2, 128], strides = [1, 1]} : vector<2x384xf32> to vector<2x128xf32>
    %55 = arith.addf %53, %54 : vector<2x128xf32>
    %56 = arith.negf %55 : vector<2x128xf32>
    %57 = math.exp %56 : vector<2x128xf32>
    %cst_26 = arith.constant 1.000000e+00 : f32
    %58 = vector.broadcast %cst_26 : f32 to vector<2x128xf32>
    %59 = arith.addf %58, %57 : vector<2x128xf32>
    %60 = arith.divf %58, %59 : vector<2x128xf32>
    %61 = vector.extract_strided_slice %52 {offsets = [0, 128], sizes = [2, 128], strides = [1, 1]} : vector<2x384xf32> to vector<2x128xf32>
    %62 = vector.extract_strided_slice %49 {offsets = [0, 128], sizes = [2, 128], strides = [1, 1]} : vector<2x384xf32> to vector<2x128xf32>
    %63 = arith.addf %61, %62 : vector<2x128xf32>
    %64 = arith.negf %63 : vector<2x128xf32>
    %65 = math.exp %64 : vector<2x128xf32>
    %cst_27 = arith.constant 1.000000e+00 : f32
    %66 = vector.broadcast %cst_27 : f32 to vector<2x128xf32>
    %67 = arith.addf %66, %65 : vector<2x128xf32>
    %68 = arith.divf %66, %67 : vector<2x128xf32>
    %69 = vector.extract_strided_slice %52 {offsets = [0, 256], sizes = [2, 128], strides = [1, 1]} : vector<2x384xf32> to vector<2x128xf32>
    %70 = vector.extract_strided_slice %49 {offsets = [0, 256], sizes = [2, 128], strides = [1, 1]} : vector<2x384xf32> to vector<2x128xf32>
    %71 = arith.mulf %60, %70 : vector<2x128xf32>
    %72 = arith.addf %69, %71 : vector<2x128xf32>
    %73 = math.tanh %72 : vector<2x128xf32>
    %cst_28 = arith.constant 1.000000e+00 : f32
    %74 = vector.broadcast %cst_28 : f32 to vector<2x128xf32>
    %75 = arith.subf %74, %68 : vector<2x128xf32>
    %76 = arith.mulf %75, %73 : vector<2x128xf32>
    %77 = arith.mulf %68, %43 : vector<2x128xf32>
    %78 = arith.addf %76, %77 : vector<2x128xf32>
    %c0_29 = arith.constant 0 : index
    %c0_30 = arith.constant 0 : index
    %79 = vector.load %arg4[%c0_29, %c0_30] : memref<2x128xf32, #tpu.memory_space<vmem>>, vector<2x128xf32>
    tpu.vector_store %arg4[%c0_29, %c0_30], %78 {strides = array<i32>} : memref<2x128xf32, #tpu.memory_space<vmem>>, vector<2x128xf32>,
    %80 = arith.index_cast %c1_i32 : i32 to index
    %c0_31 = arith.constant 0 : index
    %c0_32 = arith.constant 0 : index
    %81 = vector.load %arg3[%80, %c0_31, %c0_32] : memref<4x2x128xf32, #tpu.memory_space<vmem>>, vector<1x2x128xf32>
    %82 = vector.shape_cast %81 : vector<1x2x128xf32> to vector<2x128xf32>
    %83 = vector.shape_cast %78 : vector<2x128xf32> to vector<1x2x128xf32>
    tpu.vector_store %arg3[%80, %c0_31, %c0_32], %83 {strides = array<i32>} : memref<4x2x128xf32, #tpu.memory_space<vmem>>, vector<1x2x128xf32>,
    %c2_i32 = arith.constant 2 : i32
    %c0_33 = arith.constant 0 : index
    %c0_34 = arith.constant 0 : index
    %84 = vector.load %arg4[%c0_33, %c0_34] : memref<2x128xf32, #tpu.memory_space<vmem>>, vector<2x128xf32>
    %85 = arith.truncf %84 : vector<2x128xf32> to vector<2x128xbf16>
    %c0_35 = arith.constant 0 : index
    %c0_36 = arith.constant 0 : index
    %86 = vector.load %arg1[%c0_35, %c0_36] : memref<128x384xbf16, #tpu.memory_space<vmem>>, vector<128x384xbf16>
    %cst_37 = arith.constant dense<0.000000e+00> : vector<2x384xf32>
    %87 = tpu.matmul %85, %86, %cst_37 {dimension_numbers = #tpu.dot_dimension_numbers<[1], [0], [0], [1], [0, 0, 1, 1], [], []>} : vector<2x128xbf16>, vector<128x384xbf16>, vector<2x384xf32> -> vector<2x384xf32>
    %c0_38 = arith.constant 0 : index
    %c0_39 = arith.constant 0 : index
    %88 = vector.load %arg2[%c0_38, %c0_39] : memref<1x384xf32, #tpu.memory_space<vmem>>, vector<1x384xf32>
    %89 = vector.broadcast %88 : vector<1x384xf32> to vector<2x384xf32>
    %90 = arith.addf %87, %89 : vector<2x384xf32>
    %91 = arith.index_cast %c2_i32 : i32 to index
    %c0_40 = arith.constant 0 : index
    %c0_41 = arith.constant 0 : index
    %92 = vector.load %arg0[%91, %c0_40, %c0_41] : memref<4x2x384xf32, #tpu.memory_space<vmem>>, vector<1x2x384xf32>
    %93 = vector.shape_cast %92 : vector<1x2x384xf32> to vector<2x384xf32>
    %94 = vector.extract_strided_slice %93 {offsets = [0, 0], sizes = [2, 128], strides = [1, 1]} : vector<2x384xf32> to vector<2x128xf32>
    %95 = vector.extract_strided_slice %90 {offsets = [0, 0], sizes = [2, 128], strides = [1, 1]} : vector<2x384xf32> to vector<2x128xf32>
    %96 = arith.addf %94, %95 : vector<2x128xf32>
    %97 = arith.negf %96 : vector<2x128xf32>
    %98 = math.exp %97 : vector<2x128xf32>
    %cst_42 = arith.constant 1.000000e+00 : f32
    %99 = vector.broadcast %cst_42 : f32 to vector<2x128xf32>
    %100 = arith.addf %99, %98 : vector<2x128xf32>
    %101 = arith.divf %99, %100 : vector<2x128xf32>
    %102 = vector.extract_strided_slice %93 {offsets = [0, 128], sizes = [2, 128], strides = [1, 1]} : vector<2x384xf32> to vector<2x128xf32>
    %103 = vector.extract_strided_slice %90 {offsets = [0, 128], sizes = [2, 128], strides = [1, 1]} : vector<2x384xf32> to vector<2x128xf32>
    %104 = arith.addf %102, %103 : vector<2x128xf32>
    %105 = arith.negf %104 : vector<2x128xf32>
    %106 = math.exp %105 : vector<2x128xf32>
    %cst_43 = arith.constant 1.000000e+00 : f32
    %107 = vector.broadcast %cst_43 : f32 to vector<2x128xf32>
    %108 = arith.addf %107, %106 : vector<2x128xf32>
    %109 = arith.divf %107, %108 : vector<2x128xf32>
    %110 = vector.extract_strided_slice %93 {offsets = [0, 256], sizes = [2, 128], strides = [1, 1]} : vector<2x384xf32> to vector<2x128xf32>
    %111 = vector.extract_strided_slice %90 {offsets = [0, 256], sizes = [2, 128], strides = [1, 1]} : vector<2x384xf32> to vector<2x128xf32>
    %112 = arith.mulf %101, %111 : vector<2x128xf32>
    %113 = arith.addf %110, %112 : vector<2x128xf32>
    %114 = math.tanh %113 : vector<2x128xf32>
    %cst_44 = arith.constant 1.000000e+00 : f32
    %115 = vector.broadcast %cst_44 : f32 to vector<2x128xf32>
    %116 = arith.subf %115, %109 : vector<2x128xf32>
    %117 = arith.mulf %116, %114 : vector<2x128xf32>
    %118 = arith.mulf %109, %84 : vector<2x128xf32>
    %119 = arith.addf %117, %118 : vector<2x128xf32>
    %c0_45 = arith.constant 0 : index
    %c0_46 = arith.constant 0 : index
    %120 = vector.load %arg4[%c0_45, %c0_46] : memref<2x128xf32, #tpu.memory_space<vmem>>, vector<2x128xf32>
    tpu.vector_store %arg4[%c0_45, %c0_46], %119 {strides = array<i32>} : memref<2x128xf32, #tpu.memory_space<vmem>>, vector<2x128xf32>,
    %121 = arith.index_cast %c2_i32 : i32 to index
    %c0_47 = arith.constant 0 : index
    %c0_48 = arith.constant 0 : index
    %122 = vector.load %arg3[%121, %c0_47, %c0_48] : memref<4x2x128xf32, #tpu.memory_space<vmem>>, vector<1x2x128xf32>
    %123 = vector.shape_cast %122 : vector<1x2x128xf32> to vector<2x128xf32>
    %124 = vector.shape_cast %119 : vector<2x128xf32> to vector<1x2x128xf32>
    tpu.vector_store %arg3[%121, %c0_47, %c0_48], %124 {strides = array<i32>} : memref<4x2x128xf32, #tpu.memory_space<vmem>>, vector<1x2x128xf32>,
    %c3_i32 = arith.constant 3 : i32
    %c0_49 = arith.constant 0 : index
    %c0_50 = arith.constant 0 : index
    %125 = vector.load %arg4[%c0_49, %c0_50] : memref<2x128xf32, #tpu.memory_space<vmem>>, vector<2x128xf32>
    %126 = arith.truncf %125 : vector<2x128xf32> to vector<2x128xbf16>
    %c0_51 = arith.constant 0 : index
    %c0_52 = arith.constant 0 : index
    %127 = vector.load %arg1[%c0_51, %c0_52] : memref<128x384xbf16, #tpu.memory_space<vmem>>, vector<128x384xbf16>
    %cst_53 = arith.constant dense<0.000000e+00> : vector<2x384xf32>
    %128 = tpu.matmul %126, %127, %cst_53 {dimension_numbers = #tpu.dot_dimension_numbers<[1], [0], [0], [1], [0, 0, 1, 1], [], []>} : vector<2x128xbf16>, vector<128x384xbf16>, vector<2x384xf32> -> vector<2x384xf32>
    %c0_54 = arith.constant 0 : index
    %c0_55 = arith.constant 0 : index
    %129 = vector.load %arg2[%c0_54, %c0_55] : memref<1x384xf32, #tpu.memory_space<vmem>>, vector<1x384xf32>
    %130 = vector.broadcast %129 : vector<1x384xf32> to vector<2x384xf32>
    %131 = arith.addf %128, %130 : vector<2x384xf32>
    %132 = arith.index_cast %c3_i32 : i32 to index
    %c0_56 = arith.constant 0 : index
    %c0_57 = arith.constant 0 : index
    %133 = vector.load %arg0[%132, %c0_56, %c0_57] : memref<4x2x384xf32, #tpu.memory_space<vmem>>, vector<1x2x384xf32>
    %134 = vector.shape_cast %133 : vector<1x2x384xf32> to vector<2x384xf32>
    %135 = vector.extract_strided_slice %134 {offsets = [0, 0], sizes = [2, 128], strides = [1, 1]} : vector<2x384xf32> to vector<2x128xf32>
    %136 = vector.extract_strided_slice %131 {offsets = [0, 0], sizes = [2, 128], strides = [1, 1]} : vector<2x384xf32> to vector<2x128xf32>
    %137 = arith.addf %135, %136 : vector<2x128xf32>
    %138 = arith.negf %137 : vector<2x128xf32>
    %139 = math.exp %138 : vector<2x128xf32>
    %cst_58 = arith.constant 1.000000e+00 : f32
    %140 = vector.broadcast %cst_58 : f32 to vector<2x128xf32>
    %141 = arith.addf %140, %139 : vector<2x128xf32>
    %142 = arith.divf %140, %141 : vector<2x128xf32>
    %143 = vector.extract_strided_slice %134 {offsets = [0, 128], sizes = [2, 128], strides = [1, 1]} : vector<2x384xf32> to vector<2x128xf32>
    %144 = vector.extract_strided_slice %131 {offsets = [0, 128], sizes = [2, 128], strides = [1, 1]} : vector<2x384xf32> to vector<2x128xf32>
    %145 = arith.addf %143, %144 : vector<2x128xf32>
    %146 = arith.negf %145 : vector<2x128xf32>
    %147 = math.exp %146 : vector<2x128xf32>
    %cst_59 = arith.constant 1.000000e+00 : f32
    %148 = vector.broadcast %cst_59 : f32 to vector<2x128xf32>
    %149 = arith.addf %148, %147 : vector<2x128xf32>
    %150 = arith.divf %148, %149 : vector<2x128xf32>
    %151 = vector.extract_strided_slice %134 {offsets = [0, 256], sizes = [2, 128], strides = [1, 1]} : vector<2x384xf32> to vector<2x128xf32>
    %152 = vector.extract_strided_slice %131 {offsets = [0, 256], sizes = [2, 128], strides = [1, 1]} : vector<2x384xf32> to vector<2x128xf32>
    %153 = arith.mulf %142, %152 : vector<2x128xf32>
    %154 = arith.addf %151, %153 : vector<2x128xf32>
    %155 = math.tanh %154 : vector<2x128xf32>
    %cst_60 = arith.constant 1.000000e+00 : f32
    %156 = vector.broadcast %cst_60 : f32 to vector<2x128xf32>
    %157 = arith.subf %156, %150 : vector<2x128xf32>
    %158 = arith.mulf %157, %155 : vector<2x128xf32>
    %159 = arith.mulf %150, %125 : vector<2x128xf32>
    %160 = arith.addf %158, %159 : vector<2x128xf32>
    %c0_61 = arith.constant 0 : index
    %c0_62 = arith.constant 0 : index
    %161 = vector.load %arg4[%c0_61, %c0_62] : memref<2x128xf32, #tpu.memory_space<vmem>>, vector<2x128xf32>
    tpu.vector_store %arg4[%c0_61, %c0_62], %160 {strides = array<i32>} : memref<2x128xf32, #tpu.memory_space<vmem>>, vector<2x128xf32>,
    %162 = arith.index_cast %c3_i32 : i32 to index
    %c0_63 = arith.constant 0 : index
    %c0_64 = arith.constant 0 : index
    %163 = vector.load %arg3[%162, %c0_63, %c0_64] : memref<4x2x128xf32, #tpu.memory_space<vmem>>, vector<1x2x128xf32>
    %164 = vector.shape_cast %163 : vector<1x2x128xf32> to vector<2x128xf32>
    %165 = vector.shape_cast %160 : vector<2x128xf32> to vector<1x2x128xf32>
    tpu.vector_store %arg3[%162, %c0_63, %c0_64], %165 {strides = array<i32>} : memref<4x2x128xf32, #tpu.memory_space<vmem>>, vector<1x2x128xf32>,
    %c4_i32 = arith.constant 4 : i32
    return
  }
}

module attributes {stable_mosaic.version = 11 : i64} {
  func.func @_matmul_kernel(%arg0: i32, %arg1: memref<8x128xbf16, #tpu.memory_space<vmem>>, %arg2: memref<128x128xbf16, #tpu.memory_space<vmem>>, %arg3: memref<1x128xf32, #tpu.memory_space<vmem>>, %arg4: memref<8x128xf32, #tpu.memory_space<vmem>>) attributes {dimension_semantics = [#tpu.dimension_semantics<parallel>], iteration_bounds = array<i64: 1>, scalar_prefetch = 0 : i64, scratch_operands = 0 : i64, tpu.core_type = #tpu.core_type<tc>, window_params = [{transform_indices = @transform_0, window_bounds = array<i64: 8, 128>}, {pipeline_mode = #tpu.pipeline_mode<synchronous>, transform_indices = @transform_1, window_bounds = array<i64: 128, 128>}, {pipeline_mode = #tpu.pipeline_mode<synchronous>, transform_indices = @transform_2, window_bounds = array<i64: 1, 128>}, {transform_indices = @transform_3, window_bounds = array<i64: 8, 128>}]} {
    %c0 = arith.constant 0 : index
    %c0_0 = arith.constant 0 : index
    %0 = vector.load %arg1[%c0, %c0_0] : memref<8x128xbf16, #tpu.memory_space<vmem>>, vector<8x128xbf16>
    %c0_1 = arith.constant 0 : index
    %c0_2 = arith.constant 0 : index
    %1 = vector.load %arg2[%c0_1, %c0_2] : memref<128x128xbf16, #tpu.memory_space<vmem>>, vector<128x128xbf16>
    %cst = arith.constant dense<0.000000e+00> : vector<8x128xf32>
    %2 = tpu.matmul %0, %1, %cst {dimension_numbers = #tpu.dot_dimension_numbers<[1], [0], [0], [1], [0, 0, 1, 1], [], []>} : vector<8x128xbf16>, vector<128x128xbf16>, vector<8x128xf32> -> vector<8x128xf32>
    %c0_3 = arith.constant 0 : index
    %c0_4 = arith.constant 0 : index
    %3 = vector.load %arg3[%c0_3, %c0_4] : memref<1x128xf32, #tpu.memory_space<vmem>>, vector<1x128xf32>
    %4 = vector.broadcast %3 : vector<1x128xf32> to vector<8x128xf32>
    %5 = arith.addf %2, %4 : vector<8x128xf32>
    %cst_5 = arith.constant 0.000000e+00 : f32
    %6 = vector.broadcast %cst_5 : f32 to vector<8x128xf32>
    %7 = arith.maximumf %5, %6 : vector<8x128xf32>
    %c0_6 = arith.constant 0 : index
    %c0_7 = arith.constant 0 : index
    %8 = vector.load %arg4[%c0_6, %c0_7] : memref<8x128xf32, #tpu.memory_space<vmem>>, vector<8x128xf32>
    tpu.vector_store %arg4[%c0_6, %c0_7], %7 {strides = array<i32>} : memref<8x128xf32, #tpu.memory_space<vmem>>, vector<8x128xf32>,
    return
  }
  func.func @transform_0(%arg0: i32) -> (i32, i32) {
    %c0_i32 = arith.constant 0 : i32
    %c0_i32_0 = arith.constant 0 : i32
    return %arg0, %c0_i32 : i32, i32
  }
  func.func @transform_1(%arg0: i32) -> (i32, i32) {
    %c0_i32 = arith.constant 0 : i32
    %c0_i32_0 = arith.constant 0 : i32
    %c0_i32_1 = arith.constant 0 : i32
    return %c0_i32, %c0_i32_0 : i32, i32
  }
  func.func @transform_2(%arg0: i32) -> (i32, i32) {
    %c0_i32 = arith.constant 0 : i32
    %c0_i32_0 = arith.constant 0 : i32
    %c0_i32_1 = arith.constant 0 : i32
    return %c0_i32, %c0_i32_0 : i32, i32
  }
  func.func @transform_3(%arg0: i32) -> (i32, i32) {
    %c0_i32 = arith.constant 0 : i32
    %c0_i32_0 = arith.constant 0 : i32
    return %arg0, %c0_i32 : i32, i32
  }
}

module attributes {stable_mosaic.version = 11 : i64} {
  func.func @_matmul_kernel(%arg0: i32, %arg1: memref<8x128xbf16, #tpu.memory_space<vmem>>, %arg2: memref<128x128xbf16, #tpu.memory_space<vmem>>, %arg3: memref<1x128xf32, #tpu.memory_space<vmem>>, %arg4: memref<8x128xf32, #tpu.memory_space<vmem>>) attributes {dimension_semantics = [#tpu.dimension_semantics<parallel>], iteration_bounds = array<i64: 1>, scalar_prefetch = 0 : i64, scratch_operands = 0 : i64, tpu.core_type = #tpu.core_type<tc>, window_params = [{transform_indices = @transform_0, window_bounds = array<i64: 8, 128>}, {pipeline_mode = #tpu.pipeline_mode<synchronous>, transform_indices = @transform_1, window_bounds = array<i64: 128, 128>}, {pipeline_mode = #tpu.pipeline_mode<synchronous>, transform_indices = @transform_2, window_bounds = array<i64: 1, 128>}, {transform_indices = @transform_3, window_bounds = array<i64: 8, 128>}]} {
    %c0 = arith.constant 0 : index
    %c0_0 = arith.constant 0 : index
    %0 = vector.load %arg1[%c0, %c0_0] : memref<8x128xbf16, #tpu.memory_space<vmem>>, vector<8x128xbf16>
    %c0_1 = arith.constant 0 : index
    %c0_2 = arith.constant 0 : index
    %1 = vector.load %arg2[%c0_1, %c0_2] : memref<128x128xbf16, #tpu.memory_space<vmem>>, vector<128x128xbf16>
    %cst = arith.constant dense<0.000000e+00> : vector<8x128xf32>
    %2 = tpu.matmul %0, %1, %cst {dimension_numbers = #tpu.dot_dimension_numbers<[1], [0], [0], [1], [0, 0, 1, 1], [], []>} : vector<8x128xbf16>, vector<128x128xbf16>, vector<8x128xf32> -> vector<8x128xf32>
    %c0_3 = arith.constant 0 : index
    %c0_4 = arith.constant 0 : index
    %3 = vector.load %arg3[%c0_3, %c0_4] : memref<1x128xf32, #tpu.memory_space<vmem>>, vector<1x128xf32>
    %4 = vector.broadcast %3 : vector<1x128xf32> to vector<8x128xf32>
    %5 = arith.addf %2, %4 : vector<8x128xf32>
    %c0_5 = arith.constant 0 : index
    %c0_6 = arith.constant 0 : index
    %6 = vector.load %arg4[%c0_5, %c0_6] : memref<8x128xf32, #tpu.memory_space<vmem>>, vector<8x128xf32>
    tpu.vector_store %arg4[%c0_5, %c0_6], %5 {strides = array<i32>} : memref<8x128xf32, #tpu.memory_space<vmem>>, vector<8x128xf32>,
    return
  }
  func.func @transform_0(%arg0: i32) -> (i32, i32) {
    %c0_i32 = arith.constant 0 : i32
    %c0_i32_0 = arith.constant 0 : i32
    return %arg0, %c0_i32 : i32, i32
  }
  func.func @transform_1(%arg0: i32) -> (i32, i32) {
    %c0_i32 = arith.constant 0 : i32
    %c0_i32_0 = arith.constant 0 : i32
    %c0_i32_1 = arith.constant 0 : i32
    return %c0_i32, %c0_i32_0 : i32, i32
  }
  func.func @transform_2(%arg0: i32) -> (i32, i32) {
    %c0_i32 = arith.constant 0 : i32
    %c0_i32_0 = arith.constant 0 : i32
    %c0_i32_1 = arith.constant 0 : i32
    return %c0_i32, %c0_i32_0 : i32, i32
  }
  func.func @transform_3(%arg0: i32) -> (i32, i32) {
    %c0_i32 = arith.constant 0 : i32
    %c0_i32_0 = arith.constant 0 : i32
    return %arg0, %c0_i32 : i32, i32
  }
}

module attributes {stable_mosaic.version = 11 : i64} {
  func.func @_matmul_kernel(%arg0: i32, %arg1: memref<8x256xbf16, #tpu.memory_space<vmem>>, %arg2: memref<256x128xbf16, #tpu.memory_space<vmem>>, %arg3: memref<1x128xf32, #tpu.memory_space<vmem>>, %arg4: memref<8x128xf32, #tpu.memory_space<vmem>>) attributes {dimension_semantics = [#tpu.dimension_semantics<parallel>], iteration_bounds = array<i64: 1>, scalar_prefetch = 0 : i64, scratch_operands = 0 : i64, tpu.core_type = #tpu.core_type<tc>, window_params = [{transform_indices = @transform_0, window_bounds = array<i64: 8, 256>}, {pipeline_mode = #tpu.pipeline_mode<synchronous>, transform_indices = @transform_1, window_bounds = array<i64: 256, 128>}, {pipeline_mode = #tpu.pipeline_mode<synchronous>, transform_indices = @transform_2, window_bounds = array<i64: 1, 128>}, {transform_indices = @transform_3, window_bounds = array<i64: 8, 128>}]} {
    %c0 = arith.constant 0 : index
    %c0_0 = arith.constant 0 : index
    %0 = vector.load %arg1[%c0, %c0_0] : memref<8x256xbf16, #tpu.memory_space<vmem>>, vector<8x256xbf16>
    %c0_1 = arith.constant 0 : index
    %c0_2 = arith.constant 0 : index
    %1 = vector.load %arg2[%c0_1, %c0_2] : memref<256x128xbf16, #tpu.memory_space<vmem>>, vector<256x128xbf16>
    %cst = arith.constant dense<0.000000e+00> : vector<8x128xf32>
    %2 = tpu.matmul %0, %1, %cst {dimension_numbers = #tpu.dot_dimension_numbers<[1], [0], [0], [1], [0, 0, 1, 1], [], []>} : vector<8x256xbf16>, vector<256x128xbf16>, vector<8x128xf32> -> vector<8x128xf32>
    %c0_3 = arith.constant 0 : index
    %c0_4 = arith.constant 0 : index
    %3 = vector.load %arg3[%c0_3, %c0_4] : memref<1x128xf32, #tpu.memory_space<vmem>>, vector<1x128xf32>
    %4 = vector.broadcast %3 : vector<1x128xf32> to vector<8x128xf32>
    %5 = arith.addf %2, %4 : vector<8x128xf32>
    %cst_5 = arith.constant 0.000000e+00 : f32
    %6 = vector.broadcast %cst_5 : f32 to vector<8x128xf32>
    %7 = arith.maximumf %5, %6 : vector<8x128xf32>
    %c0_6 = arith.constant 0 : index
    %c0_7 = arith.constant 0 : index
    %8 = vector.load %arg4[%c0_6, %c0_7] : memref<8x128xf32, #tpu.memory_space<vmem>>, vector<8x128xf32>
    tpu.vector_store %arg4[%c0_6, %c0_7], %7 {strides = array<i32>} : memref<8x128xf32, #tpu.memory_space<vmem>>, vector<8x128xf32>,
    return
  }
  func.func @transform_0(%arg0: i32) -> (i32, i32) {
    %c0_i32 = arith.constant 0 : i32
    %c0_i32_0 = arith.constant 0 : i32
    return %arg0, %c0_i32 : i32, i32
  }
  func.func @transform_1(%arg0: i32) -> (i32, i32) {
    %c0_i32 = arith.constant 0 : i32
    %c0_i32_0 = arith.constant 0 : i32
    %c0_i32_1 = arith.constant 0 : i32
    return %c0_i32, %c0_i32_0 : i32, i32
  }
  func.func @transform_2(%arg0: i32) -> (i32, i32) {
    %c0_i32 = arith.constant 0 : i32
    %c0_i32_0 = arith.constant 0 : i32
    %c0_i32_1 = arith.constant 0 : i32
    return %c0_i32, %c0_i32_0 : i32, i32
  }
  func.func @transform_3(%arg0: i32) -> (i32, i32) {
    %c0_i32 = arith.constant 0 : i32
    %c0_i32_0 = arith.constant 0 : i32
    return %arg0, %c0_i32 : i32, i32
  }
}

module attributes {stable_mosaic.version = 11 : i64} {
  func.func @_matmul_kernel(%arg0: i32, %arg1: memref<8x256xbf16, #tpu.memory_space<vmem>>, %arg2: memref<256x128xbf16, #tpu.memory_space<vmem>>, %arg3: memref<1x128xf32, #tpu.memory_space<vmem>>, %arg4: memref<8x128xf32, #tpu.memory_space<vmem>>) attributes {dimension_semantics = [#tpu.dimension_semantics<parallel>], iteration_bounds = array<i64: 1>, scalar_prefetch = 0 : i64, scratch_operands = 0 : i64, tpu.core_type = #tpu.core_type<tc>, window_params = [{transform_indices = @transform_0, window_bounds = array<i64: 8, 256>}, {pipeline_mode = #tpu.pipeline_mode<synchronous>, transform_indices = @transform_1, window_bounds = array<i64: 256, 128>}, {pipeline_mode = #tpu.pipeline_mode<synchronous>, transform_indices = @transform_2, window_bounds = array<i64: 1, 128>}, {transform_indices = @transform_3, window_bounds = array<i64: 8, 128>}]} {
    %c0 = arith.constant 0 : index
    %c0_0 = arith.constant 0 : index
    %0 = vector.load %arg1[%c0, %c0_0] : memref<8x256xbf16, #tpu.memory_space<vmem>>, vector<8x256xbf16>
    %c0_1 = arith.constant 0 : index
    %c0_2 = arith.constant 0 : index
    %1 = vector.load %arg2[%c0_1, %c0_2] : memref<256x128xbf16, #tpu.memory_space<vmem>>, vector<256x128xbf16>
    %cst = arith.constant dense<0.000000e+00> : vector<8x128xf32>
    %2 = tpu.matmul %0, %1, %cst {dimension_numbers = #tpu.dot_dimension_numbers<[1], [0], [0], [1], [0, 0, 1, 1], [], []>} : vector<8x256xbf16>, vector<256x128xbf16>, vector<8x128xf32> -> vector<8x128xf32>
    %c0_3 = arith.constant 0 : index
    %c0_4 = arith.constant 0 : index
    %3 = vector.load %arg3[%c0_3, %c0_4] : memref<1x128xf32, #tpu.memory_space<vmem>>, vector<1x128xf32>
    %4 = vector.broadcast %3 : vector<1x128xf32> to vector<8x128xf32>
    %5 = arith.addf %2, %4 : vector<8x128xf32>
    %c0_5 = arith.constant 0 : index
    %c0_6 = arith.constant 0 : index
    %6 = vector.load %arg4[%c0_5, %c0_6] : memref<8x128xf32, #tpu.memory_space<vmem>>, vector<8x128xf32>
    tpu.vector_store %arg4[%c0_5, %c0_6], %5 {strides = array<i32>} : memref<8x128xf32, #tpu.memory_space<vmem>>, vector<8x128xf32>,
    return
  }
  func.func @transform_0(%arg0: i32) -> (i32, i32) {
    %c0_i32 = arith.constant 0 : i32
    %c0_i32_0 = arith.constant 0 : i32
    return %arg0, %c0_i32 : i32, i32
  }
  func.func @transform_1(%arg0: i32) -> (i32, i32) {
    %c0_i32 = arith.constant 0 : i32
    %c0_i32_0 = arith.constant 0 : i32
    %c0_i32_1 = arith.constant 0 : i32
    return %c0_i32, %c0_i32_0 : i32, i32
  }
  func.func @transform_2(%arg0: i32) -> (i32, i32) {
    %c0_i32 = arith.constant 0 : i32
    %c0_i32_0 = arith.constant 0 : i32
    %c0_i32_1 = arith.constant 0 : i32
    return %c0_i32, %c0_i32_0 : i32, i32
  }
  func.func @transform_3(%arg0: i32) -> (i32, i32) {
    %c0_i32 = arith.constant 0 : i32
    %c0_i32_0 = arith.constant 0 : i32
    return %arg0, %c0_i32 : i32, i32
  }
}

module attributes {stable_mosaic.version = 11 : i64} {
  func.func @_matmul_kernel(%arg0: i32, %arg1: memref<24x256xbf16, #tpu.memory_space<vmem>>, %arg2: memref<256x128xbf16, #tpu.memory_space<vmem>>, %arg3: memref<1x128xf32, #tpu.memory_space<vmem>>, %arg4: memref<24x128xf32, #tpu.memory_space<vmem>>) attributes {dimension_semantics = [#tpu.dimension_semantics<parallel>], iteration_bounds = array<i64: 1>, scalar_prefetch = 0 : i64, scratch_operands = 0 : i64, tpu.core_type = #tpu.core_type<tc>, window_params = [{transform_indices = @transform_0, window_bounds = array<i64: 24, 256>}, {pipeline_mode = #tpu.pipeline_mode<synchronous>, transform_indices = @transform_1, window_bounds = array<i64: 256, 128>}, {pipeline_mode = #tpu.pipeline_mode<synchronous>, transform_indices = @transform_2, window_bounds = array<i64: 1, 128>}, {transform_indices = @transform_3, window_bounds = array<i64: 24, 128>}]} {
    %c0 = arith.constant 0 : index
    %c0_0 = arith.constant 0 : index
    %0 = vector.load %arg1[%c0, %c0_0] : memref<24x256xbf16, #tpu.memory_space<vmem>>, vector<24x256xbf16>
    %c0_1 = arith.constant 0 : index
    %c0_2 = arith.constant 0 : index
    %1 = vector.load %arg2[%c0_1, %c0_2] : memref<256x128xbf16, #tpu.memory_space<vmem>>, vector<256x128xbf16>
    %cst = arith.constant dense<0.000000e+00> : vector<24x128xf32>
    %2 = tpu.matmul %0, %1, %cst {dimension_numbers = #tpu.dot_dimension_numbers<[1], [0], [0], [1], [0, 0, 1, 1], [], []>} : vector<24x256xbf16>, vector<256x128xbf16>, vector<24x128xf32> -> vector<24x128xf32>
    %c0_3 = arith.constant 0 : index
    %c0_4 = arith.constant 0 : index
    %3 = vector.load %arg3[%c0_3, %c0_4] : memref<1x128xf32, #tpu.memory_space<vmem>>, vector<1x128xf32>
    %4 = vector.broadcast %3 : vector<1x128xf32> to vector<24x128xf32>
    %5 = arith.addf %2, %4 : vector<24x128xf32>
    %cst_5 = arith.constant 0.000000e+00 : f32
    %6 = vector.broadcast %cst_5 : f32 to vector<24x128xf32>
    %7 = arith.maximumf %5, %6 : vector<24x128xf32>
    %c0_6 = arith.constant 0 : index
    %c0_7 = arith.constant 0 : index
    %8 = vector.load %arg4[%c0_6, %c0_7] : memref<24x128xf32, #tpu.memory_space<vmem>>, vector<24x128xf32>
    tpu.vector_store %arg4[%c0_6, %c0_7], %7 {strides = array<i32>} : memref<24x128xf32, #tpu.memory_space<vmem>>, vector<24x128xf32>,
    return
  }
  func.func @transform_0(%arg0: i32) -> (i32, i32) {
    %c0_i32 = arith.constant 0 : i32
    %c0_i32_0 = arith.constant 0 : i32
    return %arg0, %c0_i32 : i32, i32
  }
  func.func @transform_1(%arg0: i32) -> (i32, i32) {
    %c0_i32 = arith.constant 0 : i32
    %c0_i32_0 = arith.constant 0 : i32
    %c0_i32_1 = arith.constant 0 : i32
    return %c0_i32, %c0_i32_0 : i32, i32
  }
  func.func @transform_2(%arg0: i32) -> (i32, i32) {
    %c0_i32 = arith.constant 0 : i32
    %c0_i32_0 = arith.constant 0 : i32
    %c0_i32_1 = arith.constant 0 : i32
    return %c0_i32, %c0_i32_0 : i32, i32
  }
  func.func @transform_3(%arg0: i32) -> (i32, i32) {
    %c0_i32 = arith.constant 0 : i32
    %c0_i32_0 = arith.constant 0 : i32
    return %arg0, %c0_i32 : i32, i32
  }
}

module attributes {stable_mosaic.version = 11 : i64} {
  func.func @_matmul_kernel(%arg0: i32, %arg1: memref<24x256xbf16, #tpu.memory_space<vmem>>, %arg2: memref<256x128xbf16, #tpu.memory_space<vmem>>, %arg3: memref<1x128xf32, #tpu.memory_space<vmem>>, %arg4: memref<24x128xf32, #tpu.memory_space<vmem>>) attributes {dimension_semantics = [#tpu.dimension_semantics<parallel>], iteration_bounds = array<i64: 1>, scalar_prefetch = 0 : i64, scratch_operands = 0 : i64, tpu.core_type = #tpu.core_type<tc>, window_params = [{transform_indices = @transform_0, window_bounds = array<i64: 24, 256>}, {pipeline_mode = #tpu.pipeline_mode<synchronous>, transform_indices = @transform_1, window_bounds = array<i64: 256, 128>}, {pipeline_mode = #tpu.pipeline_mode<synchronous>, transform_indices = @transform_2, window_bounds = array<i64: 1, 128>}, {transform_indices = @transform_3, window_bounds = array<i64: 24, 128>}]} {
    %c0 = arith.constant 0 : index
    %c0_0 = arith.constant 0 : index
    %0 = vector.load %arg1[%c0, %c0_0] : memref<24x256xbf16, #tpu.memory_space<vmem>>, vector<24x256xbf16>
    %c0_1 = arith.constant 0 : index
    %c0_2 = arith.constant 0 : index
    %1 = vector.load %arg2[%c0_1, %c0_2] : memref<256x128xbf16, #tpu.memory_space<vmem>>, vector<256x128xbf16>
    %cst = arith.constant dense<0.000000e+00> : vector<24x128xf32>
    %2 = tpu.matmul %0, %1, %cst {dimension_numbers = #tpu.dot_dimension_numbers<[1], [0], [0], [1], [0, 0, 1, 1], [], []>} : vector<24x256xbf16>, vector<256x128xbf16>, vector<24x128xf32> -> vector<24x128xf32>
    %c0_3 = arith.constant 0 : index
    %c0_4 = arith.constant 0 : index
    %3 = vector.load %arg3[%c0_3, %c0_4] : memref<1x128xf32, #tpu.memory_space<vmem>>, vector<1x128xf32>
    %4 = vector.broadcast %3 : vector<1x128xf32> to vector<24x128xf32>
    %5 = arith.addf %2, %4 : vector<24x128xf32>
    %c0_5 = arith.constant 0 : index
    %c0_6 = arith.constant 0 : index
    %6 = vector.load %arg4[%c0_5, %c0_6] : memref<24x128xf32, #tpu.memory_space<vmem>>, vector<24x128xf32>
    tpu.vector_store %arg4[%c0_5, %c0_6], %5 {strides = array<i32>} : memref<24x128xf32, #tpu.memory_space<vmem>>, vector<24x128xf32>,
    return
  }
  func.func @transform_0(%arg0: i32) -> (i32, i32) {
    %c0_i32 = arith.constant 0 : i32
    %c0_i32_0 = arith.constant 0 : i32
    return %arg0, %c0_i32 : i32, i32
  }
  func.func @transform_1(%arg0: i32) -> (i32, i32) {
    %c0_i32 = arith.constant 0 : i32
    %c0_i32_0 = arith.constant 0 : i32
    %c0_i32_1 = arith.constant 0 : i32
    return %c0_i32, %c0_i32_0 : i32, i32
  }
  func.func @transform_2(%arg0: i32) -> (i32, i32) {
    %c0_i32 = arith.constant 0 : i32
    %c0_i32_0 = arith.constant 0 : i32
    %c0_i32_1 = arith.constant 0 : i32
    return %c0_i32, %c0_i32_0 : i32, i32
  }
  func.func @transform_3(%arg0: i32) -> (i32, i32) {
    %c0_i32 = arith.constant 0 : i32
    %c0_i32_0 = arith.constant 0 : i32
    return %arg0, %c0_i32 : i32, i32
  }
}

</mosaic_0001>

<bundles_post_ra>
// kernel: nldnn_forward.21
= control target key start
LH: loop header
LB: loop body
LE: loop exit
PB: predicated region body
PF: predicated region fallthrough
CT: control target
= control target key end

     0   :  { %s922_s1 = inlined_call_operand.vmem [shape: bf16[128,128], index: 1, kind: input, shape index: {}]   ;;  %s923_s2 = inlined_call_operand.vmem [shape: f32[1,128], index: 2, kind: input, shape index: {}]   ;;  %s924_s0 = inlined_call_operand.vmem [shape: bf16[368,128], index: 0, kind: input, shape index: {}]   ;;  %s925_s3 = inlined_call_operand.vmem [shape: f32[368,128], index: 3, kind: output, shape index: {}]  }
   0x1   :  { %v594_v0 = vld [vmem:[%s922_s1 + $0x38] sm:$0xff]  ;;  %v593_v1 = vld [vmem:[%s922_s1 + $0x30] sm:$0xff]  ;;  %v592_v2 = vld [vmem:[%s922_s1 + $0x28] sm:$0xff] }
   0x2   :  { %595 = vmatpush.bf16.msra.mxu1 %v594_v0  ;;  %596 = vmatpush.bf16.msra.mxu2 %v594_v0  ;;  %v591_v3 = vld [vmem:[%s922_s1 + $0x20] sm:$0xff]  ;;  %v590_v4 = vld [vmem:[%s922_s1 + $0x18] sm:$0xff]  ;;  %v589_v5 = vld [vmem:[%s922_s1 + $0x10] sm:$0xff] }
   0x3   :  { %597 = vmatpush.bf16.msra.mxu3 %v594_v0  ;;  %266 = vmatpush.bf16.msra.mxu0 %v594_v0  ;;  %v588_v6 = vld [vmem:[%s922_s1 + $0x8] sm:$0xff]  ;;  %v587_v7 = vld [vmem:[%s922_s1] sm:$0xff]  ;;  %v575_v9 = vld [vmem:[%s924_s0 + $0x58] sm:$0xff] }
   0x4   :  { %v569_v8 = vld [vmem:[%s924_s0 + $0x28] sm:$0xff]  ;;  %v564_v11 = vld [vmem:[%s924_s0] sm:$0xff]  ;;  %v570_v12 = vld [vmem:[%s924_s0 + $0x30] sm:$0xff] }
   0x5   :  { %v581_v10 = vld [vmem:[%s924_s0 + $0x88] sm:$0xff]  ;;  %v576_v13 = vld [vmem:[%s924_s0 + $0x60] sm:$0xff]  ;;  %v582_v14 = vld [vmem:[%s924_s0 + $0x90] sm:$0xff] }
   0x6   :  { %598 = vmatpush.bf16.msra.mxu1 %v593_v1  ;;  %599 = vmatpush.bf16.msra.mxu2 %v593_v1  ;;  %v565_v15 = vld [vmem:[%s924_s0 + $0x8] sm:$0xff]  ;;  %v571_v16 = vld [vmem:[%s924_s0 + $0x38] sm:$0xff]  ;;  %v566_v19 = vld [vmem:[%s924_s0 + $0x10] sm:$0xff] }
   0x7   :  { %600 = vmatpush.bf16.msra.mxu3 %v593_v1  ;;  %267 = vmatpush.bf16.msra.mxu0 %v593_v1  ;;  %v577_v17 = vld [vmem:[%s924_s0 + $0x68] sm:$0xff]  ;;  %v583_v18 = vld [vmem:[%s924_s0 + $0x98] sm:$0xff]  ;;  %v572_v20 = vld [vmem:[%s924_s0 + $0x40] sm:$0xff] }
   0x8   :  { %v578_v21 = vld [vmem:[%s924_s0 + $0x70] sm:$0xff]  ;;  %v584_v22 = vld [vmem:[%s924_s0 + $0xa0] sm:$0xff]  ;;  %v567_v23 = vld [vmem:[%s924_s0 + $0x18] sm:$0xff] }
   0x9   :  { %v573_v24 = vld [vmem:[%s924_s0 + $0x48] sm:$0xff]  ;;  %v579_v25 = vld [vmem:[%s924_s0 + $0x78] sm:$0xff]  ;;  %v568_v27 = vld [vmem:[%s924_s0 + $0x20] sm:$0xff] }
   0xa   :  { %601 = vmatpush.bf16.msra.mxu1 %v592_v2  ;;  %602 = vmatpush.bf16.msra.mxu2 %v592_v2  ;;  %v585_v26 = vld [vmem:[%s924_s0 + $0xa8] sm:$0xff]  ;;  %v574_v28 = vld [vmem:[%s924_s0 + $0x50] sm:$0xff]  ;;  %v580_v29 = vld [vmem:[%s924_s0 + $0x80] sm:$0xff] }
   0xb   :  { %603 = vmatpush.bf16.msra.mxu3 %v592_v2  ;;  %268 = vmatpush.bf16.msra.mxu0 %v592_v2  ;;  %v586_v30 = vld [vmem:[%s924_s0 + $0xb0] sm:$0xff]  ;;  %v736_v31 = vld [vmem:[%s923_s2] ss:$0 sm:$0xff] }
   0xe   :  { %604 = vmatpush.bf16.msra.mxu1 %v591_v3  ;;  %605 = vmatpush.bf16.msra.mxu2 %v591_v3 }
   0xf   :  { %606 = vmatpush.bf16.msra.mxu3 %v591_v3  ;;  %269 = vmatpush.bf16.msra.mxu0 %v591_v3 }
  0x12   :  { %607 = vmatpush.bf16.msra.mxu1 %v590_v4  ;;  %608 = vmatpush.bf16.msra.mxu2 %v590_v4 }
  0x13   :  { %609 = vmatpush.bf16.msra.mxu3 %v590_v4  ;;  %270 = vmatpush.bf16.msra.mxu0 %v590_v4 }
  0x16   :  { %610 = vmatpush.bf16.msra.mxu1 %v589_v5  ;;  %611 = vmatpush.bf16.msra.mxu2 %v589_v5 }
  0x17   :  { %612 = vmatpush.bf16.msra.mxu3 %v589_v5  ;;  %271 = vmatpush.bf16.msra.mxu0 %v589_v5 }
  0x1a   :  { %613 = vmatpush.bf16.msra.mxu1 %v588_v6  ;;  %614 = vmatpush.bf16.msra.mxu2 %v588_v6 }
  0x1b   :  { %615 = vmatpush.bf16.msra.mxu3 %v588_v6  ;;  %272 = vmatpush.bf16.msra.mxu0 %v588_v6 }
  0x1e   :  { %616 = vmatpush.bf16.msra.mxu1 %v587_v7  ;;  %617 = vmatpush.bf16.msra.mxu2 %v587_v7 }
  0x1f   :  { %618 = vmatpush.bf16.msra.mxu3 %v587_v7  ;;  %273 = vmatpush.bf16.msra.mxu0 %v587_v7 }
  0x21   :  { %299 = vmatmul.bf16.vlgmr.msra.gmra.mxu1 %v569_v8  ;;  %329 = vmatmul.bf16.vlgmr.msra.gmra.mxu2 %v575_v9 }
  0x22   :  { %359 = vmatmul.bf16.vlgmr.msra.gmra.mxu3 %v581_v10  ;;  %274 = vmatmul.bf16.vlgmr.msra.gmra.mxu0 %v564_v11 }
  0x31   :  { %304 = vmatmul.bf16.gmra.mxu1 %v570_v12  ;;  %334 = vmatmul.bf16.gmra.mxu2 %v576_v13 }
  0x32   :  { %364 = vmatmul.bf16.gmra.mxu3 %v582_v14  ;;  %279 = vmatmul.bf16.gmra.mxu0 %v565_v15 }
  0x41   :  { %309 = vmatmul.bf16.gmra.mxu1 %v571_v16  ;;  %339 = vmatmul.bf16.gmra.mxu2 %v577_v17 }
  0x42   :  { %369 = vmatmul.bf16.gmra.mxu3 %v583_v18  ;;  %284 = vmatmul.bf16.gmra.mxu0 %v566_v19 }
  0x51   :  { %314 = vmatmul.bf16.gmra.mxu1 %v572_v20  ;;  %344 = vmatmul.bf16.gmra.mxu2 %v578_v21 }
  0x52   :  { %374 = vmatmul.bf16.gmra.mxu3 %v584_v22  ;;  %289 = vmatmul.bf16.gmra.mxu0 %v567_v23 }
  0x61   :  { %319 = vmatmul.bf16.gmra.mxu1 %v573_v24  ;;  %349 = vmatmul.bf16.gmra.mxu2 %v579_v25 }
  0x62   :  { %379 = vmatmul.bf16.gmra.mxu3 %v585_v26  ;;  %294 = vmatmul.bf16.gmra.mxu0 %v568_v27 }
  0x71   :  { %324 = vmatmul.bf16.gmra.mxu1 %v574_v28  ;;  %354 = vmatmul.bf16.gmra.mxu2 %v580_v29 }
  0x72   :  { %384 = vmatmul.bf16.gmra.mxu3 %v586_v30 }
  0x9e   :  { %v300_v32 = vpop.f32.mrf.mxu1 }
  0x9f   :  { %v301_v33 = vadd.f32 %v736_v31, %v300_v32  ;;  %v275_v34 = vpop.f32.mrf.mxu0 }
  0xa0   :  { %v276_v35 = vadd.f32 %v736_v31, %v275_v34 }
  0xa1   :  { %400 = vst [vmem:[%s925_s3 + $0x50] sm:$0xff] %v301_v33 }
  0xa2   :  { %390 = vst [vmem:[%s925_s3] sm:$0xff] %v276_v35 }
  0xa4   :  { %v330_v36 = vpop.f32.mrf.mxu2 }
  0xa5   :  { %v331_v37 = vadd.f32 %v736_v31, %v330_v36  ;;  %v360_v38 = vpop.f32.mrf.mxu3 }
  0xa6   :  { %v361_v39 = vadd.f32 %v736_v31, %v360_v38  ;;  %v302_v40 = vpop.f32.mrf.mxu1 }
  0xa7   :  { %412 = vst [vmem:[%s925_s3 + $0xb0] sm:$0xff] %v331_v37  ;;  %v303_v41 = vadd.f32 %v736_v31, %v302_v40  ;;  %v277_v42 = vpop.f32.mrf.mxu0 }
  0xa8   :  { %424 = vst [vmem:[%s925_s3 + $0x110] sm:$0xff] %v361_v39  ;;  %v278_v43 = vadd.f32 %v736_v31, %v277_v42 }
  0xa9   :  { %401 = vst [vmem:[%s925_s3 + $0x58] sm:$0xff] %v303_v41 }
  0xaa   :  { %391 = vst [vmem:[%s925_s3 + $0x8] sm:$0xff] %v278_v43 }
  0xac   :  { %v332_v44 = vpop.f32.mrf.mxu2 }
  0xad   :  { %v333_v45 = vadd.f32 %v736_v31, %v332_v44  ;;  %v362_v46 = vpop.f32.mrf.mxu3 }
  0xae   :  { %v363_v47 = vadd.f32 %v736_v31, %v362_v46  ;;  %v305_v48 = vpop.f32.mrf.mxu1 }
  0xaf   :  { %413 = vst [vmem:[%s925_s3 + $0xb8] sm:$0xff] %v333_v45  ;;  %v306_v49 = vadd.f32 %v736_v31, %v305_v48  ;;  %v280_v50 = vpop.f32.mrf.mxu0 }
  0xb0   :  { %425 = vst [vmem:[%s925_s3 + $0x118] sm:$0xff] %v363_v47  ;;  %v281_v51 = vadd.f32 %v736_v31, %v280_v50 }
  0xb1   :  { %402 = vst [vmem:[%s925_s3 + $0x60] sm:$0xff] %v306_v49 }
  0xb2   :  { %392 = vst [vmem:[%s925_s3 + $0x10] sm:$0xff] %v281_v51 }
  0xb4   :  { %v335_v52 = vpop.f32.mrf.mxu2 }
  0xb5   :  { %v336_v53 = vadd.f32 %v736_v31, %v335_v52  ;;  %v365_v54 = vpop.f32.mrf.mxu3 }
  0xb6   :  { %v366_v55 = vadd.f32 %v736_v31, %v365_v54  ;;  %v307_v56 = vpop.f32.mrf.mxu1 }
  0xb7   :  { %414 = vst [vmem:[%s925_s3 + $0xc0] sm:$0xff] %v336_v53  ;;  %v308_v57 = vadd.f32 %v736_v31, %v307_v56  ;;  %v282_v58 = vpop.f32.mrf.mxu0 }
  0xb8   :  { %426 = vst [vmem:[%s925_s3 + $0x120] sm:$0xff] %v366_v55  ;;  %v283_v59 = vadd.f32 %v736_v31, %v282_v58 }
  0xb9   :  { %403 = vst [vmem:[%s925_s3 + $0x68] sm:$0xff] %v308_v57 }
  0xba   :  { %393 = vst [vmem:[%s925_s3 + $0x18] sm:$0xff] %v283_v59 }
  0xbc   :  { %v337_v60 = vpop.f32.mrf.mxu2 }
  0xbd   :  { %v338_v61 = vadd.f32 %v736_v31, %v337_v60  ;;  %v367_v62 = vpop.f32.mrf.mxu3 }
  0xbe   :  { %v368_v63 = vadd.f32 %v736_v31, %v367_v62  ;;  %v310_v0 = vpop.f32.mrf.mxu1 }
  0xbf   :  { %415 = vst [vmem:[%s925_s3 + $0xc8] sm:$0xff] %v338_v61  ;;  %v311_v1 = vadd.f32 %v736_v31, %v310_v0  ;;  %v285_v2 = vpop.f32.mrf.mxu0 }
  0xc0   :  { %427 = vst [vmem:[%s925_s3 + $0x128] sm:$0xff] %v368_v63  ;;  %v286_v3 = vadd.f32 %v736_v31, %v285_v2 }
  0xc1   :  { %404 = vst [vmem:[%s925_s3 + $0x70] sm:$0xff] %v311_v1 }
  0xc2   :  { %394 = vst [vmem:[%s925_s3 + $0x20] sm:$0xff] %v286_v3 }
  0xc4   :  { %v340_v4 = vpop.f32.mrf.mxu2 }
  0xc5   :  { %v341_v5 = vadd.f32 %v736_v31, %v340_v4  ;;  %v370_v6 = vpop.f32.mrf.mxu3 }
  0xc6   :  { %v371_v7 = vadd.f32 %v736_v31, %v370_v6  ;;  %v312_v8 = vpop.f32.mrf.mxu1 }
  0xc7   :  { %416 = vst [vmem:[%s925_s3 + $0xd0] sm:$0xff] %v341_v5  ;;  %v313_v9 = vadd.f32 %v736_v31, %v312_v8  ;;  %v287_v10 = vpop.f32.mrf.mxu0 }
  0xc8   :  { %428 = vst [vmem:[%s925_s3 + $0x130] sm:$0xff] %v371_v7  ;;  %v288_v11 = vadd.f32 %v736_v31, %v287_v10 }
  0xc9   :  { %405 = vst [vmem:[%s925_s3 + $0x78] sm:$0xff] %v313_v9 }
  0xca   :  { %395 = vst [vmem:[%s925_s3 + $0x28] sm:$0xff] %v288_v11 }
  0xcc   :  { %v342_v12 = vpop.f32.mrf.mxu2 }
  0xcd   :  { %v343_v13 = vadd.f32 %v736_v31, %v342_v12  ;;  %v372_v14 = vpop.f32.mrf.mxu3 }
  0xce   :  { %v373_v15 = vadd.f32 %v736_v31, %v372_v14  ;;  %v315_v16 = vpop.f32.mrf.mxu1 }
  0xcf   :  { %417 = vst [vmem:[%s925_s3 + $0xd8] sm:$0xff] %v343_v13  ;;  %v316_v17 = vadd.f32 %v736_v31, %v315_v16  ;;  %v290_v18 = vpop.f32.mrf.mxu0 }
  0xd0   :  { %429 = vst [vmem:[%s925_s3 + $0x138] sm:$0xff] %v373_v15  ;;  %v291_v19 = vadd.f32 %v736_v31, %v290_v18 }
  0xd1   :  { %406 = vst [vmem:[%s925_s3 + $0x80] sm:$0xff] %v316_v17 }
  0xd2   :  { %396 = vst [vmem:[%s925_s3 + $0x30] sm:$0xff] %v291_v19 }
  0xd4   :  { %v345_v20 = vpop.f32.mrf.mxu2 }
  0xd5   :  { %v346_v21 = vadd.f32 %v736_v31, %v345_v20  ;;  %v375_v22 = vpop.f32.mrf.mxu3 }
  0xd6   :  { %v376_v23 = vadd.f32 %v736_v31, %v375_v22  ;;  %v317_v24 = vpop.f32.mrf.mxu1 }
  0xd7   :  { %418 = vst [vmem:[%s925_s3 + $0xe0] sm:$0xff] %v346_v21  ;;  %v318_v25 = vadd.f32 %v736_v31, %v317_v24  ;;  %v292_v26 = vpop.f32.mrf.mxu0 }
  0xd8   :  { %430 = vst [vmem:[%s925_s3 + $0x140] sm:$0xff] %v376_v23  ;;  %v293_v27 = vadd.f32 %v736_v31, %v292_v26 }
  0xd9   :  { %407 = vst [vmem:[%s925_s3 + $0x88] sm:$0xff] %v318_v25 }
  0xda   :  { %397 = vst [vmem:[%s925_s3 + $0x38] sm:$0xff] %v293_v27 }
  0xdc   :  { %v347_v28 = vpop.f32.mrf.mxu2 }
  0xdd   :  { %v348_v29 = vadd.f32 %v736_v31, %v347_v28  ;;  %v377_v30 = vpop.f32.mrf.mxu3 }
  0xde   :  { %v378_v32 = vadd.f32 %v736_v31, %v377_v30  ;;  %v320_v33 = vpop.f32.mrf.mxu1 }
  0xdf   :  { %419 = vst [vmem:[%s925_s3 + $0xe8] sm:$0xff] %v348_v29  ;;  %v321_v34 = vadd.f32 %v736_v31, %v320_v33  ;;  %v295_v35 = vpop.f32.mrf.mxu0 }
  0xe0   :  { %431 = vst [vmem:[%s925_s3 + $0x148] sm:$0xff] %v378_v32  ;;  %v296_v36 = vadd.f32 %v736_v31, %v295_v35 }
  0xe1   :  { %408 = vst [vmem:[%s925_s3 + $0x90] sm:$0xff] %v321_v34 }
  0xe2   :  { %398 = vst [vmem:[%s925_s3 + $0x40] sm:$0xff] %v296_v36 }
  0xe4   :  { %v350_v37 = vpop.f32.mrf.mxu2 }
  0xe5   :  { %v351_v38 = vadd.f32 %v736_v31, %v350_v37  ;;  %v380_v39 = vpop.f32.mrf.mxu3 }
  0xe6   :  { %v381_v40 = vadd.f32 %v736_v31, %v380_v39  ;;  %v322_v41 = vpop.f32.mrf.mxu1 }
  0xe7   :  { %420 = vst [vmem:[%s925_s3 + $0xf0] sm:$0xff] %v351_v38  ;;  %v323_v42 = vadd.f32 %v736_v31, %v322_v41  ;;  %v297_v43 = vpop.f32.mrf.mxu0 }
  0xe8   :  { %432 = vst [vmem:[%s925_s3 + $0x150] sm:$0xff] %v381_v40  ;;  %v298_v44 = vadd.f32 %v736_v31, %v297_v43 }
  0xe9   :  { %409 = vst [vmem:[%s925_s3 + $0x98] sm:$0xff] %v323_v42 }
  0xea   :  { %399 = vst [vmem:[%s925_s3 + $0x48] sm:$0xff] %v298_v44 }
  0xec   :  { %v352_v45 = vpop.f32.mrf.mxu2 }
  0xed   :  { %v353_v46 = vadd.f32 %v736_v31, %v352_v45  ;;  %v382_v47 = vpop.f32.mrf.mxu3 }
  0xee   :  { %v383_v48 = vadd.f32 %v736_v31, %v382_v47  ;;  %v325_v49 = vpop.f32.mrf.mxu1 }
  0xef   :  { %421 = vst [vmem:[%s925_s3 + $0xf8] sm:$0xff] %v353_v46  ;;  %v326_v50 = vadd.f32 %v736_v31, %v325_v49 }
  0xf0   :  { %433 = vst [vmem:[%s925_s3 + $0x158] sm:$0xff] %v383_v48 }
  0xf1   :  { %410 = vst [vmem:[%s925_s3 + $0xa0] sm:$0xff] %v326_v50 }
  0xf4   :  { %v355_v51 = vpop.f32.mrf.mxu2 }
  0xf5   :  { %v356_v52 = vadd.f32 %v736_v31, %v355_v51  ;;  %v385_v53 = vpop.f32.mrf.mxu3 }
  0xf6   :  { %v386_v54 = vadd.f32 %v736_v31, %v385_v53  ;;  %v327_v55 = vpop.f32.mrf.mxu1 }
  0xf7   :  { %422 = vst [vmem:[%s925_s3 + $0x100] sm:$0xff] %v356_v52  ;;  %v328_v56 = vadd.f32 %v736_v31, %v327_v55 }
  0xf8   :  { %434 = vst [vmem:[%s925_s3 + $0x160] sm:$0xff] %v386_v54 }
  0xf9   :  { %411 = vst [vmem:[%s925_s3 + $0xa8] sm:$0xff] %v328_v56 }
  0xfc   :  { %v357_v57 = vpop.f32.mrf.mxu2 }
  0xfd   :  { %v358_v58 = vadd.f32 %v736_v31, %v357_v57  ;;  %v387_v59 = vpop.f32.mrf.mxu3 }
  0xfe   :  { %v388_v60 = vadd.f32 %v736_v31, %v387_v59 }
  0xff   :  { %423 = vst [vmem:[%s925_s3 + $0x108] sm:$0xff] %v358_v58 }
 0x100   :  { %435 = vst [vmem:[%s925_s3 + $0x168] sm:$0xff] %v388_v60 }

// kernel: nldnn_forward.38
= control target key start
LH: loop header
LB: loop body
LE: loop exit
PB: predicated region body
PF: predicated region fallthrough
CT: control target
= control target key end

     0   :  { %s381_s1 = inlined_call_operand.vmem [shape: bf16[128,128], index: 1, kind: input, shape index: {}]   ;;  %s382_s2 = inlined_call_operand.vmem [shape: f32[1,128], index: 2, kind: input, shape index: {}]   ;;  %s383_s0 = inlined_call_operand.vmem [shape: bf16[96,128], index: 0, kind: input, shape index: {}]   ;;  %s384_s3 = inlined_call_operand.vmem [shape: f32[96,128], index: 3, kind: output, shape index: {}]  }
   0x1   :  { %v254_v0 = vld [vmem:[%s381_s1 + $0x38] sm:$0xff]  ;;  %v253_v1 = vld [vmem:[%s381_s1 + $0x30] sm:$0xff]  ;;  %v252_v2 = vld [vmem:[%s381_s1 + $0x28] sm:$0xff] }
   0x2   :  { %256 = vmatpush.bf16.msra.mxu2 %v254_v0  ;;  %257 = vmatpush.bf16.msra.mxu3 %v254_v0  ;;  %v251_v3 = vld [vmem:[%s381_s1 + $0x20] sm:$0xff]  ;;  %v250_v4 = vld [vmem:[%s381_s1 + $0x18] sm:$0xff]  ;;  %v249_v5 = vld [vmem:[%s381_s1 + $0x10] sm:$0xff] }
   0x3   :  { %130 = vmatpush.bf16.msra.mxu0 %v254_v0  ;;  %255 = vmatpush.bf16.msra.mxu1 %v254_v0  ;;  %v248_v6 = vld [vmem:[%s381_s1 + $0x8] sm:$0xff]  ;;  %v247_v7 = vld [vmem:[%s381_s1] sm:$0xff]  ;;  %v243_v8 = vld [vmem:[%s383_s0 + $0x10] sm:$0xff] }
   0x4   :  { %v245_v9 = vld [vmem:[%s383_s0 + $0x20] sm:$0xff]  ;;  %v242_v11 = vld [vmem:[%s383_s0 + $0x8] sm:$0xff]  ;;  %v244_v12 = vld [vmem:[%s383_s0 + $0x18] sm:$0xff] }
   0x5   :  { %v241_v10 = vld [vmem:[%s383_s0] sm:$0xff]  ;;  %v246_v13 = vld [vmem:[%s383_s0 + $0x28] sm:$0xff] }
   0x6   :  { %259 = vmatpush.bf16.msra.mxu2 %v253_v1  ;;  %260 = vmatpush.bf16.msra.mxu3 %v253_v1  ;;  %v279_v14 = vld [vmem:[%s382_s2] ss:$0 sm:$0xff] }
   0x7   :  { %131 = vmatpush.bf16.msra.mxu0 %v253_v1  ;;  %258 = vmatpush.bf16.msra.mxu1 %v253_v1 }
   0xa   :  { %262 = vmatpush.bf16.msra.mxu2 %v252_v2  ;;  %263 = vmatpush.bf16.msra.mxu3 %v252_v2 }
   0xb   :  { %132 = vmatpush.bf16.msra.mxu0 %v252_v2  ;;  %261 = vmatpush.bf16.msra.mxu1 %v252_v2 }
   0xe   :  { %265 = vmatpush.bf16.msra.mxu2 %v251_v3  ;;  %266 = vmatpush.bf16.msra.mxu3 %v251_v3 }
   0xf   :  { %133 = vmatpush.bf16.msra.mxu0 %v251_v3  ;;  %264 = vmatpush.bf16.msra.mxu1 %v251_v3 }
  0x12   :  { %268 = vmatpush.bf16.msra.mxu2 %v250_v4  ;;  %269 = vmatpush.bf16.msra.mxu3 %v250_v4 }
  0x13   :  { %134 = vmatpush.bf16.msra.mxu0 %v250_v4  ;;  %267 = vmatpush.bf16.msra.mxu1 %v250_v4 }
  0x16   :  { %271 = vmatpush.bf16.msra.mxu2 %v249_v5  ;;  %272 = vmatpush.bf16.msra.mxu3 %v249_v5 }
  0x17   :  { %135 = vmatpush.bf16.msra.mxu0 %v249_v5  ;;  %270 = vmatpush.bf16.msra.mxu1 %v249_v5 }
  0x1a   :  { %274 = vmatpush.bf16.msra.mxu2 %v248_v6  ;;  %275 = vmatpush.bf16.msra.mxu3 %v248_v6 }
  0x1b   :  { %136 = vmatpush.bf16.msra.mxu0 %v248_v6  ;;  %273 = vmatpush.bf16.msra.mxu1 %v248_v6 }
  0x1e   :  { %277 = vmatpush.bf16.msra.mxu2 %v247_v7  ;;  %278 = vmatpush.bf16.msra.mxu3 %v247_v7 }
  0x1f   :  { %137 = vmatpush.bf16.msra.mxu0 %v247_v7  ;;  %276 = vmatpush.bf16.msra.mxu1 %v247_v7 }
  0x21   :  { %148 = vmatmul.bf16.vlgmr.msra.gmra.mxu2 %v243_v8  ;;  %158 = vmatmul.bf16.vlgmr.msra.gmra.mxu3 %v245_v9 }
  0x22   :  { %138 = vmatmul.bf16.vlgmr.msra.gmra.mxu0 %v241_v10  ;;  %143 = vmatmul.bf16.vlgmr.msra.gmra.mxu1 %v242_v11 }
  0x31   :  { %153 = vmatmul.bf16.gmra.mxu2 %v244_v12  ;;  %163 = vmatmul.bf16.gmra.mxu3 %v246_v13 }
  0x9f   :  { %v139_v15 = vpop.f32.mrf.mxu0  ;;  %v144_v16 = vpop.f32.mrf.mxu1 }
  0xa0   :  { %v140_v17 = vadd.f32 %v279_v14, %v139_v15  ;;  %v145_v18 = vadd.f32 %v279_v14, %v144_v16 }
  0xa2   :  { %169 = vst [vmem:[%s384_s3] sm:$0xff] %v140_v17 }
  0xa3   :  { %171 = vst [vmem:[%s384_s3 + $0x10] sm:$0xff] %v145_v18 }
  0xa4   :  { %v149_v19 = vpop.f32.mrf.mxu2  ;;  %v159_v20 = vpop.f32.mrf.mxu3 }
  0xa5   :  { %v150_v21 = vadd.f32 %v279_v14, %v149_v19  ;;  %v160_v22 = vadd.f32 %v279_v14, %v159_v20 }
  0xa7   :  { %173 = vst [vmem:[%s384_s3 + $0x20] sm:$0xff] %v150_v21  ;;  %v141_v23 = vpop.f32.mrf.mxu0  ;;  %v146_v24 = vpop.f32.mrf.mxu1 }
  0xa8   :  { %177 = vst [vmem:[%s384_s3 + $0x40] sm:$0xff] %v160_v22  ;;  %v142_v25 = vadd.f32 %v279_v14, %v141_v23  ;;  %v147_v26 = vadd.f32 %v279_v14, %v146_v24 }
  0xaa   :  { %170 = vst [vmem:[%s384_s3 + $0x8] sm:$0xff] %v142_v25 }
  0xab   :  { %172 = vst [vmem:[%s384_s3 + $0x18] sm:$0xff] %v147_v26 }
  0xac   :  { %v151_v27 = vpop.f32.mrf.mxu2  ;;  %v161_v28 = vpop.f32.mrf.mxu3 }
  0xad   :  { %v152_v29 = vadd.f32 %v279_v14, %v151_v27  ;;  %v162_v30 = vadd.f32 %v279_v14, %v161_v28 }
  0xaf   :  { %174 = vst [vmem:[%s384_s3 + $0x28] sm:$0xff] %v152_v29 }
  0xb0   :  { %178 = vst [vmem:[%s384_s3 + $0x48] sm:$0xff] %v162_v30 }
  0xb4   :  { %v154_v31 = vpop.f32.mrf.mxu2  ;;  %v164_v32 = vpop.f32.mrf.mxu3 }
  0xb5   :  { %v155_v33 = vadd.f32 %v279_v14, %v154_v31  ;;  %v165_v34 = vadd.f32 %v279_v14, %v164_v32 }
  0xb7   :  { %175 = vst [vmem:[%s384_s3 + $0x30] sm:$0xff] %v155_v33 }
  0xb8   :  { %179 = vst [vmem:[%s384_s3 + $0x50] sm:$0xff] %v165_v34 }
  0xbc   :  { %v156_v35 = vpop.f32.mrf.mxu2  ;;  %v166_v36 = vpop.f32.mrf.mxu3 }
  0xbd   :  { %v157_v37 = vadd.f32 %v279_v14, %v156_v35  ;;  %v167_v38 = vadd.f32 %v279_v14, %v166_v36 }
  0xbf   :  { %176 = vst [vmem:[%s384_s3 + $0x38] sm:$0xff] %v157_v37 }
  0xc0   :  { %180 = vst [vmem:[%s384_s3 + $0x58] sm:$0xff] %v167_v38 }

// kernel: nldnn_forward.39
= control target key start
LH: loop header
LB: loop body
LE: loop exit
PB: predicated region body
PF: predicated region fallthrough
CT: control target
= control target key end

     0   :  { %s674_s1 = inlined_call_operand.vmem [shape: bf16[256,128], index: 1, kind: input, shape index: {}]   ;;  %s675_s2 = inlined_call_operand.vmem [shape: f32[1,128], index: 2, kind: input, shape index: {}]   ;;  %s676_s0 = inlined_call_operand.vmem [shape: bf16[96,256], index: 0, kind: input, shape index: {}]   ;;  %s677_s3 = inlined_call_operand.vmem [shape: f32[96,128], index: 3, kind: output, shape index: {}]  }
   0x1   :  { %v455_v0 = vld [vmem:[%s674_s1 + $0x38] sm:$0xff]  ;;  %v454_v2 = vld [vmem:[%s674_s1 + $0x30] sm:$0xff]  ;;  %v453_v4 = vld [vmem:[%s674_s1 + $0x28] sm:$0xff] }
   0x2   :  { %v463_v1 = vld [vmem:[%s674_s1 + $0x78] sm:$0xff]  ;;  %218 = vmatpush.bf16.msra.mxu0 %v455_v0  ;;  %464 = vmatpush.bf16.msra.mxu2 %v455_v0  ;;  %v462_v3 = vld [vmem:[%s674_s1 + $0x70] sm:$0xff]  ;;  %v461_v5 = vld [vmem:[%s674_s1 + $0x68] sm:$0xff] }
   0x3   :  { %257 = vmatpush.bf16.msra.mxu1 %v463_v1  ;;  %472 = vmatpush.bf16.msra.mxu3 %v463_v1  ;;  %v452_v6 = vld [vmem:[%s674_s1 + $0x20] sm:$0xff]  ;;  %v451_v8 = vld [vmem:[%s674_s1 + $0x18] sm:$0xff]  ;;  %v450_v10 = vld [vmem:[%s674_s1 + $0x10] sm:$0xff] }
   0x4   :  { %v460_v7 = vld [vmem:[%s674_s1 + $0x60] sm:$0xff]  ;;  %v459_v9 = vld [vmem:[%s674_s1 + $0x58] sm:$0xff]  ;;  %v458_v11 = vld [vmem:[%s674_s1 + $0x50] sm:$0xff] }
   0x5   :  { %v449_v12 = vld [vmem:[%s674_s1 + $0x8] sm:$0xff]  ;;  %v448_v14 = vld [vmem:[%s674_s1] sm:$0xff]  ;;  %v350_v18 = vld [vmem:[%s676_s0 + $0x30] sm:$0xf] }
   0x6   :  { %219 = vmatpush.bf16.msra.mxu0 %v454_v2  ;;  %465 = vmatpush.bf16.msra.mxu2 %v454_v2  ;;  %v457_v13 = vld [vmem:[%s674_s1 + $0x48] sm:$0xff]  ;;  %v456_v15 = vld [vmem:[%s674_s1 + $0x40] sm:$0xff]  ;;  %v443_v19 = vld [vmem:[%s676_s0 + $0x34] sm:$0xf0] }
   0x7   :  { %258 = vmatpush.bf16.msra.mxu1 %v462_v3  ;;  %473 = vmatpush.bf16.msra.mxu3 %v462_v3  ;;  %v326_v16 = vld [vmem:[%s676_s0] sm:$0xf]  ;;  %v437_v17 = vld [vmem:[%s676_s0 + $0x4] sm:$0xf0]  ;;  %v436_v20 = vld [vmem:[%s676_s0 + $0x4] sm:$0xf]  ;;  %v351_v25 = vor.u32 %v443_v19, %v350_v18 }
   0x8   :  { %v328_v21 = vld [vmem:[%s676_s0 + $0x8] sm:$0xf0]  ;;  %v442_v22 = vld [vmem:[%s676_s0 + $0x34] sm:$0xf]  ;;  %v352_v23 = vld [vmem:[%s676_s0 + $0x38] sm:$0xf0]  ;;  %v327_v24 = vor.u32 %v437_v17, %v326_v16 }
   0x9   :  { %v331_v26 = vor.u32 %v436_v20, %v328_v21  ;;  %v355_v27 = vor.u32 %v442_v22, %v352_v23  ;;  %v334_v28 = vld [vmem:[%s676_s0 + $0x10] sm:$0xf]  ;;  %v439_v29 = vld [vmem:[%s676_s0 + $0x14] sm:$0xf0]  ;;  %v358_v30 = vld [vmem:[%s676_s0 + $0x40] sm:$0xf] }
   0xa   :  { %220 = vmatpush.bf16.msra.mxu0 %v453_v4  ;;  %466 = vmatpush.bf16.msra.mxu2 %v453_v4  ;;  %v445_v31 = vld [vmem:[%s676_s0 + $0x44] sm:$0xf0]  ;;  %v438_v32 = vld [vmem:[%s676_s0 + $0x14] sm:$0xf]  ;;  %v336_v33 = vld [vmem:[%s676_s0 + $0x18] sm:$0xf0]  ;;  %v335_v36 = vor.u32 %v439_v29, %v334_v28 }
   0xb   :  { %259 = vmatpush.bf16.msra.mxu1 %v461_v5  ;;  %474 = vmatpush.bf16.msra.mxu3 %v461_v5  ;;  %v444_v34 = vld [vmem:[%s676_s0 + $0x44] sm:$0xf]  ;;  %v360_v35 = vld [vmem:[%s676_s0 + $0x48] sm:$0xf0]  ;;  %v359_v37 = vor.u32 %v445_v31, %v358_v30  ;;  %v339_v38 = vor.u32 %v438_v32, %v336_v33  ;;  %v342_v40 = vld [vmem:[%s676_s0 + $0x20] sm:$0xf] }
   0xc   :  { %v363_v39 = vor.u32 %v444_v34, %v360_v35  ;;  %v441_v41 = vld [vmem:[%s676_s0 + $0x24] sm:$0xf0]  ;;  %v366_v42 = vld [vmem:[%s676_s0 + $0x50] sm:$0xf]  ;;  %v447_v43 = vld [vmem:[%s676_s0 + $0x54] sm:$0xf0] }
   0xd   :  { %v440_v44 = vld [vmem:[%s676_s0 + $0x24] sm:$0xf]  ;;  %v344_v45 = vld [vmem:[%s676_s0 + $0x28] sm:$0xf0]  ;;  %v446_v46 = vld [vmem:[%s676_s0 + $0x54] sm:$0xf]  ;;  %v343_v48 = vor.u32 %v441_v41, %v342_v40  ;;  %v367_v49 = vor.u32 %v447_v43, %v366_v42 }
   0xe   :  { %221 = vmatpush.bf16.msra.mxu0 %v452_v6  ;;  %467 = vmatpush.bf16.msra.mxu2 %v452_v6  ;;  %v368_v47 = vld [vmem:[%s676_s0 + $0x58] sm:$0xf0]  ;;  %v347_v50 = vor.u32 %v440_v44, %v344_v45  ;;  %v624_v52 = vld [vmem:[%s675_s2] ss:$0 sm:$0xff] }
   0xf   :  { %260 = vmatpush.bf16.msra.mxu1 %v460_v7  ;;  %475 = vmatpush.bf16.msra.mxu3 %v460_v7  ;;  %v371_v51 = vor.u32 %v446_v46, %v368_v47 }
  0x12   :  { %222 = vmatpush.bf16.msra.mxu0 %v451_v8  ;;  %468 = vmatpush.bf16.msra.mxu2 %v451_v8 }
  0x13   :  { %261 = vmatpush.bf16.msra.mxu1 %v459_v9  ;;  %476 = vmatpush.bf16.msra.mxu3 %v459_v9 }
  0x16   :  { %223 = vmatpush.bf16.msra.mxu0 %v450_v10  ;;  %469 = vmatpush.bf16.msra.mxu2 %v450_v10 }
  0x17   :  { %262 = vmatpush.bf16.msra.mxu1 %v458_v11  ;;  %477 = vmatpush.bf16.msra.mxu3 %v458_v11 }
  0x1a   :  { %224 = vmatpush.bf16.msra.mxu0 %v449_v12  ;;  %470 = vmatpush.bf16.msra.mxu2 %v449_v12 }
  0x1b   :  { %263 = vmatpush.bf16.msra.mxu1 %v457_v13  ;;  %478 = vmatpush.bf16.msra.mxu3 %v457_v13 }
  0x1e   :  { %225 = vmatpush.bf16.msra.mxu0 %v448_v14  ;;  %471 = vmatpush.bf16.msra.mxu2 %v448_v14 }
  0x1f   :  { %264 = vmatpush.bf16.msra.mxu1 %v456_v15  ;;  %479 = vmatpush.bf16.msra.mxu3 %v456_v15 }
  0x21   :  { %226 = vmatmul.bf16.vlgmr.msra.gmra.mxu0 %v327_v24  ;;  %241 = vmatmul.bf16.vlgmr.msra.gmra.mxu2 %v351_v25 }
  0x22   :  { %265 = vmatmul.bf16.vlgmr.msra.gmra.mxu1 %v331_v26  ;;  %280 = vmatmul.bf16.vlgmr.msra.gmra.mxu3 %v355_v27 }
  0x31   :  { %231 = vmatmul.bf16.gmra.mxu0 %v335_v36  ;;  %246 = vmatmul.bf16.gmra.mxu2 %v359_v37 }
  0x32   :  { %270 = vmatmul.bf16.gmra.mxu1 %v339_v38  ;;  %285 = vmatmul.bf16.gmra.mxu3 %v363_v39 }
  0x41   :  { %236 = vmatmul.bf16.gmra.mxu0 %v343_v48  ;;  %251 = vmatmul.bf16.gmra.mxu2 %v367_v49 }
  0x42   :  { %275 = vmatmul.bf16.gmra.mxu1 %v347_v50  ;;  %290 = vmatmul.bf16.gmra.mxu3 %v371_v51 }
  0x9e   :  { %v227_v53 = vpop.f32.mrf.mxu0 }
  0x9f   :  { %v228_v54 = vadd.f32 %v624_v52, %v227_v53  ;;  %v266_v55 = vpop.f32.mrf.mxu1 }
  0xa1   :  { %v267_v56 = vadd.f32 %v266_v55, %v228_v54 }
  0xa3   :  { %v296_v57 = vmax.f32 %v267_v56, 0.0 }
  0xa4   :  { %v242_v58 = vpop.f32.mrf.mxu2 }
  0xa5   :  { %308 = vst [vmem:[%s677_s3] sm:$0xff] %v296_v57  ;;  %v243_v59 = vadd.f32 %v624_v52, %v242_v58  ;;  %v281_v60 = vpop.f32.mrf.mxu3 }
  0xa6   :  { %v229_v61 = vpop.f32.mrf.mxu0 }
  0xa7   :  { %v282_v62 = vadd.f32 %v281_v60, %v243_v59  ;;  %v230_v63 = vadd.f32 %v624_v52, %v229_v61  ;;  %v268_v0 = vpop.f32.mrf.mxu1 }
  0xa9   :  { %v302_v1 = vmax.f32 %v282_v62, 0.0  ;;  %v269_v2 = vadd.f32 %v268_v0, %v230_v63 }
  0xab   :  { %314 = vst [vmem:[%s677_s3 + $0x30] sm:$0xff] %v302_v1  ;;  %v297_v3 = vmax.f32 %v269_v2, 0.0 }
  0xac   :  { %v244_v4 = vpop.f32.mrf.mxu2 }
  0xad   :  { %309 = vst [vmem:[%s677_s3 + $0x8] sm:$0xff] %v297_v3  ;;  %v245_v5 = vadd.f32 %v624_v52, %v244_v4  ;;  %v283_v6 = vpop.f32.mrf.mxu3 }
  0xae   :  { %v232_v7 = vpop.f32.mrf.mxu0 }
  0xaf   :  { %v284_v8 = vadd.f32 %v283_v6, %v245_v5  ;;  %v233_v9 = vadd.f32 %v624_v52, %v232_v7  ;;  %v271_v10 = vpop.f32.mrf.mxu1 }
  0xb1   :  { %v303_v11 = vmax.f32 %v284_v8, 0.0  ;;  %v272_v12 = vadd.f32 %v271_v10, %v233_v9 }
  0xb3   :  { %315 = vst [vmem:[%s677_s3 + $0x38] sm:$0xff] %v303_v11  ;;  %v298_v13 = vmax.f32 %v272_v12, 0.0 }
  0xb4   :  { %v247_v14 = vpop.f32.mrf.mxu2 }
  0xb5   :  { %310 = vst [vmem:[%s677_s3 + $0x10] sm:$0xff] %v298_v13  ;;  %v248_v15 = vadd.f32 %v624_v52, %v247_v14  ;;  %v286_v16 = vpop.f32.mrf.mxu3 }
  0xb6   :  { %v234_v17 = vpop.f32.mrf.mxu0 }
  0xb7   :  { %v287_v18 = vadd.f32 %v286_v16, %v248_v15  ;;  %v235_v19 = vadd.f32 %v624_v52, %v234_v17  ;;  %v273_v20 = vpop.f32.mrf.mxu1 }
  0xb9   :  { %v304_v21 = vmax.f32 %v287_v18, 0.0  ;;  %v274_v22 = vadd.f32 %v273_v20, %v235_v19 }
  0xbb   :  { %316 = vst [vmem:[%s677_s3 + $0x40] sm:$0xff] %v304_v21  ;;  %v299_v23 = vmax.f32 %v274_v22, 0.0 }
  0xbc   :  { %v249_v24 = vpop.f32.mrf.mxu2 }
  0xbd   :  { %311 = vst [vmem:[%s677_s3 + $0x18] sm:$0xff] %v299_v23  ;;  %v250_v25 = vadd.f32 %v624_v52, %v249_v24  ;;  %v288_v26 = vpop.f32.mrf.mxu3 }
  0xbe   :  { %v237_v27 = vpop.f32.mrf.mxu0 }
  0xbf   :  { %v289_v28 = vadd.f32 %v288_v26, %v250_v25  ;;  %v238_v29 = vadd.f32 %v624_v52, %v237_v27  ;;  %v276_v30 = vpop.f32.mrf.mxu1 }
  0xc1   :  { %v305_v31 = vmax.f32 %v289_v28, 0.0  ;;  %v277_v32 = vadd.f32 %v276_v30, %v238_v29 }
  0xc3   :  { %317 = vst [vmem:[%s677_s3 + $0x48] sm:$0xff] %v305_v31  ;;  %v300_v33 = vmax.f32 %v277_v32, 0.0 }
  0xc4   :  { %v252_v34 = vpop.f32.mrf.mxu2 }
  0xc5   :  { %312 = vst [vmem:[%s677_s3 + $0x20] sm:$0xff] %v300_v33  ;;  %v253_v35 = vadd.f32 %v624_v52, %v252_v34  ;;  %v291_v36 = vpop.f32.mrf.mxu3 }
  0xc6   :  { %v239_v37 = vpop.f32.mrf.mxu0 }
  0xc7   :  { %v292_v38 = vadd.f32 %v291_v36, %v253_v35  ;;  %v240_v39 = vadd.f32 %v624_v52, %v239_v37  ;;  %v278_v40 = vpop.f32.mrf.mxu1 }
  0xc9   :  { %v306_v41 = vmax.f32 %v292_v38, 0.0  ;;  %v279_v42 = vadd.f32 %v278_v40, %v240_v39 }
  0xcb   :  { %318 = vst [vmem:[%s677_s3 + $0x50] sm:$0xff] %v306_v41  ;;  %v301_v43 = vmax.f32 %v279_v42, 0.0 }
  0xcc   :  { %v254_v44 = vpop.f32.mrf.mxu2 }
  0xcd   :  { %313 = vst [vmem:[%s677_s3 + $0x28] sm:$0xff] %v301_v43  ;;  %v255_v45 = vadd.f32 %v624_v52, %v254_v44  ;;  %v293_v46 = vpop.f32.mrf.mxu3 }
  0xcf   :  { %v294_v47 = vadd.f32 %v293_v46, %v255_v45 }
  0xd1   :  { %v307_v48 = vmax.f32 %v294_v47, 0.0 }
  0xd3   :  { %319 = vst [vmem:[%s677_s3 + $0x58] sm:$0xff] %v307_v48 }

// kernel: nldnn_forward.40
= control target key start
LH: loop header
LB: loop body
LE: loop exit
PB: predicated region body
PF: predicated region fallthrough
CT: control target
= control target key end

     0   :  { %s648_s1 = inlined_call_operand.vmem [shape: bf16[256,128], index: 1, kind: input, shape index: {}]   ;;  %s649_s2 = inlined_call_operand.vmem [shape: f32[1,128], index: 2, kind: input, shape index: {}]   ;;  %s650_s0 = inlined_call_operand.vmem [shape: bf16[96,256], index: 0, kind: input, shape index: {}]   ;;  %s651_s3 = inlined_call_operand.vmem [shape: f32[96,128], index: 3, kind: output, shape index: {}]  }
   0x1   :  { %v443_v0 = vld [vmem:[%s648_s1 + $0x38] sm:$0xff]  ;;  %v442_v2 = vld [vmem:[%s648_s1 + $0x30] sm:$0xff]  ;;  %v441_v4 = vld [vmem:[%s648_s1 + $0x28] sm:$0xff] }
   0x2   :  { %v451_v1 = vld [vmem:[%s648_s1 + $0x78] sm:$0xff]  ;;  %218 = vmatpush.bf16.msra.mxu0 %v443_v0  ;;  %452 = vmatpush.bf16.msra.mxu2 %v443_v0  ;;  %v450_v3 = vld [vmem:[%s648_s1 + $0x70] sm:$0xff]  ;;  %v449_v5 = vld [vmem:[%s648_s1 + $0x68] sm:$0xff] }
   0x3   :  { %257 = vmatpush.bf16.msra.mxu1 %v451_v1  ;;  %460 = vmatpush.bf16.msra.mxu3 %v451_v1  ;;  %v440_v6 = vld [vmem:[%s648_s1 + $0x20] sm:$0xff]  ;;  %v439_v8 = vld [vmem:[%s648_s1 + $0x18] sm:$0xff]  ;;  %v438_v10 = vld [vmem:[%s648_s1 + $0x10] sm:$0xff] }
   0x4   :  { %v448_v7 = vld [vmem:[%s648_s1 + $0x60] sm:$0xff]  ;;  %v447_v9 = vld [vmem:[%s648_s1 + $0x58] sm:$0xff]  ;;  %v446_v11 = vld [vmem:[%s648_s1 + $0x50] sm:$0xff] }
   0x5   :  { %v437_v12 = vld [vmem:[%s648_s1 + $0x8] sm:$0xff]  ;;  %v436_v14 = vld [vmem:[%s648_s1] sm:$0xff]  ;;  %v338_v18 = vld [vmem:[%s650_s0 + $0x30] sm:$0xf] }
   0x6   :  { %219 = vmatpush.bf16.msra.mxu0 %v442_v2  ;;  %453 = vmatpush.bf16.msra.mxu2 %v442_v2  ;;  %v445_v13 = vld [vmem:[%s648_s1 + $0x48] sm:$0xff]  ;;  %v444_v15 = vld [vmem:[%s648_s1 + $0x40] sm:$0xff]  ;;  %v431_v19 = vld [vmem:[%s650_s0 + $0x34] sm:$0xf0] }
   0x7   :  { %258 = vmatpush.bf16.msra.mxu1 %v450_v3  ;;  %461 = vmatpush.bf16.msra.mxu3 %v450_v3  ;;  %v314_v16 = vld [vmem:[%s650_s0] sm:$0xf]  ;;  %v425_v17 = vld [vmem:[%s650_s0 + $0x4] sm:$0xf0]  ;;  %v424_v20 = vld [vmem:[%s650_s0 + $0x4] sm:$0xf]  ;;  %v339_v25 = vor.u32 %v431_v19, %v338_v18 }
   0x8   :  { %v316_v21 = vld [vmem:[%s650_s0 + $0x8] sm:$0xf0]  ;;  %v430_v22 = vld [vmem:[%s650_s0 + $0x34] sm:$0xf]  ;;  %v340_v23 = vld [vmem:[%s650_s0 + $0x38] sm:$0xf0]  ;;  %v315_v24 = vor.u32 %v425_v17, %v314_v16 }
   0x9   :  { %v319_v26 = vor.u32 %v424_v20, %v316_v21  ;;  %v343_v27 = vor.u32 %v430_v22, %v340_v23  ;;  %v322_v28 = vld [vmem:[%s650_s0 + $0x10] sm:$0xf]  ;;  %v427_v29 = vld [vmem:[%s650_s0 + $0x14] sm:$0xf0]  ;;  %v346_v30 = vld [vmem:[%s650_s0 + $0x40] sm:$0xf] }
   0xa   :  { %220 = vmatpush.bf16.msra.mxu0 %v441_v4  ;;  %454 = vmatpush.bf16.msra.mxu2 %v441_v4  ;;  %v433_v31 = vld [vmem:[%s650_s0 + $0x44] sm:$0xf0]  ;;  %v426_v32 = vld [vmem:[%s650_s0 + $0x14] sm:$0xf]  ;;  %v324_v33 = vld [vmem:[%s650_s0 + $0x18] sm:$0xf0]  ;;  %v323_v36 = vor.u32 %v427_v29, %v322_v28 }
   0xb   :  { %259 = vmatpush.bf16.msra.mxu1 %v449_v5  ;;  %462 = vmatpush.bf16.msra.mxu3 %v449_v5  ;;  %v432_v34 = vld [vmem:[%s650_s0 + $0x44] sm:$0xf]  ;;  %v348_v35 = vld [vmem:[%s650_s0 + $0x48] sm:$0xf0]  ;;  %v347_v37 = vor.u32 %v433_v31, %v346_v30  ;;  %v327_v38 = vor.u32 %v426_v32, %v324_v33  ;;  %v330_v40 = vld [vmem:[%s650_s0 + $0x20] sm:$0xf] }
   0xc   :  { %v351_v39 = vor.u32 %v432_v34, %v348_v35  ;;  %v429_v41 = vld [vmem:[%s650_s0 + $0x24] sm:$0xf0]  ;;  %v354_v42 = vld [vmem:[%s650_s0 + $0x50] sm:$0xf]  ;;  %v435_v43 = vld [vmem:[%s650_s0 + $0x54] sm:$0xf0] }
   0xd   :  { %v428_v44 = vld [vmem:[%s650_s0 + $0x24] sm:$0xf]  ;;  %v332_v45 = vld [vmem:[%s650_s0 + $0x28] sm:$0xf0]  ;;  %v434_v46 = vld [vmem:[%s650_s0 + $0x54] sm:$0xf]  ;;  %v331_v48 = vor.u32 %v429_v41, %v330_v40  ;;  %v355_v49 = vor.u32 %v435_v43, %v354_v42 }
   0xe   :  { %221 = vmatpush.bf16.msra.mxu0 %v440_v6  ;;  %455 = vmatpush.bf16.msra.mxu2 %v440_v6  ;;  %v356_v47 = vld [vmem:[%s650_s0 + $0x58] sm:$0xf0]  ;;  %v335_v50 = vor.u32 %v428_v44, %v332_v45  ;;  %v468_v52 = vld [vmem:[%s649_s2] ss:$0 sm:$0xff] }
   0xf   :  { %260 = vmatpush.bf16.msra.mxu1 %v448_v7  ;;  %463 = vmatpush.bf16.msra.mxu3 %v448_v7  ;;  %v359_v51 = vor.u32 %v434_v46, %v356_v47 }
  0x12   :  { %222 = vmatpush.bf16.msra.mxu0 %v439_v8  ;;  %456 = vmatpush.bf16.msra.mxu2 %v439_v8 }
  0x13   :  { %261 = vmatpush.bf16.msra.mxu1 %v447_v9  ;;  %464 = vmatpush.bf16.msra.mxu3 %v447_v9 }
  0x16   :  { %223 = vmatpush.bf16.msra.mxu0 %v438_v10  ;;  %457 = vmatpush.bf16.msra.mxu2 %v438_v10 }
  0x17   :  { %262 = vmatpush.bf16.msra.mxu1 %v446_v11  ;;  %465 = vmatpush.bf16.msra.mxu3 %v446_v11 }
  0x1a   :  { %224 = vmatpush.bf16.msra.mxu0 %v437_v12  ;;  %458 = vmatpush.bf16.msra.mxu2 %v437_v12 }
  0x1b   :  { %263 = vmatpush.bf16.msra.mxu1 %v445_v13  ;;  %466 = vmatpush.bf16.msra.mxu3 %v445_v13 }
  0x1e   :  { %225 = vmatpush.bf16.msra.mxu0 %v436_v14  ;;  %459 = vmatpush.bf16.msra.mxu2 %v436_v14 }
  0x1f   :  { %264 = vmatpush.bf16.msra.mxu1 %v444_v15  ;;  %467 = vmatpush.bf16.msra.mxu3 %v444_v15 }
  0x21   :  { %226 = vmatmul.bf16.vlgmr.msra.gmra.mxu0 %v315_v24  ;;  %241 = vmatmul.bf16.vlgmr.msra.gmra.mxu2 %v339_v25 }
  0x22   :  { %265 = vmatmul.bf16.vlgmr.msra.gmra.mxu1 %v319_v26  ;;  %280 = vmatmul.bf16.vlgmr.msra.gmra.mxu3 %v343_v27 }
  0x31   :  { %231 = vmatmul.bf16.gmra.mxu0 %v323_v36  ;;  %246 = vmatmul.bf16.gmra.mxu2 %v347_v37 }
  0x32   :  { %270 = vmatmul.bf16.gmra.mxu1 %v327_v38  ;;  %285 = vmatmul.bf16.gmra.mxu3 %v351_v39 }
  0x41   :  { %236 = vmatmul.bf16.gmra.mxu0 %v331_v48  ;;  %251 = vmatmul.bf16.gmra.mxu2 %v355_v49 }
  0x42   :  { %275 = vmatmul.bf16.gmra.mxu1 %v335_v50  ;;  %290 = vmatmul.bf16.gmra.mxu3 %v359_v51 }
  0x9e   :  { %v227_v53 = vpop.f32.mrf.mxu0 }
  0x9f   :  { %v228_v54 = vadd.f32 %v468_v52, %v227_v53  ;;  %v266_v55 = vpop.f32.mrf.mxu1 }
  0xa1   :  { %v267_v56 = vadd.f32 %v266_v55, %v228_v54 }
  0xa3   :  { %296 = vst [vmem:[%s651_s3] sm:$0xff] %v267_v56 }
  0xa4   :  { %v242_v57 = vpop.f32.mrf.mxu2 }
  0xa5   :  { %v243_v58 = vadd.f32 %v468_v52, %v242_v57  ;;  %v281_v59 = vpop.f32.mrf.mxu3 }
  0xa6   :  { %v229_v60 = vpop.f32.mrf.mxu0 }
  0xa7   :  { %v282_v61 = vadd.f32 %v281_v59, %v243_v58  ;;  %v230_v62 = vadd.f32 %v468_v52, %v229_v60  ;;  %v268_v63 = vpop.f32.mrf.mxu1 }
  0xa9   :  { %302 = vst [vmem:[%s651_s3 + $0x30] sm:$0xff] %v282_v61  ;;  %v269_v0 = vadd.f32 %v268_v63, %v230_v62 }
  0xab   :  { %297 = vst [vmem:[%s651_s3 + $0x8] sm:$0xff] %v269_v0 }
  0xac   :  { %v244_v1 = vpop.f32.mrf.mxu2 }
  0xad   :  { %v245_v2 = vadd.f32 %v468_v52, %v244_v1  ;;  %v283_v3 = vpop.f32.mrf.mxu3 }
  0xae   :  { %v232_v4 = vpop.f32.mrf.mxu0 }
  0xaf   :  { %v284_v5 = vadd.f32 %v283_v3, %v245_v2  ;;  %v233_v6 = vadd.f32 %v468_v52, %v232_v4  ;;  %v271_v7 = vpop.f32.mrf.mxu1 }
  0xb1   :  { %303 = vst [vmem:[%s651_s3 + $0x38] sm:$0xff] %v284_v5  ;;  %v272_v8 = vadd.f32 %v271_v7, %v233_v6 }
  0xb3   :  { %298 = vst [vmem:[%s651_s3 + $0x10] sm:$0xff] %v272_v8 }
  0xb4   :  { %v247_v9 = vpop.f32.mrf.mxu2 }
  0xb5   :  { %v248_v10 = vadd.f32 %v468_v52, %v247_v9  ;;  %v286_v11 = vpop.f32.mrf.mxu3 }
  0xb6   :  { %v234_v12 = vpop.f32.mrf.mxu0 }
  0xb7   :  { %v287_v13 = vadd.f32 %v286_v11, %v248_v10  ;;  %v235_v14 = vadd.f32 %v468_v52, %v234_v12  ;;  %v273_v15 = vpop.f32.mrf.mxu1 }
  0xb9   :  { %304 = vst [vmem:[%s651_s3 + $0x40] sm:$0xff] %v287_v13  ;;  %v274_v16 = vadd.f32 %v273_v15, %v235_v14 }
  0xbb   :  { %299 = vst [vmem:[%s651_s3 + $0x18] sm:$0xff] %v274_v16 }
  0xbc   :  { %v249_v17 = vpop.f32.mrf.mxu2 }
  0xbd   :  { %v250_v18 = vadd.f32 %v468_v52, %v249_v17  ;;  %v288_v19 = vpop.f32.mrf.mxu3 }
  0xbe   :  { %v237_v20 = vpop.f32.mrf.mxu0 }
  0xbf   :  { %v289_v21 = vadd.f32 %v288_v19, %v250_v18  ;;  %v238_v22 = vadd.f32 %v468_v52, %v237_v20  ;;  %v276_v23 = vpop.f32.mrf.mxu1 }
  0xc1   :  { %305 = vst [vmem:[%s651_s3 + $0x48] sm:$0xff] %v289_v21  ;;  %v277_v24 = vadd.f32 %v276_v23, %v238_v22 }
  0xc3   :  { %300 = vst [vmem:[%s651_s3 + $0x20] sm:$0xff] %v277_v24 }
  0xc4   :  { %v252_v25 = vpop.f32.mrf.mxu2 }
  0xc5   :  { %v253_v26 = vadd.f32 %v468_v52, %v252_v25  ;;  %v291_v27 = vpop.f32.mrf.mxu3 }
  0xc6   :  { %v239_v28 = vpop.f32.mrf.mxu0 }
  0xc7   :  { %v292_v29 = vadd.f32 %v291_v27, %v253_v26  ;;  %v240_v30 = vadd.f32 %v468_v52, %v239_v28  ;;  %v278_v31 = vpop.f32.mrf.mxu1 }
  0xc9   :  { %306 = vst [vmem:[%s651_s3 + $0x50] sm:$0xff] %v292_v29  ;;  %v279_v32 = vadd.f32 %v278_v31, %v240_v30 }
  0xcb   :  { %301 = vst [vmem:[%s651_s3 + $0x28] sm:$0xff] %v279_v32 }
  0xcc   :  { %v254_v33 = vpop.f32.mrf.mxu2 }
  0xcd   :  { %v255_v34 = vadd.f32 %v468_v52, %v254_v33  ;;  %v293_v35 = vpop.f32.mrf.mxu3 }
  0xcf   :  { %v294_v36 = vadd.f32 %v293_v35, %v255_v34 }
  0xd1   :  { %307 = vst [vmem:[%s651_s3 + $0x58] sm:$0xff] %v294_v36 }

// kernel: nldnn_forward.22
= control target key start
LH: loop header
LB: loop body
LE: loop exit
PB: predicated region body
PF: predicated region fallthrough
CT: control target
= control target key end

     0   :  { %s1065_s1 = inlined_call_operand.vmem [shape: bf16[384,128], index: 1, kind: input, shape index: {}]   ;;  %s1066_s0 = inlined_call_operand.vmem [shape: bf16[88,384], index: 0, kind: input, shape index: {}]   ;;  %s1067_s2 = inlined_call_operand.vmem [shape: f32[1,128], index: 2, kind: input, shape index: {}]   ;;  %s1068_s3 = inlined_call_operand.vmem [shape: f32[88,128], index: 3, kind: output, shape index: {}]  }
   0x1   :  { %v718_v0 = vld [vmem:[%s1065_s1 + $0x38] sm:$0xff]  ;;  %v717_v3 = vld [vmem:[%s1065_s1 + $0x30] sm:$0xff]  ;;  %v716_v6 = vld [vmem:[%s1065_s1 + $0x28] sm:$0xff] }
   0x2   :  { %v808_v1 = vld [vmem:[%s1065_s1 + $0x78] sm:$0xff]  ;;  %323 = vmatpush.bf16.msra.mxu0 %v718_v0  ;;  %735 = vmatpush.bf16.msra.mxu3 %v718_v0  ;;  %v823_v4 = vld [vmem:[%s1065_s1 + $0x70] sm:$0xff]  ;;  %v724_v7 = vld [vmem:[%s1065_s1 + $0x68] sm:$0xff] }
   0x3   :  { %v813_v2 = vld [vmem:[%s1065_s1 + $0xb8] sm:$0xff]  ;;  %743 = vmatpush.bf16.msra.mxu1 %v808_v1  ;;  %v828_v5 = vld [vmem:[%s1065_s1 + $0xb0] sm:$0xff]  ;;  %v841_v8 = vld [vmem:[%s1065_s1 + $0xa8] sm:$0xff] }
   0x4   :  { %751 = vmatpush.bf16.msra.mxu2 %v813_v2  ;;  %v715_v9 = vld [vmem:[%s1065_s1 + $0x20] sm:$0xff]  ;;  %v714_v12 = vld [vmem:[%s1065_s1 + $0x18] sm:$0xff]  ;;  %v713_v15 = vld [vmem:[%s1065_s1 + $0x10] sm:$0xff] }
   0x5   :  { %v723_v10 = vld [vmem:[%s1065_s1 + $0x60] sm:$0xff]  ;;  %v722_v13 = vld [vmem:[%s1065_s1 + $0x58] sm:$0xff]  ;;  %v721_v16 = vld [vmem:[%s1065_s1 + $0x50] sm:$0xff] }
   0x6   :  { %324 = vmatpush.bf16.msra.mxu0 %v717_v3  ;;  %736 = vmatpush.bf16.msra.mxu3 %v717_v3  ;;  %v853_v11 = vld [vmem:[%s1065_s1 + $0xa0] sm:$0xff]  ;;  %v865_v14 = vld [vmem:[%s1065_s1 + $0x98] sm:$0xff]  ;;  %v877_v17 = vld [vmem:[%s1065_s1 + $0x90] sm:$0xff] }
   0x7   :  { %744 = vmatpush.bf16.msra.mxu1 %v823_v4  ;;  %v712_v18 = vld [vmem:[%s1065_s1 + $0x8] sm:$0xff]  ;;  %v711_v21 = vld [vmem:[%s1065_s1] sm:$0xff]  ;;  %v543_v24 = vld [vmem:[%s1066_s0 + $0x18] sm:$0xf] }
   0x8   :  { %752 = vmatpush.bf16.msra.mxu2 %v828_v5  ;;  %v720_v19 = vld [vmem:[%s1065_s1 + $0x48] sm:$0xff]  ;;  %v719_v22 = vld [vmem:[%s1065_s1 + $0x40] sm:$0xff]  ;;  %v699_v26 = vld [vmem:[%s1066_s0 + $0x1c] sm:$0xf] }
   0x9   :  { %v889_v20 = vld [vmem:[%s1065_s1 + $0x88] sm:$0xff]  ;;  %v900_v23 = vld [vmem:[%s1065_s1 + $0x80] sm:$0xff]  ;;  %v555_v36 = vld [vmem:[%s1066_s0 + $0x30] sm:$0xf] }
   0xa   :  { %325 = vmatpush.bf16.msra.mxu0 %v716_v6  ;;  %737 = vmatpush.bf16.msra.mxu3 %v716_v6  ;;  %v700_v25 = vld [vmem:[%s1066_s0 + $0x20] sm:$0xf0]  ;;  %v531_v27 = vld [vmem:[%s1066_s0] sm:$0xf]  ;;  %v697_v28 = vld [vmem:[%s1066_s0 + $0x8] sm:$0xf0] }
   0xb   :  { %745 = vmatpush.bf16.msra.mxu1 %v724_v7  ;;  %v545_v29 = vld [vmem:[%s1066_s0 + $0x24] sm:$0xf0]  ;;  %v551_v30 = vld [vmem:[%s1066_s0 + $0x20] sm:$0xf]  ;;  %v701_v31 = vld [vmem:[%s1066_s0 + $0x28] sm:$0xf0]  ;;  %v544_v32 = vor.u32 %v700_v25, %v543_v24  ;;  %v532_v33 = vor.u32 %v697_v28, %v531_v27 }
   0xc   :  { %753 = vmatpush.bf16.msra.mxu2 %v841_v8  ;;  %v548_v34 = vor.u32 %v699_v26, %v545_v29  ;;  %v552_v35 = vor.u32 %v701_v31, %v551_v30  ;;  %v703_v37 = vld [vmem:[%s1066_s0 + $0x38] sm:$0xf0]  ;;  %v702_v38 = vld [vmem:[%s1066_s0 + $0x34] sm:$0xf]  ;;  %v557_v39 = vld [vmem:[%s1066_s0 + $0x3c] sm:$0xf0] }
   0xd   :  { %v563_v40 = vld [vmem:[%s1066_s0 + $0x38] sm:$0xf]  ;;  %v704_v41 = vld [vmem:[%s1066_s0 + $0x40] sm:$0xf0]  ;;  %v556_v42 = vor.u32 %v703_v37, %v555_v36  ;;  %v560_v43 = vor.u32 %v702_v38, %v557_v39  ;;  %v533_v46 = vld [vmem:[%s1066_s0 + $0xc] sm:$0xf0] }
   0xe   :  { %326 = vmatpush.bf16.msra.mxu0 %v715_v9  ;;  %738 = vmatpush.bf16.msra.mxu3 %v715_v9  ;;  %v564_v44 = vor.u32 %v704_v41, %v563_v40  ;;  %v696_v45 = vld [vmem:[%s1066_s0 + $0x4] sm:$0xf]  ;;  %v567_v47 = vld [vmem:[%s1066_s0 + $0x48] sm:$0xf]  ;;  %v706_v48 = vld [vmem:[%s1066_s0 + $0x50] sm:$0xf0] }
   0xf   :  { %746 = vmatpush.bf16.msra.mxu1 %v723_v10  ;;  %v705_v49 = vld [vmem:[%s1066_s0 + $0x4c] sm:$0xf]  ;;  %v536_v50 = vor.u32 %v696_v45, %v533_v46  ;;  %v569_v51 = vld [vmem:[%s1066_s0 + $0x54] sm:$0xf0]  ;;  %v575_v52 = vld [vmem:[%s1066_s0 + $0x50] sm:$0xf]  ;;  %v568_v54 = vor.u32 %v706_v48, %v567_v47 }
  0x10   :  { %754 = vmatpush.bf16.msra.mxu2 %v853_v11  ;;  %v707_v53 = vld [vmem:[%s1066_s0 + $0x58] sm:$0xf0]  ;;  %v572_v55 = vor.u32 %v705_v49, %v569_v51  ;;  %v579_v57 = vld [vmem:[%s1066_s0 + $0x60] sm:$0xf]  ;;  %v709_v58 = vld [vmem:[%s1066_s0 + $0x68] sm:$0xf0] }
  0x11   :  { %v576_v56 = vor.u32 %v707_v53, %v575_v52  ;;  %v708_v59 = vld [vmem:[%s1066_s0 + $0x64] sm:$0xf]  ;;  %v581_v60 = vld [vmem:[%s1066_s0 + $0x6c] sm:$0xf0]  ;;  %v587_v61 = vld [vmem:[%s1066_s0 + $0x68] sm:$0xf]  ;;  %v580_v63 = vor.u32 %v709_v58, %v579_v57 }
  0x12   :  { %327 = vmatpush.bf16.msra.mxu0 %v714_v12  ;;  %739 = vmatpush.bf16.msra.mxu3 %v714_v12  ;;  %v710_v62 = vld [vmem:[%s1066_s0 + $0x70] sm:$0xf0]  ;;  %v584_v0 = vor.u32 %v708_v59, %v581_v60 }
  0x13   :  { %747 = vmatpush.bf16.msra.mxu1 %v722_v13  ;;  %v698_v3 = vld [vmem:[%s1066_s0 + $0x10] sm:$0xf0] }
  0x14   :  { %755 = vmatpush.bf16.msra.mxu2 %v865_v14 }
  0x16   :  { %328 = vmatpush.bf16.msra.mxu0 %v713_v15  ;;  %740 = vmatpush.bf16.msra.mxu3 %v713_v15 }
  0x17   :  { %748 = vmatpush.bf16.msra.mxu1 %v721_v16 }
  0x18   :  { %756 = vmatpush.bf16.msra.mxu2 %v877_v17 }
  0x1a   :  { %329 = vmatpush.bf16.msra.mxu0 %v712_v18  ;;  %741 = vmatpush.bf16.msra.mxu3 %v712_v18 }
  0x1b   :  { %749 = vmatpush.bf16.msra.mxu1 %v720_v19 }
  0x1c   :  { %757 = vmatpush.bf16.msra.mxu2 %v889_v20 }
  0x1e   :  { %330 = vmatpush.bf16.msra.mxu0 %v711_v21  ;;  %742 = vmatpush.bf16.msra.mxu3 %v711_v21 }
  0x1f   :  { %750 = vmatpush.bf16.msra.mxu1 %v719_v22 }
  0x20   :  { %758 = vmatpush.bf16.msra.mxu2 %v900_v23 }
  0x21   :  { %336 = vmatmul.bf16.vlgmr.msra.gmra.mxu3 %v544_v32  ;;  %331 = vmatmul.bf16.vlgmr.msra.gmra.mxu0 %v532_v33 }
  0x22   :  { %361 = vmatpush.bf16.msrb.mxu0 %v808_v1  ;;  %374 = vmatmul.bf16.vlgmr.msra.gmra.mxu1 %v548_v34  ;;  %v588_v1 = vor.u32 %v710_v62, %v587_v61 }
  0x23   :  { %412 = vmatmul.bf16.vlgmr.msra.gmra.mxu2 %v552_v35 }
  0x26   :  { %362 = vmatpush.bf16.msrb.mxu0 %v823_v4  ;;  %v34_v4 = vld [vmem:[%s1066_s0 + $0x78] sm:$0xff] }
  0x2a   :  { %363 = vmatpush.bf16.msrb.mxu0 %v724_v7  ;;  %v140_v7 = vunpack.c.l.b16 %v34_v4 }
  0x2e   :  { %364 = vmatpush.bf16.msrb.mxu0 %v723_v10  ;;  %v158_v10 = vpack.c.b16 %v140_v7, %v140_v7 }
  0x31   :  { %341 = vmatmul.bf16.gmra.mxu3 %v556_v42 }
  0x32   :  { %365 = vmatpush.bf16.msrb.mxu0 %v722_v13  ;;  %379 = vmatmul.bf16.gmra.mxu1 %v560_v43 }
  0x33   :  { %417 = vmatmul.bf16.gmra.mxu2 %v564_v44 }
  0x36   :  { %366 = vmatpush.bf16.msrb.mxu0 %v721_v16 }
  0x3a   :  { %367 = vmatpush.bf16.msrb.mxu0 %v720_v19 }
  0x3e   :  { %368 = vmatpush.bf16.msrb.mxu0 %v719_v22 }
  0x41   :  { %369 = vmatmul.bf16.vlgmr.msrb.gmra.mxu0 %v536_v50  ;;  %346 = vmatmul.bf16.gmra.mxu3 %v568_v54 }
  0x42   :  { %399 = vmatpush.bf16.msra.mxu0 %v813_v2  ;;  %384 = vmatmul.bf16.gmra.mxu1 %v572_v55  ;;  %v539_v2 = vld [vmem:[%s1066_s0 + $0x8] sm:$0xf] }
  0x43   :  { %422 = vmatmul.bf16.gmra.mxu2 %v576_v56  ;;  %v540_v6 = vor.u32 %v698_v3, %v539_v2 }
  0x46   :  { %400 = vmatpush.bf16.msra.mxu0 %v828_v5  ;;  %v35_v5 = vld [vmem:[%s1066_s0 + $0x80] sm:$0xf] }
  0x47   :  { %v142_v9 = vunpack.c.l.b16 %v35_v5 }
  0x49   :  { %v160_v12 = vpack.c.b16 %v142_v9, %v142_v9 }
  0x4a   :  { %401 = vmatpush.bf16.msra.mxu0 %v841_v8  ;;  %v141_v8 = vunpack.c.h.b16 %v34_v4 }
  0x4e   :  { %402 = vmatpush.bf16.msra.mxu0 %v853_v11  ;;  %v159_v11 = vpack.c.b16 %v141_v8, %v141_v8 }
  0x51   :  { %351 = vmatmul.bf16.gmra.mxu3 %v580_v63 }
  0x52   :  { %403 = vmatpush.bf16.msra.mxu0 %v865_v14  ;;  %389 = vmatmul.bf16.gmra.mxu1 %v584_v0  ;;  %v1013_v14 = vld [vmem:[%s1067_s2] ss:$0 sm:$0xff] }
  0x53   :  { %427 = vmatmul.bf16.gmra.mxu2 %v588_v1 }
  0x56   :  { %404 = vmatpush.bf16.msra.mxu0 %v877_v17 }
  0x5a   :  { %405 = vmatpush.bf16.msra.mxu0 %v889_v20 }
  0x5e   :  { %406 = vmatpush.bf16.msra.mxu0 %v900_v23 }
  0x61   :  { %407 = vmatmul.bf16.vlgmr.msra.gmra.mxu0 %v540_v6  ;;  %356 = vmatmul.bf16.gmra.mxu3 %v158_v10 }
  0x62   :  { %394 = vmatmul.bf16.gmra.mxu1 %v159_v11 }
  0x63   :  { %432 = vmatmul.bf16.gmra.mxu2 %v160_v12 }
  0x9e   :  { %v1017_v29 = vpop.f32.mrf.mxu0 }
  0x9f   :  { %v375_v13 = vpop.f32.mrf.mxu1 }
  0xa4   :  { %v337_v15 = vpop.f32.mrf.mxu3 }
  0xa5   :  { %v338_v16 = vadd.f32 %v1013_v14, %v337_v15 }
  0xa6   :  { %v413_v17 = vpop.f32.mrf.mxu2  ;;  %v1023_v45 = vpop.f32.mrf.mxu0 }
  0xa7   :  { %v376_v18 = vadd.f32 %v375_v13, %v338_v16  ;;  %v377_v19 = vpop.f32.mrf.mxu1 }
  0xa9   :  { %v414_v20 = vadd.f32 %v413_v17, %v376_v18 }
  0xab   :  { %v450_v21 = vmin.f32 %v414_v20, 0.0  ;;  %vm439_vm0 = vcmp.gt.f32.partialorder %v414_v20, 0.0 }
  0xac   :  { %v339_v22 = vpop.f32.mrf.mxu3 }
  0xad   :  { %v463_v23 = vmul.f32 1.442695, %v450_v21  ;;  %v340_v24 = vadd.f32 %v1013_v14, %v339_v22 }
  0xae   :  { %v415_v25 = vpop.f32.mrf.mxu2 }
  0xaf   :  { %760 = vpow2.f32 %v463_v23  ;;  %v378_v26 = vadd.f32 %v377_v19, %v340_v24  ;;  %v380_v27 = vpop.f32.mrf.mxu1  ;;  %v333_v19 = vadd.f32 %v1013_v14, %v1017_v29 }
  0xb1   :  { %v416_v28 = vadd.f32 %v415_v25, %v378_v26 }
  0xb3   :  { %v451_v30 = vmin.f32 %v416_v28, 0.0  ;;  %vm440_vm1 = vcmp.gt.f32.partialorder %v416_v28, 0.0 }
  0xb4   :  { %v342_v31 = vpop.f32.mrf.mxu3 }
  0xb5   :  { %v761_v32 = vpop.eup %760  ;;  %v465_v33 = vmul.f32 1.442695, %v451_v30  ;;  %v343_v34 = vadd.f32 %v1013_v14, %v342_v31 }
  0xb6   :  { %v418_v35 = vpop.f32.mrf.mxu2  ;;  %v687_v36 = vadd.f32 -1.0, %v761_v32 }
  0xb7   :  { %762 = vpow2.f32 %v465_v33  ;;  %v381_v37 = vadd.f32 %v380_v27, %v343_v34  ;;  %v382_v38 = vpop.f32.mrf.mxu1 }
  0xb8   :  { %v494_v39 = vmul.f32 0.1, %v687_v36 }
  0xb9   :  { %v419_v40 = vadd.f32 %v418_v35, %v381_v37  ;;  %v335_v35 = vadd.f32 %v1013_v14, %v1023_v45 }
  0xba   :  { %v505_v41 = vsel %vm439_vm0, %v414_v20, %v494_v39 }
  0xbb   :  { %516 = vst [vmem:[%s1068_s3 + $0x10] sm:$0xff] %v505_v41  ;;  %v452_v42 = vmin.f32 %v419_v40, 0.0  ;;  %vm441_vm2 = vcmp.gt.f32.partialorder %v419_v40, 0.0 }
  0xbc   :  { %v344_v43 = vpop.f32.mrf.mxu3 }
  0xbd   :  { %v763_v44 = vpop.eup %762  ;;  %v467_v46 = vmul.f32 1.442695, %v452_v42  ;;  %v345_v47 = vadd.f32 %v1013_v14, %v344_v43 }
  0xbe   :  { %v420_v48 = vpop.f32.mrf.mxu2  ;;  %v688_v49 = vadd.f32 -1.0, %v763_v44  ;;  %v370_v62 = vpop.f32.mrf.mxu0 }
  0xbf   :  { %764 = vpow2.f32 %v467_v46  ;;  %v383_v50 = vadd.f32 %v382_v38, %v345_v47  ;;  %v385_v51 = vpop.f32.mrf.mxu1 }
  0xc0   :  { %v495_v52 = vmul.f32 0.1, %v688_v49 }
  0xc1   :  { %v421_v53 = vadd.f32 %v420_v48, %v383_v50 }
  0xc2   :  { %v506_v54 = vsel %vm440_vm1, %v416_v28, %v495_v52  ;;  %v371_v28 = vadd.f32 %v370_v62, %v333_v19 }
  0xc3   :  { %517 = vst [vmem:[%s1068_s3 + $0x18] sm:$0xff] %v506_v54  ;;  %v453_v55 = vmin.f32 %v421_v53, 0.0  ;;  %vm442_vm3 = vcmp.gt.f32.partialorder %v421_v53, 0.0 }
  0xc4   :  { %v347_v56 = vpop.f32.mrf.mxu3 }
  0xc5   :  { %v765_v57 = vpop.eup %764  ;;  %v469_v58 = vmul.f32 1.442695, %v453_v55  ;;  %v348_v59 = vadd.f32 %v1013_v14, %v347_v56 }
  0xc6   :  { %v423_v60 = vpop.f32.mrf.mxu2  ;;  %v689_v61 = vadd.f32 -1.0, %v765_v57  ;;  %v372_v15 = vpop.f32.mrf.mxu0 }
  0xc7   :  { %766 = vpow2.f32 %v469_v58  ;;  %v386_v63 = vadd.f32 %v385_v51, %v348_v59  ;;  %v387_v0 = vpop.f32.mrf.mxu1  ;;  %v373_v47 = vadd.f32 %v372_v15, %v335_v35 }
  0xc8   :  { %v496_v1 = vmul.f32 0.1, %v689_v61 }
  0xc9   :  { %v424_v2 = vadd.f32 %v423_v60, %v386_v63 }
  0xca   :  { %v507_v3 = vsel %vm441_vm2, %v419_v40, %v496_v1 }
  0xcb   :  { %518 = vst [vmem:[%s1068_s3 + $0x20] sm:$0xff] %v507_v3  ;;  %v454_v4 = vmin.f32 %v424_v2, 0.0  ;;  %vm443_vm4 = vcmp.gt.f32.partialorder %v424_v2, 0.0 }
  0xcc   :  { %v349_v5 = vpop.f32.mrf.mxu3 }
  0xcd   :  { %v767_v6 = vpop.eup %766  ;;  %v471_v7 = vmul.f32 1.442695, %v454_v4  ;;  %v350_v8 = vadd.f32 %v1013_v14, %v349_v5 }
  0xce   :  { %v425_v9 = vpop.f32.mrf.mxu2  ;;  %v690_v10 = vadd.f32 -1.0, %v767_v6 }
  0xcf   :  { %768 = vpow2.f32 %v471_v7  ;;  %v388_v11 = vadd.f32 %v387_v0, %v350_v8  ;;  %v390_v12 = vpop.f32.mrf.mxu1 }
  0xd0   :  { %v497_v13 = vmul.f32 0.1, %v690_v10 }
  0xd1   :  { %v426_v16 = vadd.f32 %v425_v9, %v388_v11 }
  0xd2   :  { %v508_v17 = vsel %vm442_vm3, %v421_v53, %v497_v13 }
  0xd3   :  { %519 = vst [vmem:[%s1068_s3 + $0x28] sm:$0xff] %v508_v17  ;;  %v455_v18 = vmin.f32 %v426_v16, 0.0  ;;  %vm444_vm5 = vcmp.gt.f32.partialorder %v426_v16, 0.0 }
  0xd4   :  { %v352_v20 = vpop.f32.mrf.mxu3 }
  0xd5   :  { %v769_v21 = vpop.eup %768  ;;  %v473_v22 = vmul.f32 1.442695, %v455_v18  ;;  %v353_v23 = vadd.f32 %v1013_v14, %v352_v20 }
  0xd6   :  { %v428_v24 = vpop.f32.mrf.mxu2  ;;  %v691_v25 = vadd.f32 -1.0, %v769_v21 }
  0xd7   :  { %770 = vpow2.f32 %v473_v22  ;;  %v391_v26 = vadd.f32 %v390_v12, %v353_v23  ;;  %v392_v27 = vpop.f32.mrf.mxu1 }
  0xd8   :  { %v498_v30 = vmul.f32 0.1, %v691_v25 }
  0xd9   :  { %v429_v31 = vadd.f32 %v428_v24, %v391_v26 }
  0xda   :  { %v509_v33 = vsel %vm443_vm4, %v424_v2, %v498_v30 }
  0xdb   :  { %520 = vst [vmem:[%s1068_s3 + $0x30] sm:$0xff] %v509_v33  ;;  %v456_v29 = vmin.f32 %v429_v31, 0.0  ;;  %vm445_vm6 = vcmp.gt.f32.partialorder %v429_v31, 0.0 }
  0xdc   :  { %v354_v37 = vpop.f32.mrf.mxu3 }
  0xdd   :  { %v771_v38 = vpop.eup %770  ;;  %v475_v39 = vmul.f32 1.442695, %v456_v29  ;;  %v355_v40 = vadd.f32 %v1013_v14, %v354_v37 }
  0xde   :  { %v408_v32 = vpop.f32.mrf.mxu0  ;;  %v430_v41 = vpop.f32.mrf.mxu2  ;;  %v692_v42 = vadd.f32 -1.0, %v771_v38 }
  0xdf   :  { %v409_v34 = vadd.f32 %v408_v32, %v371_v28  ;;  %772 = vpow2.f32 %v475_v39  ;;  %v393_v44 = vadd.f32 %v392_v27, %v355_v40  ;;  %v395_v46 = vpop.f32.mrf.mxu1 }
  0xe0   :  { %v499_v48 = vmul.f32 0.1, %v692_v42 }
  0xe1   :  { %v448_v36 = vmin.f32 %v409_v34, 0.0  ;;  %v431_v49 = vadd.f32 %v430_v41, %v393_v44  ;;  %vm437_vm7 = vcmp.gt.f32.partialorder %v409_v34, 0.0 }
  0xe2   :  { %v510_v51 = vsel %vm444_vm5, %v426_v16, %v499_v48 }
  0xe3   :  { %v459_v43 = vmul.f32 1.442695, %v448_v36  ;;  %521 = vst [vmem:[%s1068_s3 + $0x38] sm:$0xff] %v510_v51  ;;  %v457_v52 = vmin.f32 %v431_v49, 0.0  ;;  %vm446_vm8 = vcmp.gt.f32.partialorder %v431_v49, 0.0 }
  0xe4   :  { %v357_v54 = vpop.f32.mrf.mxu3 }
  0xe5   :  { %774 = vpow2.f32 %v459_v43  ;;  %v773_v55 = vpop.eup %772  ;;  %v477_v56 = vmul.f32 1.442695, %v457_v52  ;;  %v358_v57 = vadd.f32 %v1013_v14, %v357_v54 }
  0xe6   :  { %v410_v50 = vpop.f32.mrf.mxu0  ;;  %v433_v58 = vpop.f32.mrf.mxu2  ;;  %v693_v60 = vadd.f32 -1.0, %v773_v55 }
  0xe7   :  { %v411_v45 = vadd.f32 %v410_v50, %v373_v47  ;;  %776 = vpow2.f32 %v477_v56  ;;  %v396_v63 = vadd.f32 %v395_v46, %v358_v57  ;;  %v397_v0 = vpop.f32.mrf.mxu1 }
  0xe8   :  { %v500_v1 = vmul.f32 0.1, %v693_v60 }
  0xe9   :  { %v449_v53 = vmin.f32 %v411_v45, 0.0  ;;  %v434_v3 = vadd.f32 %v433_v58, %v396_v63  ;;  %vm438_vm9 = vcmp.gt.f32.partialorder %v411_v45, 0.0 }
  0xea   :  { %v511_v4 = vsel %vm445_vm6, %v429_v31, %v500_v1 }
  0xeb   :  { %v775_v59 = vpop.eup %774  ;;  %v461_v61 = vmul.f32 1.442695, %v449_v53  ;;  %522 = vst [vmem:[%s1068_s3 + $0x40] sm:$0xff] %v511_v4  ;;  %v458_v5 = vmin.f32 %v434_v3, 0.0  ;;  %vm447_vm10 = vcmp.gt.f32.partialorder %v434_v3, 0.0 }
  0xec   :  { %v685_v62 = vadd.f32 -1.0, %v775_v59  ;;  %v359_v6 = vpop.f32.mrf.mxu3 }
  0xed   :  { %778 = vpow2.f32 %v461_v61  ;;  %v777_v7 = vpop.eup %776  ;;  %v479_v8 = vmul.f32 1.442695, %v458_v5 }
  0xee   :  { %v492_v2 = vmul.f32 0.1, %v685_v62  ;;  %v435_v9 = vpop.f32.mrf.mxu2  ;;  %v694_v11 = vadd.f32 -1.0, %v777_v7 }
  0xef   :  { %780 = vpow2.f32 %v479_v8 }
  0xf0   :  { %v503_v14 = vsel %vm437_vm7, %v409_v34, %v492_v2  ;;  %v501_v13 = vmul.f32 0.1, %v694_v11 }
  0xf1   :  { %514 = vst [vmem:[%s1068_s3] sm:$0xff] %v503_v14 }
  0xf2   :  { %v512_v16 = vsel %vm446_vm8, %v431_v49, %v501_v13 }
  0xf3   :  { %v779_v10 = vpop.eup %778  ;;  %523 = vst [vmem:[%s1068_s3 + $0x48] sm:$0xff] %v512_v16 }
  0xf4   :  { %v686_v12 = vadd.f32 -1.0, %v779_v10 }
  0xf5   :  { %v781_v18 = vpop.eup %780 }
  0xf6   :  { %v493_v15 = vmul.f32 0.1, %v686_v12  ;;  %v695_v19 = vadd.f32 -1.0, %v781_v18 }
  0xf8   :  { %v504_v17 = vsel %vm438_vm9, %v411_v45, %v493_v15  ;;  %v502_v20 = vmul.f32 0.1, %v695_v19 }
  0xf9   :  { %515 = vst [vmem:[%s1068_s3 + $0x8] sm:$0xff] %v504_v17 }
  0xfa   :  { %v513_v21 = vsel %vm447_vm10, %v434_v3, %v502_v20 }
  0xfb   :  { %524 = vst [vmem:[%s1068_s3 + $0x50] sm:$0xff] %v513_v21 }

// kernel: nldnn_forward.34
= control target key start
LH: loop header
LB: loop body
LE: loop exit
PB: predicated region body
PF: predicated region fallthrough
CT: control target
= control target key end

     0   :  { %s236_s1 = inlined_call_operand.vmem [shape: bf16[128,128], index: 1, kind: input, shape index: {}]   ;;  %s237_s2 = inlined_call_operand.vmem [shape: f32[1,128], index: 2, kind: input, shape index: {}]   ;;  %s238_s0 = inlined_call_operand.vmem [shape: bf16[24,128], index: 0, kind: input, shape index: {}]   ;;  %s239_s3 = inlined_call_operand.vmem [shape: f32[24,128], index: 3, kind: output, shape index: {}]  }
   0x1   :  { %v164_v0 = vld [vmem:[%s236_s1 + $0x38] sm:$0xff]  ;;  %v163_v1 = vld [vmem:[%s236_s1 + $0x30] sm:$0xff]  ;;  %v162_v2 = vld [vmem:[%s236_s1 + $0x28] sm:$0xff] }
   0x2   :  { %95 = vmatpush.bf16.msra.mxu0 %v164_v0  ;;  %165 = vmatpush.bf16.msra.mxu1 %v164_v0  ;;  %v161_v3 = vld [vmem:[%s236_s1 + $0x20] sm:$0xff]  ;;  %v160_v4 = vld [vmem:[%s236_s1 + $0x18] sm:$0xff]  ;;  %v159_v5 = vld [vmem:[%s236_s1 + $0x10] sm:$0xff] }
   0x3   :  { %v158_v6 = vld [vmem:[%s236_s1 + $0x8] sm:$0xff]  ;;  %v157_v9 = vld [vmem:[%s236_s1] sm:$0xff] }
   0x4   :  { %v16_v7 = vld [vmem:[%s238_s0 + $0x8] sm:$0xf]  ;;  %v156_v10 = vld [vmem:[%s238_s0] sm:$0xff] }
   0x5   :  { %v42_v8 = vunpack.c.l.b16 %v16_v7  ;;  %v173_v12 = vld [vmem:[%s237_s2] ss:$0 sm:$0xff] }
   0x6   :  { %96 = vmatpush.bf16.msra.mxu0 %v163_v1  ;;  %166 = vmatpush.bf16.msra.mxu1 %v163_v1 }
   0x7   :  { %v44_v11 = vpack.c.b16 %v42_v8, %v42_v8 }
   0xa   :  { %97 = vmatpush.bf16.msra.mxu0 %v162_v2  ;;  %167 = vmatpush.bf16.msra.mxu1 %v162_v2 }
   0xe   :  { %98 = vmatpush.bf16.msra.mxu0 %v161_v3  ;;  %168 = vmatpush.bf16.msra.mxu1 %v161_v3 }
  0x12   :  { %99 = vmatpush.bf16.msra.mxu0 %v160_v4  ;;  %169 = vmatpush.bf16.msra.mxu1 %v160_v4 }
  0x16   :  { %100 = vmatpush.bf16.msra.mxu0 %v159_v5  ;;  %170 = vmatpush.bf16.msra.mxu1 %v159_v5 }
  0x1a   :  { %101 = vmatpush.bf16.msra.mxu0 %v158_v6  ;;  %171 = vmatpush.bf16.msra.mxu1 %v158_v6 }
  0x1e   :  { %102 = vmatpush.bf16.msra.mxu0 %v157_v9  ;;  %172 = vmatpush.bf16.msra.mxu1 %v157_v9 }
  0x21   :  { %103 = vmatmul.bf16.vlgmr.msra.gmra.mxu0 %v156_v10  ;;  %108 = vmatmul.bf16.vlgmr.msra.gmra.mxu1 %v44_v11 }
  0x9e   :  { %v104_v13 = vpop.f32.mrf.mxu0  ;;  %v109_v14 = vpop.f32.mrf.mxu1 }
  0x9f   :  { %v105_v15 = vadd.f32 %v173_v12, %v104_v13  ;;  %v110_v16 = vadd.f32 %v173_v12, %v109_v14 }
  0xa1   :  { %113 = vst [vmem:[%s239_s3] sm:$0xff] %v105_v15 }
  0xa2   :  { %115 = vst [vmem:[%s239_s3 + $0x10] sm:$0xff] %v110_v16 }
  0xa6   :  { %v106_v17 = vpop.f32.mrf.mxu0  ;;  %v111_v18 = vpop.f32.mrf.mxu1 }
  0xa7   :  { %v107_v19 = vadd.f32 %v173_v12, %v106_v17 }
  0xa9   :  { %114 = vst [vmem:[%s239_s3 + $0x8] sm:$0xff] %v107_v19 }

// kernel: nldnn_forward.23
= control target key start
LH: loop header
LB: loop body
LE: loop exit
PB: predicated region body
PF: predicated region fallthrough
CT: control target
= control target key end

     0   :  { %s392_s1 = inlined_call_operand.vmem [shape: bf16[256,128], index: 1, kind: input, shape index: {}]   ;;  %s393_s2 = inlined_call_operand.vmem [shape: f32[1,128], index: 2, kind: input, shape index: {}]   ;;  %s394_s0 = inlined_call_operand.vmem [shape: bf16[16,256], index: 0, kind: input, shape index: {}]   ;;  %s395_s3 = inlined_call_operand.vmem [shape: f32[16,128], index: 3, kind: output, shape index: {}]  }
   0x1   :  { %v289_v0 = vld [vmem:[%s392_s1 + $0x38] sm:$0xff]  ;;  %v288_v2 = vld [vmem:[%s392_s1 + $0x30] sm:$0xff]  ;;  %v287_v4 = vld [vmem:[%s392_s1 + $0x28] sm:$0xff] }
   0x2   :  { %v297_v1 = vld [vmem:[%s392_s1 + $0x78] sm:$0xff]  ;;  %158 = vmatpush.bf16.msra.mxu0 %v289_v0  ;;  %v296_v3 = vld [vmem:[%s392_s1 + $0x70] sm:$0xff]  ;;  %v295_v5 = vld [vmem:[%s392_s1 + $0x68] sm:$0xff] }
   0x3   :  { %172 = vmatpush.bf16.msra.mxu1 %v297_v1  ;;  %v286_v6 = vld [vmem:[%s392_s1 + $0x20] sm:$0xff]  ;;  %v285_v8 = vld [vmem:[%s392_s1 + $0x18] sm:$0xff]  ;;  %v284_v10 = vld [vmem:[%s392_s1 + $0x10] sm:$0xff] }
   0x4   :  { %v294_v7 = vld [vmem:[%s392_s1 + $0x60] sm:$0xff]  ;;  %v293_v9 = vld [vmem:[%s392_s1 + $0x58] sm:$0xff]  ;;  %v292_v11 = vld [vmem:[%s392_s1 + $0x50] sm:$0xff] }
   0x5   :  { %v283_v12 = vld [vmem:[%s392_s1 + $0x8] sm:$0xff]  ;;  %v282_v14 = vld [vmem:[%s392_s1] sm:$0xff] }
   0x6   :  { %159 = vmatpush.bf16.msra.mxu0 %v288_v2  ;;  %v291_v13 = vld [vmem:[%s392_s1 + $0x48] sm:$0xff]  ;;  %v290_v15 = vld [vmem:[%s392_s1 + $0x40] sm:$0xff] }
   0x7   :  { %173 = vmatpush.bf16.msra.mxu1 %v296_v3  ;;  %v208_v16 = vld [vmem:[%s394_s0] sm:$0xf]  ;;  %v281_v17 = vld [vmem:[%s394_s0 + $0x4] sm:$0xf0]  ;;  %v280_v18 = vld [vmem:[%s394_s0 + $0x4] sm:$0xf] }
   0x8   :  { %v210_v19 = vld [vmem:[%s394_s0 + $0x8] sm:$0xf0]  ;;  %v209_v20 = vor.u32 %v281_v17, %v208_v16  ;;  %v298_v22 = vld [vmem:[%s393_s2] ss:$0 sm:$0xff] }
   0x9   :  { %v213_v21 = vor.u32 %v280_v18, %v210_v19 }
   0xa   :  { %160 = vmatpush.bf16.msra.mxu0 %v287_v4 }
   0xb   :  { %174 = vmatpush.bf16.msra.mxu1 %v295_v5 }
   0xe   :  { %161 = vmatpush.bf16.msra.mxu0 %v286_v6 }
   0xf   :  { %175 = vmatpush.bf16.msra.mxu1 %v294_v7 }
  0x12   :  { %162 = vmatpush.bf16.msra.mxu0 %v285_v8 }
  0x13   :  { %176 = vmatpush.bf16.msra.mxu1 %v293_v9 }
  0x16   :  { %163 = vmatpush.bf16.msra.mxu0 %v284_v10 }
  0x17   :  { %177 = vmatpush.bf16.msra.mxu1 %v292_v11 }
  0x1a   :  { %164 = vmatpush.bf16.msra.mxu0 %v283_v12 }
  0x1b   :  { %178 = vmatpush.bf16.msra.mxu1 %v291_v13 }
  0x1e   :  { %165 = vmatpush.bf16.msra.mxu0 %v282_v14 }
  0x1f   :  { %179 = vmatpush.bf16.msra.mxu1 %v290_v15 }
  0x21   :  { %166 = vmatmul.bf16.vlgmr.msra.gmra.mxu0 %v209_v20 }
  0x22   :  { %180 = vmatmul.bf16.vlgmr.msra.gmra.mxu1 %v213_v21 }
  0x9e   :  { %v167_v23 = vpop.f32.mrf.mxu0 }
  0x9f   :  { %v181_v24 = vpop.f32.mrf.mxu1  ;;  %v168_v25 = vadd.f32 %v298_v22, %v167_v23 }
  0xa1   :  { %v182_v26 = vadd.f32 %v181_v24, %v168_v25 }
  0xa3   :  { %v188_v27 = vmin.f32 %v182_v26, 0.0  ;;  %vm186_vm0 = vcmp.gt.f32.partialorder %v182_v26, 0.0 }
  0xa5   :  { %v190_v28 = vmul.f32 1.442695, %v188_v27 }
  0xa6   :  { %v169_v29 = vpop.f32.mrf.mxu0 }
  0xa7   :  { %299 = vpow2.f32 %v190_v28  ;;  %v170_v30 = vadd.f32 %v298_v22, %v169_v29  ;;  %v183_v31 = vpop.f32.mrf.mxu1 }
  0xa9   :  { %v184_v32 = vadd.f32 %v183_v31, %v170_v30 }
  0xab   :  { %v189_v33 = vmin.f32 %v184_v32, 0.0  ;;  %vm187_vm1 = vcmp.gt.f32.partialorder %v184_v32, 0.0 }
  0xad   :  { %v300_v34 = vpop.eup %299  ;;  %v192_v35 = vmul.f32 1.442695, %v189_v33 }
  0xae   :  { %v278_v36 = vadd.f32 -1.0, %v300_v34 }
  0xaf   :  { %301 = vpow2.f32 %v192_v35 }
  0xb0   :  { %v196_v37 = vmul.f32 0.1, %v278_v36 }
  0xb2   :  { %v198_v38 = vsel %vm186_vm0, %v182_v26, %v196_v37 }
  0xb3   :  { %200 = vst [vmem:[%s395_s3] sm:$0xff] %v198_v38 }
  0xb5   :  { %v302_v39 = vpop.eup %301 }
  0xb6   :  { %v279_v40 = vadd.f32 -1.0, %v302_v39 }
  0xb8   :  { %v197_v41 = vmul.f32 0.1, %v279_v40 }
  0xba   :  { %v199_v42 = vsel %vm187_vm1, %v184_v32, %v197_v41 }
  0xbb   :  { %201 = vst [vmem:[%s395_s3 + $0x8] sm:$0xff] %v199_v42 }

// kernel: nldnn_forward.24
= control target key start
LH: loop header
LB: loop body
LE: loop exit
PB: predicated region body
PF: predicated region fallthrough
CT: control target
= control target key end

     0   :  { %s528_s1 = inlined_call_operand.vmem [shape: bf16[128,384], index: 1, kind: input, shape index: {}]   ;;  %s529_s0 = inlined_call_operand.vmem [shape: bf16[8,128], index: 0, kind: input, shape index: {}]   ;;  %s530_s2 = inlined_call_operand.vmem [shape: f32[1,384], index: 2, kind: input, shape index: {}]   ;;  %s531_s3 = inlined_call_operand.vmem [shape: f32[8,384], index: 3, kind: output, shape index: {}]  }
   0x1   :  { %v315_v0 = vld [vmem:[%s528_s1 + $0xa8] sm:$0xf]  ;;  %v347_v1 = vld [vmem:[%s528_s1 + $0xb0] sm:$0xf0]  ;;  %v346_v2 = vld [vmem:[%s528_s1 + $0xac] sm:$0xf] }
   0x2   :  { %v316_v3 = vor.u32 %v347_v1, %v315_v0  ;;  %v317_v4 = vld [vmem:[%s528_s1 + $0xb4] sm:$0xf0]  ;;  %v323_v5 = vld [vmem:[%s528_s1 + $0xb0] sm:$0xf]  ;;  %v348_v6 = vld [vmem:[%s528_s1 + $0xb8] sm:$0xf0] }
   0x3   :  { %v320_v7 = vor.u32 %v346_v2, %v317_v4  ;;  %v324_v8 = vor.u32 %v348_v6, %v323_v5  ;;  %v303_v9 = vld [vmem:[%s528_s1 + $0x90] sm:$0xf]  ;;  %v344_v10 = vld [vmem:[%s528_s1 + $0x98] sm:$0xf0]  ;;  %v343_v11 = vld [vmem:[%s528_s1 + $0x94] sm:$0xf] }
   0x4   :  { %183 = vmatpush.bf16.msra.mxu0 %v316_v3  ;;  %v304_v12 = vor.u32 %v344_v10, %v303_v9  ;;  %v305_v13 = vld [vmem:[%s528_s1 + $0x9c] sm:$0xf0]  ;;  %v311_v14 = vld [vmem:[%s528_s1 + $0x98] sm:$0xf]  ;;  %v345_v15 = vld [vmem:[%s528_s1 + $0xa0] sm:$0xf0] }
   0x5   :  { %196 = vmatpush.bf16.msra.mxu1 %v320_v7  ;;  %209 = vmatpush.bf16.msra.mxu2 %v324_v8  ;;  %v308_v16 = vor.u32 %v343_v11, %v305_v13  ;;  %v312_v17 = vor.u32 %v345_v15, %v311_v14  ;;  %v291_v18 = vld [vmem:[%s528_s1 + $0x78] sm:$0xf]  ;;  %v341_v19 = vld [vmem:[%s528_s1 + $0x80] sm:$0xf0]  ;;  %v340_v20 = vld [vmem:[%s528_s1 + $0x7c] sm:$0xf] }
   0x6   :  { %v293_v21 = vld [vmem:[%s528_s1 + $0x84] sm:$0xf0]  ;;  %v299_v22 = vld [vmem:[%s528_s1 + $0x80] sm:$0xf]  ;;  %v342_v23 = vld [vmem:[%s528_s1 + $0x88] sm:$0xf0]  ;;  %v292_v24 = vor.u32 %v341_v19, %v291_v18 }
   0x7   :  { %v296_v25 = vor.u32 %v340_v20, %v293_v21  ;;  %v300_v26 = vor.u32 %v342_v23, %v299_v22  ;;  %v279_v27 = vld [vmem:[%s528_s1 + $0x60] sm:$0xf]  ;;  %v338_v28 = vld [vmem:[%s528_s1 + $0x68] sm:$0xf0]  ;;  %v337_v29 = vld [vmem:[%s528_s1 + $0x64] sm:$0xf] }
   0x8   :  { %184 = vmatpush.bf16.msra.mxu0 %v304_v12  ;;  %v281_v30 = vld [vmem:[%s528_s1 + $0x6c] sm:$0xf0]  ;;  %v287_v31 = vld [vmem:[%s528_s1 + $0x68] sm:$0xf]  ;;  %v339_v32 = vld [vmem:[%s528_s1 + $0x70] sm:$0xf0]  ;;  %v280_v33 = vor.u32 %v338_v28, %v279_v27 }
   0x9   :  { %197 = vmatpush.bf16.msra.mxu1 %v308_v16  ;;  %210 = vmatpush.bf16.msra.mxu2 %v312_v17  ;;  %v284_v34 = vor.u32 %v337_v29, %v281_v30  ;;  %v288_v35 = vor.u32 %v339_v32, %v287_v31  ;;  %v267_v36 = vld [vmem:[%s528_s1 + $0x48] sm:$0xf]  ;;  %v335_v37 = vld [vmem:[%s528_s1 + $0x50] sm:$0xf0]  ;;  %v334_v38 = vld [vmem:[%s528_s1 + $0x4c] sm:$0xf] }
   0xa   :  { %v269_v39 = vld [vmem:[%s528_s1 + $0x54] sm:$0xf0]  ;;  %v275_v40 = vld [vmem:[%s528_s1 + $0x50] sm:$0xf]  ;;  %v336_v41 = vld [vmem:[%s528_s1 + $0x58] sm:$0xf0]  ;;  %v268_v42 = vor.u32 %v335_v37, %v267_v36 }
   0xb   :  { %v272_v43 = vor.u32 %v334_v38, %v269_v39  ;;  %v276_v44 = vor.u32 %v336_v41, %v275_v40  ;;  %v255_v45 = vld [vmem:[%s528_s1 + $0x30] sm:$0xf]  ;;  %v332_v46 = vld [vmem:[%s528_s1 + $0x38] sm:$0xf0]  ;;  %v331_v47 = vld [vmem:[%s528_s1 + $0x34] sm:$0xf] }
   0xc   :  { %185 = vmatpush.bf16.msra.mxu0 %v292_v24  ;;  %v257_v48 = vld [vmem:[%s528_s1 + $0x3c] sm:$0xf0]  ;;  %v263_v49 = vld [vmem:[%s528_s1 + $0x38] sm:$0xf]  ;;  %v333_v50 = vld [vmem:[%s528_s1 + $0x40] sm:$0xf0]  ;;  %v256_v51 = vor.u32 %v332_v46, %v255_v45 }
   0xd   :  { %198 = vmatpush.bf16.msra.mxu1 %v296_v25  ;;  %211 = vmatpush.bf16.msra.mxu2 %v300_v26  ;;  %v260_v52 = vor.u32 %v331_v47, %v257_v48  ;;  %v264_v53 = vor.u32 %v333_v50, %v263_v49  ;;  %v243_v54 = vld [vmem:[%s528_s1 + $0x18] sm:$0xf]  ;;  %v329_v55 = vld [vmem:[%s528_s1 + $0x20] sm:$0xf0]  ;;  %v328_v56 = vld [vmem:[%s528_s1 + $0x1c] sm:$0xf] }
   0xe   :  { %v245_v57 = vld [vmem:[%s528_s1 + $0x24] sm:$0xf0]  ;;  %v251_v58 = vld [vmem:[%s528_s1 + $0x20] sm:$0xf]  ;;  %v330_v59 = vld [vmem:[%s528_s1 + $0x28] sm:$0xf0]  ;;  %v244_v60 = vor.u32 %v329_v55, %v243_v54 }
   0xf   :  { %v248_v61 = vor.u32 %v328_v56, %v245_v57  ;;  %v252_v62 = vor.u32 %v330_v59, %v251_v58  ;;  %v231_v63 = vld [vmem:[%s528_s1] sm:$0xf]  ;;  %v326_v0 = vld [vmem:[%s528_s1 + $0x8] sm:$0xf0]  ;;  %v325_v1 = vld [vmem:[%s528_s1 + $0x4] sm:$0xf] }
  0x10   :  { %186 = vmatpush.bf16.msra.mxu0 %v280_v33  ;;  %v233_v2 = vld [vmem:[%s528_s1 + $0xc] sm:$0xf0]  ;;  %v239_v3 = vld [vmem:[%s528_s1 + $0x8] sm:$0xf]  ;;  %v327_v4 = vld [vmem:[%s528_s1 + $0x10] sm:$0xf0]  ;;  %v232_v5 = vor.u32 %v326_v0, %v231_v63 }
  0x11   :  { %199 = vmatpush.bf16.msra.mxu1 %v284_v34  ;;  %212 = vmatpush.bf16.msra.mxu2 %v288_v35  ;;  %v236_v6 = vor.u32 %v325_v1, %v233_v2  ;;  %v240_v7 = vor.u32 %v327_v4, %v239_v3  ;;  %v14_v8 = vld [vmem:[%s529_s0] sm:$0xf] }
  0x12   :  { %v47_v9 = vld [vmem:[%s530_s2] sm:$0x7] }
  0x13   :  { %v49_v10 = vperm.slane %v47_v9, 0  ;;  %v50_v11 = vperm.slane %v47_v9, 1  ;;  %v51_v16 = vperm.slane %v47_v9, 2 }
  0x14   :  { %187 = vmatpush.bf16.msra.mxu0 %v268_v42 }
  0x15   :  { %200 = vmatpush.bf16.msra.mxu1 %v272_v43  ;;  %213 = vmatpush.bf16.msra.mxu2 %v276_v44 }
  0x18   :  { %188 = vmatpush.bf16.msra.mxu0 %v256_v51 }
  0x19   :  { %201 = vmatpush.bf16.msra.mxu1 %v260_v52  ;;  %214 = vmatpush.bf16.msra.mxu2 %v264_v53 }
  0x1c   :  { %189 = vmatpush.bf16.msra.mxu0 %v244_v60 }
  0x1d   :  { %202 = vmatpush.bf16.msra.mxu1 %v248_v61  ;;  %215 = vmatpush.bf16.msra.mxu2 %v252_v62 }
  0x20   :  { %190 = vmatpush.bf16.msra.mxu0 %v232_v5 }
  0x21   :  { %203 = vmatpush.bf16.msra.mxu1 %v236_v6  ;;  %216 = vmatpush.bf16.msra.mxu2 %v240_v7 }
  0x23   :  { %191 = vmatmul.bf16.vlgmr.msra.gmra.mxu0 %v14_v8 }
  0x24   :  { %204 = vmatmul.bf16.vlgmr.msra.gmra.mxu1 %v14_v8  ;;  %217 = vmatmul.bf16.vlgmr.msra.gmra.mxu2 %v14_v8 }
  0xa0   :  { %v192_v12 = vpop.f32.mrf.mxu0 }
  0xa1   :  { %v193_v13 = vadd.f32 %v192_v12, %v49_v10  ;;  %v205_v14 = vpop.f32.mrf.mxu1 }
  0xa2   :  { %v206_v15 = vadd.f32 %v205_v14, %v50_v11 }
  0xa3   :  { %222 = vst [vmem:[%s531_s3] sm:$0xff] %v193_v13 }
  0xa4   :  { %223 = vst [vmem:[%s531_s3 + $0x8] sm:$0xff] %v206_v15 }
  0xa7   :  { %v218_v17 = vpop.f32.mrf.mxu2 }
  0xa8   :  { %v219_v18 = vadd.f32 %v218_v17, %v51_v16  ;;  %v194_v19 = vpop.f32.mrf.mxu0 }
  0xa9   :  { %v207_v20 = vpop.f32.mrf.mxu1 }
  0xaa   :  { %224 = vst [vmem:[%s531_s3 + $0x10] sm:$0xff] %v219_v18 }
  0xaf   :  { %v220_v21 = vpop.f32.mrf.mxu2 }

// kernel: nldnn_forward.26
= control target key start
LH: loop header
LB: loop body
LE: loop exit
PB: predicated region body
PF: predicated region fallthrough
CT: control target
= control target key end

     0   :  { %s196_s1 = inlined_call_operand.vmem [shape: bf16[128,128], index: 1, kind: input, shape index: {}]   ;;  %s197_s2 = inlined_call_operand.vmem [shape: f32[1,128], index: 2, kind: input, shape index: {}]   ;;  %s198_s0 = inlined_call_operand.vmem [shape: bf16[8,128], index: 0, kind: input, shape index: {}]   ;;  %s199_s3 = inlined_call_operand.vmem [shape: f32[8,128], index: 3, kind: output, shape index: {}]  }
   0x1   :  { %v141_v0 = vld [vmem:[%s196_s1 + $0x38] sm:$0xff]  ;;  %v140_v1 = vld [vmem:[%s196_s1 + $0x30] sm:$0xff]  ;;  %v139_v2 = vld [vmem:[%s196_s1 + $0x28] sm:$0xff] }
   0x2   :  { %83 = vmatpush.bf16.msra.mxu0 %v141_v0  ;;  %v138_v3 = vld [vmem:[%s196_s1 + $0x20] sm:$0xff]  ;;  %v137_v4 = vld [vmem:[%s196_s1 + $0x18] sm:$0xff]  ;;  %v136_v5 = vld [vmem:[%s196_s1 + $0x10] sm:$0xff] }
   0x3   :  { %v135_v6 = vld [vmem:[%s196_s1 + $0x8] sm:$0xff]  ;;  %v134_v7 = vld [vmem:[%s196_s1] sm:$0xff] }
   0x4   :  { %v14_v8 = vld [vmem:[%s198_s0] sm:$0xf] }
   0x5   :  { %v142_v9 = vld [vmem:[%s197_s2] ss:$0 sm:$0xff] }
   0x6   :  { %84 = vmatpush.bf16.msra.mxu0 %v140_v1 }
   0xa   :  { %85 = vmatpush.bf16.msra.mxu0 %v139_v2 }
   0xe   :  { %86 = vmatpush.bf16.msra.mxu0 %v138_v3 }
  0x12   :  { %87 = vmatpush.bf16.msra.mxu0 %v137_v4 }
  0x16   :  { %88 = vmatpush.bf16.msra.mxu0 %v136_v5 }
  0x1a   :  { %89 = vmatpush.bf16.msra.mxu0 %v135_v6 }
  0x1e   :  { %90 = vmatpush.bf16.msra.mxu0 %v134_v7 }
  0x21   :  { %91 = vmatmul.bf16.vlgmr.msra.gmra.mxu0 %v14_v8 }
  0x9e   :  { %v92_v10 = vpop.f32.mrf.mxu0 }
  0x9f   :  { %v93_v11 = vadd.f32 %v142_v9, %v92_v10 }
  0xa1   :  { %v96_v12 = vmax.f32 %v93_v11, 0.0 }
  0xa3   :  { %97 = vst [vmem:[%s199_s3] sm:$0xff] %v96_v12 }
  0xa6   :  { %v94_v13 = vpop.f32.mrf.mxu0 }

// kernel: nldnn_forward.30
= control target key start
LH: loop header
LB: loop body
LE: loop exit
PB: predicated region body
PF: predicated region fallthrough
CT: control target
= control target key end

     0   :  { %s195_s1 = inlined_call_operand.vmem [shape: bf16[128,128], index: 1, kind: input, shape index: {}]   ;;  %s196_s2 = inlined_call_operand.vmem [shape: f32[1,128], index: 2, kind: input, shape index: {}]   ;;  %s197_s0 = inlined_call_operand.vmem [shape: bf16[8,128], index: 0, kind: input, shape index: {}]   ;;  %s198_s3 = inlined_call_operand.vmem [shape: f32[8,128], index: 3, kind: output, shape index: {}]  }
   0x1   :  { %v140_v0 = vld [vmem:[%s195_s1 + $0x38] sm:$0xff]  ;;  %v139_v1 = vld [vmem:[%s195_s1 + $0x30] sm:$0xff]  ;;  %v138_v2 = vld [vmem:[%s195_s1 + $0x28] sm:$0xff] }
   0x2   :  { %83 = vmatpush.bf16.msra.mxu0 %v140_v0  ;;  %v137_v3 = vld [vmem:[%s195_s1 + $0x20] sm:$0xff]  ;;  %v136_v4 = vld [vmem:[%s195_s1 + $0x18] sm:$0xff]  ;;  %v135_v5 = vld [vmem:[%s195_s1 + $0x10] sm:$0xff] }
   0x3   :  { %v134_v6 = vld [vmem:[%s195_s1 + $0x8] sm:$0xff]  ;;  %v133_v7 = vld [vmem:[%s195_s1] sm:$0xff] }
   0x4   :  { %v14_v8 = vld [vmem:[%s197_s0] sm:$0xf] }
   0x5   :  { %v141_v9 = vld [vmem:[%s196_s2] ss:$0 sm:$0xff] }
   0x6   :  { %84 = vmatpush.bf16.msra.mxu0 %v139_v1 }
   0xa   :  { %85 = vmatpush.bf16.msra.mxu0 %v138_v2 }
   0xe   :  { %86 = vmatpush.bf16.msra.mxu0 %v137_v3 }
  0x12   :  { %87 = vmatpush.bf16.msra.mxu0 %v136_v4 }
  0x16   :  { %88 = vmatpush.bf16.msra.mxu0 %v135_v5 }
  0x1a   :  { %89 = vmatpush.bf16.msra.mxu0 %v134_v6 }
  0x1e   :  { %90 = vmatpush.bf16.msra.mxu0 %v133_v7 }
  0x21   :  { %91 = vmatmul.bf16.vlgmr.msra.gmra.mxu0 %v14_v8 }
  0x9e   :  { %v92_v10 = vpop.f32.mrf.mxu0 }
  0x9f   :  { %v93_v11 = vadd.f32 %v141_v9, %v92_v10 }
  0xa1   :  { %96 = vst [vmem:[%s198_s3] sm:$0xff] %v93_v11 }
  0xa6   :  { %v94_v12 = vpop.f32.mrf.mxu0 }

// kernel: nldnn_forward.25
= control target key start
LH: loop header
LB: loop body
LE: loop exit
PB: predicated region body
PF: predicated region fallthrough
CT: control target
= control target key end

     0   :  { %v1616_v36 = vmov 0.0   ;;  %s2333_s1 = inlined_call_operand.vmem [shape: bf16[128,384], index: 1, kind: input, shape index: {}]   ;;  %s2334_s2 = inlined_call_operand.vmem [shape: f32[1,384], index: 2, kind: input, shape index: {}]   ;;  %s2335_s0 = inlined_call_operand.vmem [shape: f32[4,2,384], index: 0, kind: input, shape index: {}]   ;;  %s2336_s3 = inlined_call_operand.vmem [shape: f32[4,2,128], index: 3, kind: output, shape index: {}]  }
   0x1   :  { %v1167_v0 = vld [vmem:[%s2333_s1 + $0xa8] sm:$0xf]  ;;  %v1501_v1 = vld [vmem:[%s2333_s1 + $0xb0] sm:$0xf0]  ;;  %v1500_v2 = vld [vmem:[%s2333_s1 + $0xac] sm:$0xf] }
   0x2   :  { %v1168_v3 = vor.u32 %v1501_v1, %v1167_v0  ;;  %v1169_v4 = vld [vmem:[%s2333_s1 + $0xb4] sm:$0xf0]  ;;  %v1155_v5 = vld [vmem:[%s2333_s1 + $0x90] sm:$0xf]  ;;  %v1498_v6 = vld [vmem:[%s2333_s1 + $0x98] sm:$0xf0] }
   0x3   :  { %v1172_v7 = vor.u32 %v1500_v2, %v1169_v4  ;;  %v1497_v8 = vld [vmem:[%s2333_s1 + $0x94] sm:$0xf]  ;;  %v1157_v9 = vld [vmem:[%s2333_s1 + $0x9c] sm:$0xf0]  ;;  %v1156_v10 = vor.u32 %v1498_v6, %v1155_v5  ;;  %v1143_v12 = vld [vmem:[%s2333_s1 + $0x78] sm:$0xf] }
   0x4   :  { %185 = vmatpush.bf16.msra.mxu0 %v1168_v3  ;;  %v1160_v11 = vor.u32 %v1497_v8, %v1157_v9  ;;  %v1495_v13 = vld [vmem:[%s2333_s1 + $0x80] sm:$0xf0]  ;;  %v1494_v14 = vld [vmem:[%s2333_s1 + $0x7c] sm:$0xf]  ;;  %v1145_v15 = vld [vmem:[%s2333_s1 + $0x84] sm:$0xf0] }
   0x5   :  { %198 = vmatpush.bf16.msra.mxu1 %v1172_v7  ;;  %v1175_v16 = vld [vmem:[%s2333_s1 + $0xb0] sm:$0xf]  ;;  %v1144_v17 = vor.u32 %v1495_v13, %v1143_v12  ;;  %v1502_v18 = vld [vmem:[%s2333_s1 + $0xb8] sm:$0xf0]  ;;  %v1148_v19 = vor.u32 %v1494_v14, %v1145_v15  ;;  %v1131_v20 = vld [vmem:[%s2333_s1 + $0x60] sm:$0xf] }
   0x6   :  { %v1492_v21 = vld [vmem:[%s2333_s1 + $0x68] sm:$0xf0]  ;;  %v1176_v22 = vor.u32 %v1502_v18, %v1175_v16  ;;  %v1163_v23 = vld [vmem:[%s2333_s1 + $0x98] sm:$0xf]  ;;  %v1491_v24 = vld [vmem:[%s2333_s1 + $0x64] sm:$0xf] }
   0x7   :  { %v1133_v25 = vld [vmem:[%s2333_s1 + $0x6c] sm:$0xf0]  ;;  %v1499_v26 = vld [vmem:[%s2333_s1 + $0xa0] sm:$0xf0]  ;;  %v1132_v28 = vor.u32 %v1492_v21, %v1131_v20  ;;  %v1151_v29 = vld [vmem:[%s2333_s1 + $0x80] sm:$0xf] }
   0x8   :  { %186 = vmatpush.bf16.msra.mxu0 %v1156_v10  ;;  %211 = vmatpush.bf16.msra.mxu2 %v1176_v22  ;;  %v1164_v27 = vor.u32 %v1499_v26, %v1163_v23  ;;  %v1496_v30 = vld [vmem:[%s2333_s1 + $0x88] sm:$0xf0]  ;;  %v1136_v31 = vor.u32 %v1491_v24, %v1133_v25  ;;  %v1119_v32 = vld [vmem:[%s2333_s1 + $0x48] sm:$0xf]  ;;  %v1489_v33 = vld [vmem:[%s2333_s1 + $0x50] sm:$0xf0] }
   0x9   :  { %199 = vmatpush.bf16.msra.mxu1 %v1160_v11  ;;  %v1488_v34 = vld [vmem:[%s2333_s1 + $0x4c] sm:$0xf]  ;;  %v1121_v35 = vld [vmem:[%s2333_s1 + $0x54] sm:$0xf0]  ;;  %14 = vst [vmem:[#allocation2] sm:$0x3] %v1616_v36  ;;  %v1152_v37 = vor.u32 %v1496_v30, %v1151_v29  ;;  %v1120_v38 = vor.u32 %v1489_v33, %v1119_v32 }
   0xa   :  { %v1139_v39 = vld [vmem:[%s2333_s1 + $0x68] sm:$0xf]  ;;  %v1493_v40 = vld [vmem:[%s2333_s1 + $0x70] sm:$0xf0]  ;;  %v1124_v41 = vor.u32 %v1488_v34, %v1121_v35  ;;  %v1107_v42 = vld [vmem:[%s2333_s1 + $0x30] sm:$0xf] }
   0xb   :  { %v1486_v43 = vld [vmem:[%s2333_s1 + $0x38] sm:$0xf0]  ;;  %v1485_v44 = vld [vmem:[%s2333_s1 + $0x34] sm:$0xf]  ;;  %v1109_v45 = vld [vmem:[%s2333_s1 + $0x3c] sm:$0xf0]  ;;  %v1140_v46 = vor.u32 %v1493_v40, %v1139_v39 }
   0xc   :  { %187 = vmatpush.bf16.msra.mxu0 %v1144_v17  ;;  %212 = vmatpush.bf16.msra.mxu2 %v1164_v27  ;;  %v1108_v47 = vor.u32 %v1486_v43, %v1107_v42  ;;  %v1127_v48 = vld [vmem:[%s2333_s1 + $0x50] sm:$0xf]  ;;  %v1490_v49 = vld [vmem:[%s2333_s1 + $0x58] sm:$0xf0]  ;;  %v1112_v50 = vor.u32 %v1485_v44, %v1109_v45  ;;  %v1095_v51 = vld [vmem:[%s2333_s1 + $0x18] sm:$0xf] }
   0xd   :  { %200 = vmatpush.bf16.msra.mxu1 %v1148_v19  ;;  %v1483_v52 = vld [vmem:[%s2333_s1 + $0x20] sm:$0xf0]  ;;  %v1482_v53 = vld [vmem:[%s2333_s1 + $0x1c] sm:$0xf]  ;;  %v1097_v54 = vld [vmem:[%s2333_s1 + $0x24] sm:$0xf0]  ;;  %v1128_v55 = vor.u32 %v1490_v49, %v1127_v48 }
   0xe   :  { %v1096_v56 = vor.u32 %v1483_v52, %v1095_v51  ;;  %v1115_v57 = vld [vmem:[%s2333_s1 + $0x38] sm:$0xf]  ;;  %v1487_v58 = vld [vmem:[%s2333_s1 + $0x40] sm:$0xf0]  ;;  %v1100_v59 = vor.u32 %v1482_v53, %v1097_v54  ;;  %v1083_v60 = vld [vmem:[%s2333_s1] sm:$0xf] }
   0xf   :  { %v1480_v61 = vld [vmem:[%s2333_s1 + $0x8] sm:$0xf0]  ;;  %v1479_v62 = vld [vmem:[%s2333_s1 + $0x4] sm:$0xf]  ;;  %v1085_v63 = vld [vmem:[%s2333_s1 + $0xc] sm:$0xf0]  ;;  %v1116_v0 = vor.u32 %v1487_v58, %v1115_v57 }
  0x10   :  { %188 = vmatpush.bf16.msra.mxu0 %v1132_v28  ;;  %213 = vmatpush.bf16.msra.mxu2 %v1152_v37  ;;  %v1084_v1 = vor.u32 %v1480_v61, %v1083_v60  ;;  %v1769_v2 = vld [vmem:[#allocation2] sm:$0x3]  ;;  %v1484_v4 = vld [vmem:[%s2333_s1 + $0x28] sm:$0xf0]  ;;  %v1088_v5 = vor.u32 %v1479_v62, %v1085_v63  ;;  %v1091_v8 = vld [vmem:[%s2333_s1 + $0x8] sm:$0xf] }
  0x11   :  { %201 = vmatpush.bf16.msra.mxu1 %v1136_v31  ;;  %v1103_v3 = vld [vmem:[%s2333_s1 + $0x20] sm:$0xf]  ;;  %v16_v6 = vpack.c.bf16 %v1769_v2, %v1769_v2  ;;  %v1481_v9 = vld [vmem:[%s2333_s1 + $0x10] sm:$0xf0]  ;;  %v1265_v12 = vld [vmem:[%s2333_s1 + $0xa8] sm:$0xf] }
  0x12   :  { %v1104_v7 = vor.u32 %v1484_v4, %v1103_v3  ;;  %v1092_v10 = vor.u32 %v1481_v9, %v1091_v8  ;;  %v1788_v11 = vld [vmem:[%s2334_s2] sm:$0x7]  ;;  %v1525_v13 = vld [vmem:[%s2333_s1 + $0xb0] sm:$0xf0]  ;;  %v1524_v14 = vld [vmem:[%s2333_s1 + $0xac] sm:$0xf] }
  0x13   :  { %v1266_v15 = vor.u32 %v1525_v13, %v1265_v12  ;;  %v1267_v16 = vld [vmem:[%s2333_s1 + $0xb4] sm:$0xf0]  ;;  %v1273_v17 = vld [vmem:[%s2333_s1 + $0xb0] sm:$0xf]  ;;  %v1526_v18 = vld [vmem:[%s2333_s1 + $0xb8] sm:$0xf0] }
  0x14   :  { %189 = vmatpush.bf16.msra.mxu0 %v1120_v38  ;;  %214 = vmatpush.bf16.msra.mxu2 %v1140_v46  ;;  %v1270_v19 = vor.u32 %v1524_v14, %v1267_v16  ;;  %v1274_v20 = vor.u32 %v1526_v18, %v1273_v17  ;;  %v51_v21 = vperm.slane %v1788_v11, 0  ;;  %v1812_v22 = vld [vmem:[%s2335_s0] sm:$0x3f]  ;;  %v52_v23 = vperm.slane %v1788_v11, 1  ;;  %v1253_v24 = vld [vmem:[%s2333_s1 + $0x90] sm:$0xf] }
  0x15   :  { %202 = vmatpush.bf16.msra.mxu1 %v1124_v41  ;;  %449 = vmatpush.bf16.msra.mxu3 %v1266_v15  ;;  %v1522_v25 = vld [vmem:[%s2333_s1 + $0x98] sm:$0xf0]  ;;  %v1521_v26 = vld [vmem:[%s2333_s1 + $0x94] sm:$0xf]  ;;  %v1255_v28 = vld [vmem:[%s2333_s1 + $0x9c] sm:$0xf0] }
  0x16   :  { %v1254_v27 = vor.u32 %v1522_v25, %v1253_v24  ;;  %v1261_v29 = vld [vmem:[%s2333_s1 + $0x98] sm:$0xf]  ;;  %v1523_v30 = vld [vmem:[%s2333_s1 + $0xa0] sm:$0xf0]  ;;  %v1258_v31 = vor.u32 %v1521_v26, %v1255_v28  ;;  %v246_v34 = vrot.slane %v1812_v22, 2 }
  0x17   :  { %v1262_v32 = vor.u32 %v1523_v30, %v1261_v29  ;;  %v1241_v37 = vld [vmem:[%s2333_s1 + $0x78] sm:$0xf]  ;;  %v1519_v38 = vld [vmem:[%s2333_s1 + $0x80] sm:$0xf0]  ;;  %v1518_v41 = vld [vmem:[%s2333_s1 + $0x7c] sm:$0xf] }
  0x18   :  { %190 = vmatpush.bf16.msra.mxu0 %v1108_v47  ;;  %215 = vmatpush.bf16.msra.mxu2 %v1128_v55  ;;  %v1242_v40 = vor.u32 %v1519_v38, %v1241_v37  ;;  %v1243_v42 = vld [vmem:[%s2333_s1 + $0x84] sm:$0xf0]  ;;  %v1249_v43 = vld [vmem:[%s2333_s1 + $0x80] sm:$0xf]  ;;  %v1520_v46 = vld [vmem:[%s2333_s1 + $0x88] sm:$0xf0] }
  0x19   :  { %203 = vmatpush.bf16.msra.mxu1 %v1112_v50  ;;  %450 = vmatpush.bf16.msra.mxu3 %v1254_v27  ;;  %v1246_v45 = vor.u32 %v1518_v41, %v1243_v42  ;;  %v1250_v48 = vor.u32 %v1520_v46, %v1249_v43  ;;  %v1229_v50 = vld [vmem:[%s2333_s1 + $0x60] sm:$0xf]  ;;  %v1516_v51 = vld [vmem:[%s2333_s1 + $0x68] sm:$0xf0]  ;;  %v1515_v54 = vld [vmem:[%s2333_s1 + $0x64] sm:$0xf] }
  0x1a   :  { %v1230_v53 = vor.u32 %v1516_v51, %v1229_v50  ;;  %v1231_v55 = vld [vmem:[%s2333_s1 + $0x6c] sm:$0xf0]  ;;  %v1237_v57 = vld [vmem:[%s2333_s1 + $0x68] sm:$0xf]  ;;  %v1517_v58 = vld [vmem:[%s2333_s1 + $0x70] sm:$0xf0] }
  0x1b   :  { %v1238_v60 = vor.u32 %v1517_v58, %v1237_v57  ;;  %v1217_v62 = vld [vmem:[%s2333_s1 + $0x48] sm:$0xf]  ;;  %v1513_v63 = vld [vmem:[%s2333_s1 + $0x50] sm:$0xf0]  ;;  %v1219_v3 = vld [vmem:[%s2333_s1 + $0x54] sm:$0xf0] }
  0x1c   :  { %191 = vmatpush.bf16.msra.mxu0 %v1096_v56  ;;  %216 = vmatpush.bf16.msra.mxu2 %v1116_v0  ;;  %v1234_v56 = vor.u32 %v1515_v54, %v1231_v55  ;;  %v1512_v0 = vld [vmem:[%s2333_s1 + $0x4c] sm:$0xf]  ;;  %v1225_v4 = vld [vmem:[%s2333_s1 + $0x50] sm:$0xf]  ;;  %v1510_v12 = vld [vmem:[%s2333_s1 + $0x38] sm:$0xf0] }
  0x1d   :  { %204 = vmatpush.bf16.msra.mxu1 %v1100_v59  ;;  %451 = vmatpush.bf16.msra.mxu3 %v1242_v40  ;;  %v1509_v13 = vld [vmem:[%s2333_s1 + $0x34] sm:$0xf]  ;;  %v1207_v17 = vld [vmem:[%s2333_s1 + $0x3c] sm:$0xf0]  ;;  %v1507_v25 = vld [vmem:[%s2333_s1 + $0x20] sm:$0xf0] }
  0x1e   :  { %v1506_v26 = vld [vmem:[%s2333_s1 + $0x1c] sm:$0xf]  ;;  %v1195_v28 = vld [vmem:[%s2333_s1 + $0x24] sm:$0xf0]  ;;  %v1201_v29 = vld [vmem:[%s2333_s1 + $0x20] sm:$0xf] }
  0x1f   :  { %v1198_v30 = vor.u32 %v1506_v26, %v1195_v28  ;;  %v1503_v37 = vld [vmem:[%s2333_s1 + $0x4] sm:$0xf]  ;;  %v1183_v38 = vld [vmem:[%s2333_s1 + $0xc] sm:$0xf0]  ;;  %v1505_v42 = vld [vmem:[%s2333_s1 + $0x10] sm:$0xf0] }
  0x20   :  { %192 = vmatpush.bf16.msra.mxu0 %v1084_v1  ;;  %217 = vmatpush.bf16.msra.mxu2 %v1104_v7  ;;  %v1218_v1 = vor.u32 %v1513_v63, %v1217_v62  ;;  %v1186_v41 = vor.u32 %v1503_v37, %v1183_v38  ;;  %v269_v58 = vrot.slane %v1812_v22, 4 }
  0x21   :  { %205 = vmatpush.bf16.msra.mxu1 %v1088_v5  ;;  %452 = vmatpush.bf16.msra.mxu3 %v1230_v53  ;;  %v1514_v5 = vld [vmem:[%s2333_s1 + $0x58] sm:$0xf0] }
  0x22   :  { %v1226_v7 = vor.u32 %v1514_v5, %v1225_v4 }
  0x23   :  { %193 = vmatmul.bf16.vlgmr.msra.gmra.mxu0 %v16_v6 }
  0x24   :  { %206 = vmatmul.bf16.vlgmr.msra.gmra.mxu1 %v16_v6  ;;  %218 = vmatpush.bf16.msra.mxu2 %v1092_v10  ;;  %v1205_v10 = vld [vmem:[%s2333_s1 + $0x30] sm:$0xf] }
  0x25   :  { %462 = vmatpush.bf16.msrb.mxu0 %v1270_v19  ;;  %475 = vmatpush.bf16.msrb.mxu1 %v1274_v20  ;;  %v1206_v16 = vor.u32 %v1510_v12, %v1205_v10  ;;  %v1210_v19 = vor.u32 %v1509_v13, %v1207_v17  ;;  %v1213_v20 = vld [vmem:[%s2333_s1 + $0x38] sm:$0xf]  ;;  %v1963_v10 = vld [vmem:[%s2334_s2] sm:$0x7] }
  0x26   :  { %453 = vmatpush.bf16.msra.mxu3 %v1218_v1  ;;  %v316_v12 = vperm.slane %v1963_v10, 1  ;;  %v315_v26 = vperm.slane %v1963_v10, 0 }
  0x27   :  { %219 = vmatmul.bf16.vlgmr.msra.gmra.mxu2 %v16_v6  ;;  %v1222_v6 = vor.u32 %v1512_v0, %v1219_v3 }
  0x29   :  { %463 = vmatpush.bf16.msrb.mxu0 %v1258_v31  ;;  %476 = vmatpush.bf16.msrb.mxu1 %v1262_v32  ;;  %v1508_v31 = vld [vmem:[%s2333_s1 + $0x28] sm:$0xf0]  ;;  %v1181_v32 = vld [vmem:[%s2333_s1] sm:$0xf] }
  0x2a   :  { %454 = vmatpush.bf16.msra.mxu3 %v1206_v16  ;;  %v1548_v16 = vld [vmem:[%s2333_s1 + $0xac] sm:$0xf] }
  0x2d   :  { %464 = vmatpush.bf16.msrb.mxu0 %v1246_v45  ;;  %477 = vmatpush.bf16.msrb.mxu1 %v1250_v48 }
  0x31   :  { %465 = vmatpush.bf16.msrb.mxu0 %v1234_v56  ;;  %478 = vmatpush.bf16.msrb.mxu1 %v1238_v60 }
  0x35   :  { %466 = vmatpush.bf16.msrb.mxu0 %v1222_v6  ;;  %479 = vmatpush.bf16.msrb.mxu1 %v1226_v7 }
  0x39   :  { %467 = vmatpush.bf16.msrb.mxu0 %v1210_v19  ;;  %v1367_v19 = vld [vmem:[%s2333_s1 + $0xb4] sm:$0xf0] }
  0x3d   :  { %468 = vmatpush.bf16.msrb.mxu0 %v1198_v30  ;;  %v1546_v30 = vld [vmem:[%s2333_s1 + $0x98] sm:$0xf0] }
  0x41   :  { %469 = vmatpush.bf16.msrb.mxu0 %v1186_v41  ;;  %v1341_v41 = vld [vmem:[%s2333_s1 + $0x78] sm:$0xf] }
  0xa0   :  { %v194_v33 = vpop.f32.mrf.mxu0 }
  0xa1   :  { %v195_v35 = vadd.f32 %v194_v33, %v51_v21  ;;  %v207_v36 = vpop.f32.mrf.mxu1  ;;  %v1511_v21 = vld [vmem:[%s2333_s1 + $0x40] sm:$0xf0]  ;;  %v1504_v33 = vld [vmem:[%s2333_s1 + $0x8] sm:$0xf0] }
  0xa2   :  { %v208_v39 = vadd.f32 %v207_v36, %v52_v23  ;;  %v1193_v23 = vld [vmem:[%s2333_s1 + $0x18] sm:$0xf]  ;;  %v1214_v24 = vor.u32 %v1511_v21, %v1213_v20  ;;  %v1182_v36 = vor.u32 %v1504_v33, %v1181_v32  ;;  %v1373_v20 = vld [vmem:[%s2333_s1 + $0xb0] sm:$0xf]  ;;  %v1355_v33 = vld [vmem:[%s2333_s1 + $0x9c] sm:$0xf0] }
  0xa3   :  { %v225_v44 = vadd.f32 %v1812_v22, %v195_v35  ;;  %v1194_v27 = vor.u32 %v1507_v25, %v1193_v23  ;;  %v1202_v35 = vor.u32 %v1508_v31, %v1201_v29  ;;  %v1550_v25 = vld [vmem:[%s2333_s1 + $0xb8] sm:$0xf0]  ;;  %v1353_v29 = vld [vmem:[%s2333_s1 + $0x90] sm:$0xf]  ;;  %v1545_v31 = vld [vmem:[%s2333_s1 + $0x94] sm:$0xf] }
  0xa4   :  { %v248_v47 = vadd.f32 %v246_v34, %v208_v39  ;;  %480 = vmatpush.bf16.msrb.mxu1 %v1214_v24  ;;  %v1189_v39 = vld [vmem:[%s2333_s1 + $0x8] sm:$0xf]  ;;  %v1370_v24 = vor.u32 %v1548_v16, %v1367_v19  ;;  %v1354_v32 = vor.u32 %v1546_v30, %v1353_v29  ;;  %v1358_v37 = vor.u32 %v1545_v31, %v1355_v33  ;;  %v1533_v16 = vld [vmem:[%s2333_s1 + $0x34] sm:$0xf]  ;;  %v1307_v19 = vld [vmem:[%s2333_s1 + $0x3c] sm:$0xf0] }
  0xa5   :  { %v1177_v49 = vmul.f32 -1.442695, %v225_v44  ;;  %455 = vmatpush.bf16.msra.mxu3 %v1194_v27  ;;  %v1190_v46 = vor.u32 %v1505_v42, %v1189_v39  ;;  %v1374_v27 = vor.u32 %v1550_v25, %v1373_v20  ;;  %v1543_v42 = vld [vmem:[%s2333_s1 + $0x80] sm:$0xf0]  ;;  %v1313_v20 = vld [vmem:[%s2333_s1 + $0x38] sm:$0xf] }
  0xa6   :  { %v1178_v52 = vmul.f32 -1.442695, %v248_v47  ;;  %v53_v47 = vperm.slane %v1788_v11, 2  ;;  %v1530_v29 = vld [vmem:[%s2333_s1 + $0x1c] sm:$0xf] }
  0xa7   :  { %1576 = vpow2.f32 %v1177_v49  ;;  %741 = vmatpush.bf16.msra.mxu0 %v1374_v27  ;;  %v1293_v27 = vld [vmem:[%s2333_s1 + $0x18] sm:$0xf]  ;;  %v1295_v31 = vld [vmem:[%s2333_s1 + $0x24] sm:$0xf0] }
  0xa8   :  { %1578 = vpow2.f32 %v1178_v52  ;;  %v196_v59 = vpop.f32.mrf.mxu0  ;;  %481 = vmatpush.bf16.msrb.mxu1 %v1202_v35  ;;  %v1547_v35 = vld [vmem:[%s2333_s1 + $0xa0] sm:$0xf0]  ;;  %v1298_v33 = vor.u32 %v1530_v29, %v1295_v31  ;;  %v1461_v31 = vld [vmem:[%s2333_s1 + $0x98] sm:$0xf] }
  0xa9   :  { %v209_v61 = vpop.f32.mrf.mxu1  ;;  %456 = vmatpush.bf16.msra.mxu3 %v1182_v36 }
  0xaa   :  { %v220_v9 = vpop.f32.mrf.mxu2 }
  0xab   :  { %v221_v54 = vadd.f32 %v220_v9, %v53_v47  ;;  %v1349_v47 = vld [vmem:[%s2333_s1 + $0x80] sm:$0xf] }
  0xac   :  { %482 = vmatpush.bf16.msrb.mxu1 %v1190_v46  ;;  %v1343_v46 = vld [vmem:[%s2333_s1 + $0x84] sm:$0xf0] }
  0xad   :  { %v1577_v8 = vpop.eup %1576  ;;  %728 = vmatpush.bf16.msrb.mxu3 %v1370_v24  ;;  %v1535_v24 = vld [vmem:[%s2333_s1 + $0x40] sm:$0xf0] }
  0xae   :  { %v1579_v14 = vpop.eup %1578  ;;  %v229_v15 = vadd.f32 1.0, %v1577_v8 }
  0xaf   :  { %v1901_v18 = vadd.f32 1.0, %v1579_v14  ;;  %v1365_v14 = vld [vmem:[%s2333_s1 + $0xa8] sm:$0xf] }
  0xb0   :  { %1580 = vrcp.f32 %v229_v15  ;;  %v241_v50 = vand.u32 2147483648, %v229_v15  ;;  %v239_v52 = vand.u32 2147483647, %v229_v15  ;;  %vm235_vm1 = vweird.f32 %v229_v15 }
  0xb1   :  { %1582 = vrcp.f32 %v1901_v18  ;;  %vm258_vm4 = vweird.f32 %v1901_v18  ;;  %v264_v60 = vand.u32 2147483648, %v1901_v18  ;;  %v262_v62 = vand.u32 2147483647, %v1901_v18  ;;  %729 = vmatpush.bf16.msrb.mxu3 %v1358_v37 }
  0xb2   :  { %v222_v34 = vpop.f32.mrf.mxu2  ;;  %v242_v56 = vor.u32 1.1754944e-38, %v241_v50  ;;  %vm240_vm3 = vcmp.eq.f32.partialorder %v239_v52, 8.507059e+37 }
  0xb3   :  { %v265_v1 = vor.u32 1.1754944e-38, %v264_v60  ;;  %vm263_vm7 = vcmp.eq.f32.partialorder %v262_v62, 8.507059e+37  ;;  %v1361_v34 = vld [vmem:[%s2333_s1 + $0x98] sm:$0xf] }
  0xb4   :  { %v1362_v38 = vor.u32 %v1547_v35, %v1361_v34  ;;  %v1532_v34 = vld [vmem:[%s2333_s1 + $0x28] sm:$0xf0]  ;;  %v1281_v35 = vld [vmem:[%s2333_s1] sm:$0xf] }
  0xb6   :  { %v1581_v40 = vpop.eup %1580  ;;  %742 = vmatpush.bf16.msra.mxu0 %v1362_v38  ;;  %v1528_v38 = vld [vmem:[%s2333_s1 + $0x8] sm:$0xf0] }
  0xb7   :  { %v1583_v43 = vpop.eup %1582  ;;  %v231_v44 = vmul.f32 %v1581_v40, %v229_v15  ;;  %vm236_vm0 = vweird.f32 %v1581_v40  ;;  %v1549_v15 = vld [vmem:[%s2333_s1 + $0xb0] sm:$0xf0] }
  0xb8   :  { %v254_v45 = vmul.f32 %v1583_v43, %v1901_v18  ;;  %vm237_vm2 = vmor %vm235_vm1, %vm236_vm0  ;;  %vm259_vm5 = vweird.f32 %v1583_v43  ;;  %v1366_v18 = vor.u32 %v1549_v15, %v1365_v14  ;;  %v1305_v14 = vld [vmem:[%s2333_s1 + $0x30] sm:$0xf]  ;;  %v1534_v15 = vld [vmem:[%s2333_s1 + $0x38] sm:$0xf0] }
  0xb9   :  { %v232_v48 = vsub.f32 1.0, %v231_v44  ;;  %vm260_vm6 = vmor %vm258_vm4, %vm259_vm5 }
  0xba   :  { %v255_v49 = vsub.f32 1.0, %v254_v45  ;;  %715 = vmatpush.bf16.msrb.mxu2 %v1366_v18  ;;  %v1342_v45 = vor.u32 %v1543_v42, %v1341_v41  ;;  %v1306_v18 = vor.u32 %v1534_v15, %v1305_v14  ;;  %v1282_v41 = vor.u32 %v1528_v38, %v1281_v35  ;;  %v1467_v14 = vld [vmem:[%s2333_s1 + $0xb4] sm:$0xf0]  ;;  %v1473_v15 = vld [vmem:[%s2333_s1 + $0xb0] sm:$0xf] }
  0xbb   :  { %v233_v51 = vmul.f32 %v1581_v40, %v232_v48  ;;  %v1544_v48 = vld [vmem:[%s2333_s1 + $0x88] sm:$0xf0] }
  0xbc   :  { %v256_v53 = vmul.f32 %v1583_v43, %v255_v49  ;;  %v1350_v52 = vor.u32 %v1544_v48, %v1349_v47 }
  0xbd   :  { %v234_v55 = vadd.f32 %v1581_v40, %v233_v51 }
  0xbe   :  { %v257_v59 = vadd.f32 %v1583_v43, %v256_v53  ;;  %716 = vmatpush.bf16.msrb.mxu2 %v1354_v32  ;;  %743 = vmatpush.bf16.msra.mxu0 %v1350_v52  ;;  %v1301_v32 = vld [vmem:[%s2333_s1 + $0x20] sm:$0xf] }
  0xbf   :  { %v238_v57 = vsel %vm237_vm2, %v1581_v40, %v234_v55  ;;  %v1540_v55 = vld [vmem:[%s2333_s1 + $0x68] sm:$0xf0]  ;;  %v1302_v37 = vor.u32 %v1532_v34, %v1301_v32  ;;  %v1571_v32 = vld [vmem:[%s2333_s1 + $0xa0] sm:$0xf0] }
  0xc0   :  { %v243_v11 = vsel %vm240_vm3, %v242_v56, %v238_v57  ;;  %v261_v0 = vsel %vm260_vm6, %v1583_v43, %v257_v59  ;;  %v1542_v43 = vld [vmem:[%s2333_s1 + $0x7c] sm:$0xf]  ;;  %v1539_v57 = vld [vmem:[%s2333_s1 + $0x64] sm:$0xf]  ;;  %v1462_v35 = vor.u32 %v1571_v32, %v1461_v31  ;;  %v1395_v31 = vld [vmem:[%s2333_s1 + $0x24] sm:$0xf0] }
  0xc1   :  { %v268_v61 = vmul.f32 %v243_v11, %v221_v54  ;;  %v266_v3 = vsel %vm263_vm7, %v265_v1, %v261_v0  ;;  %v1346_v51 = vor.u32 %v1542_v43, %v1343_v46  ;;  %v1329_v54 = vld [vmem:[%s2333_s1 + $0x60] sm:$0xf]  ;;  %v1337_v11 = vld [vmem:[%s2333_s1 + $0x68] sm:$0xf] }
  0xc2   :  { %v273_v4 = vsub.f32 1.0, %v266_v3  ;;  %v275_v6 = vmul.f32 %v266_v3, %v1769_v2  ;;  %v1968_v2 = vld [vmem:[%s2335_s0 + $0x6] sm:$0x3f]  ;;  %717 = vmatpush.bf16.msrb.mxu2 %v1342_v45  ;;  %v1330_v56 = vor.u32 %v1540_v55, %v1329_v54  ;;  %v1537_v3 = vld [vmem:[%s2333_s1 + $0x50] sm:$0xf0] }
  0xc3   :  { %v271_v63 = vadd.f32 %v269_v58, %v268_v61  ;;  %v511_v13 = vrot.slane %v1968_v2, 2  ;;  %730 = vmatpush.bf16.msrb.mxu3 %v1346_v51  ;;  %v1331_v58 = vld [vmem:[%s2333_s1 + $0x6c] sm:$0xf0]  ;;  %v1541_v61 = vld [vmem:[%s2333_s1 + $0x70] sm:$0xf0]  ;;  %v317_v51 = vperm.slane %v1963_v10, 2 }
  0xc4   :  { %v1334_v60 = vor.u32 %v1539_v57, %v1331_v58  ;;  %v1338_v0 = vor.u32 %v1541_v61, %v1337_v11  ;;  %v1317_v1 = vld [vmem:[%s2333_s1 + $0x48] sm:$0xf]  ;;  %v534_v57 = vrot.slane %v1968_v2, 4  ;;  %v1401_v32 = vld [vmem:[%s2333_s1 + $0x20] sm:$0xf] }
  0xc5   :  { %1584 = vtanh.f32 %v271_v63  ;;  %v1289_v43 = vld [vmem:[%s2333_s1 + $0x8] sm:$0xf] }
  0xc6   :  { %718 = vmatpush.bf16.msrb.mxu2 %v1330_v56  ;;  %744 = vmatpush.bf16.msra.mxu0 %v1338_v0 }
  0xc7   :  { %731 = vmatpush.bf16.msrb.mxu3 %v1334_v60 }
  0xcb   :  { %v1585_v5 = vpop.eup %1584 }
  0xcc   :  { %v274_v22 = vmul.f32 %v1585_v5, %v273_v4  ;;  %v1536_v4 = vld [vmem:[%s2333_s1 + $0x4c] sm:$0xf]  ;;  %v1319_v5 = vld [vmem:[%s2333_s1 + $0x54] sm:$0xf0] }
  0xce   :  { %v276_v7 = vadd.f32 %v275_v6, %v274_v22  ;;  %v1318_v22 = vor.u32 %v1537_v3, %v1317_v1  ;;  %v1322_v6 = vor.u32 %v1536_v4, %v1319_v5 }
  0xd0   :  { %277 = vst [vmem:[#allocation2] sm:$0x3] %v276_v7  ;;  %719 = vmatpush.bf16.msrb.mxu2 %v1318_v22  ;;  %732 = vmatpush.bf16.msrb.mxu3 %v1322_v6 }
  0xd1   :  { %278 = vst [vmem:[%s2336_s3] sm:$0x3] %v276_v7  ;;  %v1325_v7 = vld [vmem:[%s2333_s1 + $0x50] sm:$0xf] }
  0xd4   :  { %720 = vmatpush.bf16.msrb.mxu2 %v1306_v18 }
  0xd7   :  { %v1956_v8 = vld [vmem:[#allocation2] sm:$0x3] }
  0xd8   :  { %v280_v9 = vpack.c.bf16 %v1956_v8, %v1956_v8 }
  0xda   :  { %457 = vmatmul.bf16.vlgmr.msra.gmra.mxu3 %v280_v9  ;;  %470 = vmatmul.bf16.vlgmr.msrb.gmra.mxu0 %v280_v9 }
  0xdb   :  { %483 = vmatmul.bf16.vlgmr.msrb.gmra.mxu1 %v280_v9  ;;  %v1538_v9 = vld [vmem:[%s2333_s1 + $0x58] sm:$0xf0] }
 0x157   :  { %v471_v17 = vpop.f32.mrf.mxu0 }
 0x158   :  { %v472_v21 = vadd.f32 %v471_v17, %v316_v12  ;;  %v1987_v23 = vpop.f32.mrf.mxu1  ;;  %v1326_v12 = vor.u32 %v1538_v9, %v1325_v7  ;;  %v1465_v9 = vld [vmem:[%s2333_s1 + $0xa8] sm:$0xf] }
 0x159   :  { %v485_v58 = vadd.f32 %v1987_v23, %v317_v51 }
 0x15a   :  { %v513_v28 = vadd.f32 %v511_v13, %v472_v21  ;;  %745 = vmatpush.bf16.msra.mxu0 %v1326_v12  ;;  %v1310_v21 = vor.u32 %v1533_v16, %v1307_v19  ;;  %v1572_v12 = vld [vmem:[%s2333_s1 + $0xac] sm:$0xf]  ;;  %v1574_v16 = vld [vmem:[%s2333_s1 + $0xb8] sm:$0xf0] }
 0x15b   :  { %v1470_v19 = vor.u32 %v1572_v12, %v1467_v14  ;;  %v1557_v12 = vld [vmem:[%s2333_s1 + $0x34] sm:$0xf] }
 0x15c   :  { %v1277_v36 = vmul.f32 -1.442695, %v513_v28  ;;  %733 = vmatpush.bf16.msrb.mxu3 %v1310_v21  ;;  %v1531_v28 = vld [vmem:[%s2333_s1 + $0x20] sm:$0xf0] }
 0x15d   :  { %v458_v39 = vpop.f32.mrf.mxu3  ;;  %v1294_v30 = vor.u32 %v1531_v28, %v1293_v27  ;;  %v1570_v27 = vld [vmem:[%s2333_s1 + $0x98] sm:$0xf0]  ;;  %v1569_v28 = vld [vmem:[%s2333_s1 + $0x94] sm:$0xf] }
 0x15e   :  { %1586 = vpow2.f32 %v1277_v36  ;;  %v459_v40 = vadd.f32 %v458_v39, %v315_v26  ;;  %v1314_v26 = vor.u32 %v1535_v24, %v1313_v20  ;;  %v1527_v39 = vld [vmem:[%s2333_s1 + $0x4] sm:$0xf]  ;;  %v1474_v20 = vor.u32 %v1574_v16, %v1473_v15  ;;  %v2174_v24 = vld [vmem:[%s2335_s0 + $0xc] sm:$0x3f]  ;;  %v1407_v16 = vld [vmem:[%s2333_s1 + $0x3c] sm:$0xf0] }
 0x15f   :  { %v473_v44 = vpop.f32.mrf.mxu0  ;;  %721 = vmatpush.bf16.msrb.mxu2 %v1294_v30  ;;  %v1455_v30 = vld [vmem:[%s2333_s1 + $0x9c] sm:$0xf0] }
 0x160   :  { %v490_v49 = vadd.f32 %v1968_v2, %v459_v40  ;;  %v486_v50 = vpop.f32.mrf.mxu1  ;;  %746 = vmatpush.bf16.msra.mxu0 %v1314_v26  ;;  %v1283_v40 = vld [vmem:[%s2333_s1 + $0xc] sm:$0xf0]  ;;  %734 = vmatpush.bf16.msrb.mxu3 %v1298_v33  ;;  %v1529_v44 = vld [vmem:[%s2333_s1 + $0x10] sm:$0xf0]  ;;  %v777_v33 = vrot.slane %v2174_v24, 2  ;;  %v1458_v34 = vor.u32 %v1569_v28, %v1455_v30 }
 0x161   :  { %v1286_v42 = vor.u32 %v1527_v39, %v1283_v40  ;;  %v1290_v47 = vor.u32 %v1529_v44, %v1289_v43  ;;  %v1453_v26 = vld [vmem:[%s2333_s1 + $0x90] sm:$0xf]  ;;  %v1441_v40 = vld [vmem:[%s2333_s1 + $0x78] sm:$0xf]  ;;  %v1566_v43 = vld [vmem:[%s2333_s1 + $0x7c] sm:$0xf] }
 0x162   :  { %v1276_v53 = vmul.f32 -1.442695, %v490_v49  ;;  %v1454_v29 = vor.u32 %v1570_v27, %v1453_v26  ;;  %v1443_v44 = vld [vmem:[%s2333_s1 + $0x84] sm:$0xf0]  ;;  %v1393_v26 = vld [vmem:[%s2333_s1 + $0x18] sm:$0xf] }
 0x163   :  { %722 = vmatpush.bf16.msrb.mxu2 %v1282_v41  ;;  %v1567_v41 = vld [vmem:[%s2333_s1 + $0x80] sm:$0xf0] }
 0x164   :  { %v1587_v59 = vpop.eup %1586  ;;  %1588 = vpow2.f32 %v1276_v53  ;;  %747 = vmatpush.bf16.msra.mxu0 %v1302_v37  ;;  %735 = vmatpush.bf16.msrb.mxu3 %v1286_v42  ;;  %v1442_v42 = vor.u32 %v1567_v41, %v1441_v40  ;;  %v1555_v28 = vld [vmem:[%s2333_s1 + $0x20] sm:$0xf0]  ;;  %v1383_v40 = vld [vmem:[%s2333_s1 + $0xc] sm:$0xf0]  ;;  %v1389_v41 = vld [vmem:[%s2333_s1 + $0x8] sm:$0xf] }
 0x165   :  { %v2048_v62 = vadd.f32 1.0, %v1587_v59  ;;  %v460_v63 = vpop.f32.mrf.mxu3  ;;  %v1394_v30 = vor.u32 %v1555_v28, %v1393_v26 }
 0x167   :  { %1590 = vrcp.f32 %v2048_v62  ;;  %v529_v60 = vand.u32 2147483648, %v2048_v62  ;;  %vm523_vm13 = vweird.f32 %v2048_v62  ;;  %v527_v63 = vand.u32 2147483647, %v2048_v62  ;;  %994 = vmatpush.bf16.msra.mxu2 %v1470_v19 }
 0x168   :  { %748 = vmatpush.bf16.msra.mxu0 %v1290_v47  ;;  %1007 = vmatpush.bf16.msra.mxu3 %v1474_v20  ;;  %v1410_v20 = vor.u32 %v1557_v12, %v1407_v16 }
 0x169   :  { %v530_v1 = vor.u32 1.1754944e-38, %v529_v60  ;;  %vm528_vm15 = vcmp.eq.f32.partialorder %v527_v63, 8.507059e+37 }
 0x16a   :  { %v1589_v13 = vpop.eup %1588 }
 0x16b   :  { %v494_v17 = vadd.f32 1.0, %v1589_v13  ;;  %995 = vmatpush.bf16.msra.mxu2 %v1458_v34  ;;  %v1556_v34 = vld [vmem:[%s2333_s1 + $0x28] sm:$0xf0] }
 0x16c   :  { %1008 = vmatpush.bf16.msra.mxu3 %v1462_v35  ;;  %v1381_v35 = vld [vmem:[%s2333_s1] sm:$0xf] }
 0x16d   :  { %1592 = vrcp.f32 %v494_v17  ;;  %v2087_v25 = vpop.eup %1590  ;;  %v506_v50 = vand.u32 2147483648, %v494_v17  ;;  %v504_v53 = vand.u32 2147483647, %v494_v17  ;;  %vm500_vm9 = vweird.f32 %v494_v17 }
 0x16e   :  { %v519_v36 = vmul.f32 %v2087_v25, %v2048_v62  ;;  %vm524_vm12 = vweird.f32 %v2087_v25 }
 0x16f   :  { %v507_v56 = vor.u32 1.1754944e-38, %v506_v50  ;;  %vm505_vm11 = vcmp.eq.f32.partialorder %v504_v53, 8.507059e+37  ;;  %vm525_vm14 = vmor %vm523_vm13, %vm524_vm12  ;;  %v1568_v50 = vld [vmem:[%s2333_s1 + $0x88] sm:$0xf0] }
 0x170   :  { %v520_v48 = vsub.f32 1.0, %v519_v36 }
 0x172   :  { %v521_v54 = vmul.f32 %v2087_v25, %v520_v48 }
 0x173   :  { %v1593_v45 = vpop.eup %1592 }
 0x174   :  { %v496_v46 = vmul.f32 %v1593_v45, %v494_v17  ;;  %vm501_vm8 = vweird.f32 %v1593_v45  ;;  %v522_v59 = vadd.f32 %v2087_v25, %v521_v54  ;;  %v2166_v17 = vld [vmem:[%s2334_s2] sm:$0x7] }
 0x175   :  { %vm502_vm10 = vmor %vm500_vm9, %vm501_vm8  ;;  %v581_v21 = vperm.slane %v2166_v17, 0  ;;  %v1429_v54 = vld [vmem:[%s2333_s1 + $0x60] sm:$0xf] }
 0x176   :  { %v497_v49 = vsub.f32 1.0, %v496_v46  ;;  %v526_v2 = vsel %vm525_vm14, %v2087_v25, %v522_v59  ;;  %v582_v25 = vperm.slane %v2166_v17, 1  ;;  %v1437_v59 = vld [vmem:[%s2333_s1 + $0x68] sm:$0xf] }
 0x177   :  { %v531_v23 = vsel %vm528_vm15, %v530_v1, %v526_v2  ;;  %v1561_v2 = vld [vmem:[%s2333_s1 + $0x50] sm:$0xf0]  ;;  %v1560_v1 = vld [vmem:[%s2333_s1 + $0x4c] sm:$0xf] }
 0x178   :  { %v498_v52 = vmul.f32 %v1593_v45, %v497_v49  ;;  %v538_v3 = vsub.f32 1.0, %v531_v23  ;;  %v540_v5 = vmul.f32 %v531_v23, %v1956_v8  ;;  %v1573_v8 = vld [vmem:[%s2333_s1 + $0xb0] sm:$0xf0]  ;;  %v1446_v49 = vor.u32 %v1566_v43, %v1443_v44 }
 0x179   :  { %v1466_v13 = vor.u32 %v1573_v8, %v1465_v9  ;;  %v1405_v9 = vld [vmem:[%s2333_s1 + $0x30] sm:$0xf]  ;;  %v1558_v8 = vld [vmem:[%s2333_s1 + $0x38] sm:$0xf0]  ;;  %v1553_v44 = vld [vmem:[%s2333_s1 + $0x10] sm:$0xf0] }
 0x17a   :  { %v499_v55 = vadd.f32 %v1593_v45, %v498_v52  ;;  %996 = vmatpush.bf16.msra.mxu2 %v1446_v49  ;;  %v1406_v15 = vor.u32 %v1558_v8, %v1405_v9  ;;  %v1475_v8 = vld [vmem:[%s2335_s0 + $0x12] sm:$0x3f] }
 0x17b   :  { %981 = vmatpush.bf16.msra.mxu1 %v1466_v13  ;;  %v1043_v16 = vrot.slane %v1475_v8, 2 }
 0x17c   :  { %v503_v11 = vsel %vm502_vm10, %v1593_v45, %v499_v55  ;;  %v1449_v45 = vld [vmem:[%s2333_s1 + $0x80] sm:$0xf]  ;;  %v1564_v55 = vld [vmem:[%s2333_s1 + $0x68] sm:$0xf0] }
 0x17d   :  { %v508_v10 = vsel %vm505_vm11, %v507_v56, %v503_v11  ;;  %v1450_v51 = vor.u32 %v1568_v50, %v1449_v45  ;;  %v1563_v56 = vld [vmem:[%s2333_s1 + $0x64] sm:$0xf] }
 0x17e   :  { %v533_v61 = vmul.f32 %v508_v10, %v485_v58  ;;  %v1430_v58 = vor.u32 %v1564_v55, %v1429_v54  ;;  %v1565_v10 = vld [vmem:[%s2333_s1 + $0x70] sm:$0xf0] }
 0x17f   :  { %982 = vmatpush.bf16.msra.mxu1 %v1454_v29  ;;  %1009 = vmatpush.bf16.msra.mxu3 %v1450_v51  ;;  %v1438_v63 = vor.u32 %v1565_v10, %v1437_v59  ;;  %v1554_v29 = vld [vmem:[%s2333_s1 + $0x1c] sm:$0xf]  ;;  %v800_v59 = vrot.slane %v2174_v24, 4 }
 0x180   :  { %v536_v0 = vadd.f32 %v534_v57, %v533_v61  ;;  %v1431_v57 = vld [vmem:[%s2333_s1 + $0x6c] sm:$0xf0] }
 0x181   :  { %v1434_v11 = vor.u32 %v1563_v56, %v1431_v57 }
 0x182   :  { %1594 = vtanh.f32 %v536_v0  ;;  %v1417_v0 = vld [vmem:[%s2333_s1 + $0x48] sm:$0xf] }
 0x183   :  { %983 = vmatpush.bf16.msra.mxu1 %v1442_v42  ;;  %997 = vmatpush.bf16.msra.mxu2 %v1434_v11  ;;  %v1418_v23 = vor.u32 %v1561_v2, %v1417_v0 }
 0x184   :  { %1010 = vmatpush.bf16.msra.mxu3 %v1438_v63 }
 0x187   :  { %984 = vmatpush.bf16.msra.mxu1 %v1430_v58 }
 0x188   :  { %v1595_v4 = vpop.eup %1594 }
 0x189   :  { %v539_v22 = vmul.f32 %v1595_v4, %v538_v3  ;;  %v1419_v3 = vld [vmem:[%s2333_s1 + $0x54] sm:$0xf0]  ;;  %v1425_v4 = vld [vmem:[%s2333_s1 + $0x50] sm:$0xf] }
 0x18b   :  { %v541_v6 = vadd.f32 %v540_v5, %v539_v22  ;;  %v1562_v5 = vld [vmem:[%s2333_s1 + $0x58] sm:$0xf0]  ;;  %v1422_v22 = vor.u32 %v1560_v1, %v1419_v3  ;;  %985 = vmatpush.bf16.msra.mxu1 %v1418_v23 }
 0x18d   :  { %1278 = vst [vmem:[%s2336_s3 + $0x2] sm:$0x3] %v541_v6  ;;  %998 = vmatpush.bf16.msra.mxu2 %v1422_v22 }
 0x18e   :  { %542 = vst [vmem:[#allocation2] sm:$0x3] %v541_v6  ;;  %v1426_v6 = vor.u32 %v1562_v5, %v1425_v4 }
 0x18f   :  { %986 = vmatpush.bf16.msra.mxu1 %v1406_v15 }
 0x190   :  { %1011 = vmatpush.bf16.msra.mxu3 %v1426_v6 }
 0x191   :  { %999 = vmatpush.bf16.msra.mxu2 %v1410_v20 }
 0x193   :  { %987 = vmatpush.bf16.msra.mxu1 %v1394_v30 }
 0x195   :  { %v2141_v62 = vld [vmem:[#allocation2] sm:$0x3] }
 0x196   :  { %v546_v7 = vpack.c.bf16 %v2141_v62, %v2141_v62 }
 0x198   :  { %723 = vmatmul.bf16.vlgmr.msrb.gmra.mxu2 %v546_v7  ;;  %736 = vmatmul.bf16.vlgmr.msrb.gmra.mxu3 %v546_v7 }
 0x199   :  { %749 = vmatmul.bf16.vlgmr.msra.gmra.mxu0 %v546_v7 }
 0x216   :  { %v2168_v18 = vpop.f32.mrf.mxu0 }
 0x21b   :  { %v724_v36 = vpop.f32.mrf.mxu2  ;;  %v737_v37 = vpop.f32.mrf.mxu3 }
 0x21c   :  { %v725_v38 = vadd.f32 %v724_v36, %v581_v21  ;;  %v738_v39 = vadd.f32 %v737_v37, %v582_v25  ;;  %v1413_v21 = vld [vmem:[%s2333_s1 + $0x38] sm:$0xf]  ;;  %v1559_v25 = vld [vmem:[%s2333_s1 + $0x40] sm:$0xf0]  ;;  %v1552_v36 = vld [vmem:[%s2333_s1 + $0x8] sm:$0xf0]  ;;  %v1402_v37 = vor.u32 %v1556_v34, %v1401_v32 }
 0x21d   :  { %v1414_v27 = vor.u32 %v1559_v25, %v1413_v21 }
 0x21e   :  { %v756_v46 = vadd.f32 %v2174_v24, %v725_v38  ;;  %v779_v47 = vadd.f32 %v777_v33, %v738_v39  ;;  %v752_v48 = vpop.f32.mrf.mxu0  ;;  %v1398_v33 = vor.u32 %v1554_v29, %v1395_v31  ;;  %v1382_v38 = vor.u32 %v1552_v36, %v1381_v35  ;;  %v1551_v39 = vld [vmem:[%s2333_s1 + $0x4] sm:$0xf] }
 0x21f   :  { %1012 = vmatpush.bf16.msra.mxu3 %v1414_v27  ;;  %v1386_v43 = vor.u32 %v1551_v39, %v1383_v40  ;;  %v1390_v48 = vor.u32 %v1553_v44, %v1389_v41 }
 0x220   :  { %v1376_v52 = vmul.f32 -1.442695, %v756_v46  ;;  %v1377_v53 = vmul.f32 -1.442695, %v779_v47  ;;  %1000 = vmatpush.bf16.msra.mxu2 %v1398_v33  ;;  %988 = vmatpush.bf16.msra.mxu1 %v1382_v38 }
 0x222   :  { %1596 = vpow2.f32 %v1376_v52  ;;  %v583_v52 = vperm.slane %v2166_v17, 2 }
 0x223   :  { %1598 = vpow2.f32 %v1377_v53  ;;  %v726_v60 = vpop.f32.mrf.mxu2  ;;  %v739_v61 = vpop.f32.mrf.mxu3  ;;  %1013 = vmatpush.bf16.msra.mxu3 %v1402_v37 }
 0x224   :  { %1001 = vmatpush.bf16.msra.mxu2 %v1386_v43  ;;  %v751_v58 = vadd.f32 %v2168_v18, %v583_v52 }
 0x227   :  { %1014 = vmatpush.bf16.msra.mxu3 %v1390_v48 }
 0x228   :  { %v1597_v7 = vpop.eup %1596 }
 0x229   :  { %v1599_v13 = vpop.eup %1598  ;;  %v760_v14 = vadd.f32 1.0, %v1597_v7  ;;  %v845_v7 = vld [vmem:[%s2334_s2] sm:$0x7] }
 0x22a   :  { %v2263_v19 = vadd.f32 1.0, %v1599_v13  ;;  %v847_v9 = vperm.slane %v845_v7, 0  ;;  %v849_v38 = vperm.slane %v845_v7, 2 }
 0x22b   :  { %1600 = vrcp.f32 %v760_v14  ;;  %v772_v50 = vand.u32 2147483648, %v760_v14  ;;  %v770_v54 = vand.u32 2147483647, %v760_v14  ;;  %vm766_vm1 = vweird.f32 %v760_v14 }
 0x22c   :  { %1602 = vrcp.f32 %v2263_v19  ;;  %v795_v17 = vand.u32 2147483648, %v2263_v19  ;;  %vm789_vm5 = vweird.f32 %v2263_v19  ;;  %v793_v63 = vand.u32 2147483647, %v2263_v19 }
 0x22d   :  { %v773_v57 = vor.u32 1.1754944e-38, %v772_v50  ;;  %vm771_vm3 = vcmp.eq.f32.partialorder %v770_v54, 8.507059e+37 }
 0x22e   :  { %v796_v1 = vor.u32 1.1754944e-38, %v795_v17  ;;  %vm794_vm7 = vcmp.eq.f32.partialorder %v793_v63, 8.507059e+37 }
 0x231   :  { %v1601_v42 = vpop.eup %1600 }
 0x232   :  { %v1603_v45 = vpop.eup %1602  ;;  %v762_v46 = vmul.f32 %v1601_v42, %v760_v14  ;;  %vm767_vm0 = vweird.f32 %v1601_v42  ;;  %v848_v14 = vperm.slane %v845_v7, 1 }
 0x233   :  { %v785_v47 = vmul.f32 %v1603_v45, %v2263_v19  ;;  %vm768_vm2 = vmor %vm766_vm1, %vm767_vm0  ;;  %vm790_vm4 = vweird.f32 %v1603_v45 }
 0x234   :  { %v763_v49 = vsub.f32 1.0, %v762_v46  ;;  %vm791_vm6 = vmor %vm789_vm5, %vm790_vm4 }
 0x235   :  { %v786_v51 = vsub.f32 1.0, %v785_v47 }
 0x236   :  { %v764_v53 = vmul.f32 %v1601_v42, %v763_v49 }
 0x237   :  { %v787_v55 = vmul.f32 %v1603_v45, %v786_v51 }
 0x238   :  { %v765_v56 = vadd.f32 %v1601_v42, %v764_v53 }
 0x239   :  { %v788_v60 = vadd.f32 %v1603_v45, %v787_v55 }
 0x23a   :  { %v769_v11 = vsel %vm768_vm2, %v1601_v42, %v765_v56 }
 0x23b   :  { %v774_v10 = vsel %vm771_vm3, %v773_v57, %v769_v11  ;;  %v792_v2 = vsel %vm791_vm6, %v1603_v45, %v788_v60  ;;  %v1066_v45 = vrot.slane %v1475_v8, 4 }
 0x23c   :  { %v799_v61 = vmul.f32 %v774_v10, %v751_v58  ;;  %v797_v18 = vsel %vm794_vm7, %v796_v1, %v792_v2 }
 0x23d   :  { %v804_v23 = vsub.f32 1.0, %v797_v18  ;;  %v806_v4 = vmul.f32 %v797_v18, %v2141_v62 }
 0x23e   :  { %v802_v0 = vadd.f32 %v800_v59, %v799_v61 }
 0x240   :  { %1604 = vtanh.f32 %v802_v0 }
 0x246   :  { %v1605_v3 = vpop.eup %1604 }
 0x247   :  { %v805_v24 = vmul.f32 %v1605_v3, %v804_v23 }
 0x249   :  { %v807_v5 = vadd.f32 %v806_v4, %v805_v24 }
 0x24b   :  { %808 = vst [vmem:[#allocation2] sm:$0x3] %v807_v5 }
 0x24c   :  { %1378 = vst [vmem:[%s2336_s3 + $0x4] sm:$0x3] %v807_v5 }
 0x252   :  { %v2319_v22 = vld [vmem:[#allocation2] sm:$0x3] }
 0x253   :  { %v812_v6 = vpack.c.bf16 %v2319_v22, %v2319_v22 }
 0x255   :  { %989 = vmatmul.bf16.vlgmr.msra.gmra.mxu1 %v812_v6  ;;  %1002 = vmatmul.bf16.vlgmr.msra.gmra.mxu2 %v812_v6 }
 0x256   :  { %1015 = vmatmul.bf16.vlgmr.msra.gmra.mxu3 %v812_v6 }
 0x2d2   :  { %v990_v62 = vpop.f32.mrf.mxu1 }
 0x2d3   :  { %v991_v12 = vadd.f32 %v990_v62, %v847_v9 }
 0x2d5   :  { %v1022_v13 = vadd.f32 %v1475_v8, %v991_v12 }
 0x2d7   :  { %v1476_v15 = vmul.f32 -1.442695, %v1022_v13 }
 0x2d8   :  { %v1003_v19 = vpop.f32.mrf.mxu2 }
 0x2d9   :  { %1606 = vpow2.f32 %v1476_v15  ;;  %v1004_v20 = vadd.f32 %v1003_v19, %v848_v14  ;;  %v1016_v21 = vpop.f32.mrf.mxu3 }
 0x2da   :  { %v992_v25 = vpop.f32.mrf.mxu1  ;;  %v1017_v47 = vadd.f32 %v1016_v21, %v849_v38 }
 0x2db   :  { %v1045_v26 = vadd.f32 %v1043_v16, %v1004_v20 }
 0x2dd   :  { %v1477_v27 = vmul.f32 -1.442695, %v1045_v26 }
 0x2df   :  { %v1607_v28 = vpop.eup %1606  ;;  %1608 = vpow2.f32 %v1477_v27 }
 0x2e0   :  { %v1026_v29 = vadd.f32 1.0, %v1607_v28  ;;  %v1005_v30 = vpop.f32.mrf.mxu2 }
 0x2e1   :  { %v1018_v31 = vpop.f32.mrf.mxu3 }
 0x2e2   :  { %1610 = vrcp.f32 %v1026_v29  ;;  %v1038_v37 = vand.u32 2147483648, %v1026_v29  ;;  %v1036_v40 = vand.u32 2147483647, %v1026_v29  ;;  %vm1032_vm9 = vweird.f32 %v1026_v29 }
 0x2e4   :  { %v1039_v44 = vor.u32 1.1754944e-38, %v1038_v37  ;;  %vm1037_vm11 = vcmp.eq.f32.partialorder %v1036_v40, 8.507059e+37 }
 0x2e5   :  { %v1609_v32 = vpop.eup %1608 }
 0x2e6   :  { %v1049_v33 = vadd.f32 1.0, %v1609_v32 }
 0x2e8   :  { %v1611_v34 = vpop.eup %1610  ;;  %1612 = vrcp.f32 %v1049_v33  ;;  %v1061_v51 = vand.u32 2147483648, %v1049_v33  ;;  %v1059_v53 = vand.u32 2147483647, %v1049_v33  ;;  %vm1055_vm13 = vweird.f32 %v1049_v33 }
 0x2e9   :  { %v1028_v35 = vmul.f32 %v1611_v34, %v1026_v29  ;;  %vm1033_vm8 = vweird.f32 %v1611_v34 }
 0x2ea   :  { %vm1034_vm10 = vmor %vm1032_vm9, %vm1033_vm8  ;;  %v1062_v56 = vor.u32 1.1754944e-38, %v1061_v51  ;;  %vm1060_vm15 = vcmp.eq.f32.partialorder %v1059_v53, 8.507059e+37 }
 0x2eb   :  { %v1029_v36 = vsub.f32 1.0, %v1028_v35 }
 0x2ed   :  { %v1030_v39 = vmul.f32 %v1611_v34, %v1029_v36 }
 0x2ee   :  { %v1613_v41 = vpop.eup %1612 }
 0x2ef   :  { %v1051_v42 = vmul.f32 %v1613_v41, %v1049_v33  ;;  %v1031_v43 = vadd.f32 %v1611_v34, %v1030_v39  ;;  %vm1056_vm12 = vweird.f32 %v1613_v41 }
 0x2f0   :  { %vm1057_vm14 = vmor %vm1055_vm13, %vm1056_vm12 }
 0x2f1   :  { %v1052_v46 = vsub.f32 1.0, %v1051_v42  ;;  %v1035_v48 = vsel %vm1034_vm10, %v1611_v34, %v1031_v43 }
 0x2f2   :  { %v1040_v49 = vsel %vm1037_vm11, %v1039_v44, %v1035_v48 }
 0x2f3   :  { %v1053_v50 = vmul.f32 %v1613_v41, %v1052_v46  ;;  %v1065_v52 = vmul.f32 %v1040_v49, %v1017_v47 }
 0x2f5   :  { %v1054_v54 = vadd.f32 %v1613_v41, %v1053_v50  ;;  %v1068_v55 = vadd.f32 %v1066_v45, %v1065_v52 }
 0x2f7   :  { %v1058_v57 = vsel %vm1057_vm14, %v1613_v41, %v1054_v54  ;;  %1614 = vtanh.f32 %v1068_v55 }
 0x2f8   :  { %v1063_v58 = vsel %vm1060_vm15, %v1062_v56, %v1058_v57 }
 0x2f9   :  { %v1070_v11 = vsub.f32 1.0, %v1063_v58  ;;  %v1072_v60 = vmul.f32 %v1063_v58, %v2319_v22 }
 0x2fd   :  { %v1615_v59 = vpop.eup %1614 }
 0x2fe   :  { %v1071_v10 = vmul.f32 %v1615_v59, %v1070_v11 }
 0x300   :  { %v1073_v61 = vadd.f32 %v1072_v60, %v1071_v10 }
 0x302   :  { %1074 = vst [vmem:[#allocation2] sm:$0x3] %v1073_v61 }
 0x303   :  { %1478 = vst [vmem:[%s2336_s3 + $0x6] sm:$0x3] %v1073_v61 }

// kernel: nldnn_forward.29
= control target key start
LH: loop header
LB: loop body
LE: loop exit
PB: predicated region body
PF: predicated region fallthrough
CT: control target
= control target key end

     0   :  { %s344_s1 = inlined_call_operand.vmem [shape: bf16[256,128], index: 1, kind: input, shape index: {}]   ;;  %s345_s2 = inlined_call_operand.vmem [shape: f32[1,128], index: 2, kind: input, shape index: {}]   ;;  %s346_s0 = inlined_call_operand.vmem [shape: bf16[8,256], index: 0, kind: input, shape index: {}]   ;;  %s347_s3 = inlined_call_operand.vmem [shape: f32[8,128], index: 3, kind: output, shape index: {}]  }
   0x1   :  { %v257_v0 = vld [vmem:[%s344_s1 + $0x38] sm:$0xff]  ;;  %v256_v2 = vld [vmem:[%s344_s1 + $0x30] sm:$0xff]  ;;  %v255_v4 = vld [vmem:[%s344_s1 + $0x28] sm:$0xff] }
   0x2   :  { %v265_v1 = vld [vmem:[%s344_s1 + $0x78] sm:$0xff]  ;;  %154 = vmatpush.bf16.msra.mxu0 %v257_v0  ;;  %v264_v3 = vld [vmem:[%s344_s1 + $0x70] sm:$0xff]  ;;  %v263_v5 = vld [vmem:[%s344_s1 + $0x68] sm:$0xff] }
   0x3   :  { %167 = vmatpush.bf16.msra.mxu1 %v265_v1  ;;  %v254_v6 = vld [vmem:[%s344_s1 + $0x20] sm:$0xff]  ;;  %v253_v8 = vld [vmem:[%s344_s1 + $0x18] sm:$0xff]  ;;  %v252_v10 = vld [vmem:[%s344_s1 + $0x10] sm:$0xff] }
   0x4   :  { %v262_v7 = vld [vmem:[%s344_s1 + $0x60] sm:$0xff]  ;;  %v261_v9 = vld [vmem:[%s344_s1 + $0x58] sm:$0xff]  ;;  %v260_v11 = vld [vmem:[%s344_s1 + $0x50] sm:$0xff] }
   0x5   :  { %v251_v12 = vld [vmem:[%s344_s1 + $0x8] sm:$0xff]  ;;  %v14_v14 = vld [vmem:[%s346_s0] sm:$0xff] }
   0x6   :  { %155 = vmatpush.bf16.msra.mxu0 %v256_v2  ;;  %v259_v13 = vld [vmem:[%s344_s1 + $0x48] sm:$0xff]  ;;  %v52_v15 = vunpack.c.l.b16 %v14_v14  ;;  %v53_v16 = vunpack.c.h.b16 %v14_v14  ;;  %v250_v17 = vld [vmem:[%s344_s1] sm:$0xff] }
   0x7   :  { %168 = vmatpush.bf16.msra.mxu1 %v264_v3  ;;  %v258_v18 = vld [vmem:[%s344_s1 + $0x40] sm:$0xff] }
   0x8   :  { %v54_v19 = vpack.c.b16 %v52_v15, %v52_v15  ;;  %v55_v20 = vpack.c.b16 %v53_v16, %v53_v16  ;;  %v266_v21 = vld [vmem:[%s345_s2] ss:$0 sm:$0xff] }
   0xa   :  { %156 = vmatpush.bf16.msra.mxu0 %v255_v4 }
   0xb   :  { %169 = vmatpush.bf16.msra.mxu1 %v263_v5 }
   0xe   :  { %157 = vmatpush.bf16.msra.mxu0 %v254_v6 }
   0xf   :  { %170 = vmatpush.bf16.msra.mxu1 %v262_v7 }
  0x12   :  { %158 = vmatpush.bf16.msra.mxu0 %v253_v8 }
  0x13   :  { %171 = vmatpush.bf16.msra.mxu1 %v261_v9 }
  0x16   :  { %159 = vmatpush.bf16.msra.mxu0 %v252_v10 }
  0x17   :  { %172 = vmatpush.bf16.msra.mxu1 %v260_v11 }
  0x1a   :  { %160 = vmatpush.bf16.msra.mxu0 %v251_v12 }
  0x1b   :  { %173 = vmatpush.bf16.msra.mxu1 %v259_v13 }
  0x1e   :  { %161 = vmatpush.bf16.msra.mxu0 %v250_v17 }
  0x1f   :  { %174 = vmatpush.bf16.msra.mxu1 %v258_v18 }
  0x21   :  { %162 = vmatmul.bf16.vlgmr.msra.gmra.mxu0 %v54_v19 }
  0x22   :  { %175 = vmatmul.bf16.vlgmr.msra.gmra.mxu1 %v55_v20 }
  0x9e   :  { %v163_v22 = vpop.f32.mrf.mxu0 }
  0x9f   :  { %v176_v23 = vpop.f32.mrf.mxu1  ;;  %v164_v24 = vadd.f32 %v266_v21, %v163_v22 }
  0xa1   :  { %v177_v25 = vadd.f32 %v176_v23, %v164_v24 }
  0xa3   :  { %v180_v26 = vmax.f32 %v177_v25, 0.0 }
  0xa5   :  { %181 = vst [vmem:[%s347_s3] sm:$0xff] %v180_v26 }
  0xa6   :  { %v165_v27 = vpop.f32.mrf.mxu0 }
  0xa7   :  { %v178_v28 = vpop.f32.mrf.mxu1 }

// kernel: nldnn_forward.32
= control target key start
LH: loop header
LB: loop body
LE: loop exit
PB: predicated region body
PF: predicated region fallthrough
CT: control target
= control target key end

     0   :  { %s343_s1 = inlined_call_operand.vmem [shape: bf16[256,128], index: 1, kind: input, shape index: {}]   ;;  %s344_s2 = inlined_call_operand.vmem [shape: f32[1,128], index: 2, kind: input, shape index: {}]   ;;  %s345_s0 = inlined_call_operand.vmem [shape: bf16[8,256], index: 0, kind: input, shape index: {}]   ;;  %s346_s3 = inlined_call_operand.vmem [shape: f32[8,128], index: 3, kind: output, shape index: {}]  }
   0x1   :  { %v256_v0 = vld [vmem:[%s343_s1 + $0x38] sm:$0xff]  ;;  %v255_v2 = vld [vmem:[%s343_s1 + $0x30] sm:$0xff]  ;;  %v254_v4 = vld [vmem:[%s343_s1 + $0x28] sm:$0xff] }
   0x2   :  { %v264_v1 = vld [vmem:[%s343_s1 + $0x78] sm:$0xff]  ;;  %154 = vmatpush.bf16.msra.mxu0 %v256_v0  ;;  %v263_v3 = vld [vmem:[%s343_s1 + $0x70] sm:$0xff]  ;;  %v262_v5 = vld [vmem:[%s343_s1 + $0x68] sm:$0xff] }
   0x3   :  { %167 = vmatpush.bf16.msra.mxu1 %v264_v1  ;;  %v253_v6 = vld [vmem:[%s343_s1 + $0x20] sm:$0xff]  ;;  %v252_v8 = vld [vmem:[%s343_s1 + $0x18] sm:$0xff]  ;;  %v251_v10 = vld [vmem:[%s343_s1 + $0x10] sm:$0xff] }
   0x4   :  { %v261_v7 = vld [vmem:[%s343_s1 + $0x60] sm:$0xff]  ;;  %v260_v9 = vld [vmem:[%s343_s1 + $0x58] sm:$0xff]  ;;  %v259_v11 = vld [vmem:[%s343_s1 + $0x50] sm:$0xff] }
   0x5   :  { %v250_v12 = vld [vmem:[%s343_s1 + $0x8] sm:$0xff]  ;;  %v14_v14 = vld [vmem:[%s345_s0] sm:$0xff] }
   0x6   :  { %155 = vmatpush.bf16.msra.mxu0 %v255_v2  ;;  %v258_v13 = vld [vmem:[%s343_s1 + $0x48] sm:$0xff]  ;;  %v52_v15 = vunpack.c.l.b16 %v14_v14  ;;  %v53_v16 = vunpack.c.h.b16 %v14_v14  ;;  %v249_v17 = vld [vmem:[%s343_s1] sm:$0xff] }
   0x7   :  { %168 = vmatpush.bf16.msra.mxu1 %v263_v3  ;;  %v257_v18 = vld [vmem:[%s343_s1 + $0x40] sm:$0xff] }
   0x8   :  { %v54_v19 = vpack.c.b16 %v52_v15, %v52_v15  ;;  %v55_v20 = vpack.c.b16 %v53_v16, %v53_v16  ;;  %v265_v21 = vld [vmem:[%s344_s2] ss:$0 sm:$0xff] }
   0xa   :  { %156 = vmatpush.bf16.msra.mxu0 %v254_v4 }
   0xb   :  { %169 = vmatpush.bf16.msra.mxu1 %v262_v5 }
   0xe   :  { %157 = vmatpush.bf16.msra.mxu0 %v253_v6 }
   0xf   :  { %170 = vmatpush.bf16.msra.mxu1 %v261_v7 }
  0x12   :  { %158 = vmatpush.bf16.msra.mxu0 %v252_v8 }
  0x13   :  { %171 = vmatpush.bf16.msra.mxu1 %v260_v9 }
  0x16   :  { %159 = vmatpush.bf16.msra.mxu0 %v251_v10 }
  0x17   :  { %172 = vmatpush.bf16.msra.mxu1 %v259_v11 }
  0x1a   :  { %160 = vmatpush.bf16.msra.mxu0 %v250_v12 }
  0x1b   :  { %173 = vmatpush.bf16.msra.mxu1 %v258_v13 }
  0x1e   :  { %161 = vmatpush.bf16.msra.mxu0 %v249_v17 }
  0x1f   :  { %174 = vmatpush.bf16.msra.mxu1 %v257_v18 }
  0x21   :  { %162 = vmatmul.bf16.vlgmr.msra.gmra.mxu0 %v54_v19 }
  0x22   :  { %175 = vmatmul.bf16.vlgmr.msra.gmra.mxu1 %v55_v20 }
  0x9e   :  { %v163_v22 = vpop.f32.mrf.mxu0 }
  0x9f   :  { %v176_v23 = vpop.f32.mrf.mxu1  ;;  %v164_v24 = vadd.f32 %v265_v21, %v163_v22 }
  0xa1   :  { %v177_v25 = vadd.f32 %v176_v23, %v164_v24 }
  0xa3   :  { %180 = vst [vmem:[%s346_s3] sm:$0xff] %v177_v25 }
  0xa6   :  { %v165_v26 = vpop.f32.mrf.mxu0 }
  0xa7   :  { %v178_v27 = vpop.f32.mrf.mxu1 }

// kernel: nldnn_forward.35
= control target key start
LH: loop header
LB: loop body
LE: loop exit
PB: predicated region body
PF: predicated region fallthrough
CT: control target
= control target key end

     0   :  { %s414_s1 = inlined_call_operand.vmem [shape: bf16[256,128], index: 1, kind: input, shape index: {}]   ;;  %s415_s2 = inlined_call_operand.vmem [shape: f32[1,128], index: 2, kind: input, shape index: {}]   ;;  %s416_s0 = inlined_call_operand.vmem [shape: bf16[24,256], index: 0, kind: input, shape index: {}]   ;;  %s417_s3 = inlined_call_operand.vmem [shape: f32[24,128], index: 3, kind: output, shape index: {}]  }
   0x1   :  { %v293_v0 = vld [vmem:[%s414_s1 + $0x38] sm:$0xff]  ;;  %v292_v2 = vld [vmem:[%s414_s1 + $0x30] sm:$0xff]  ;;  %v291_v4 = vld [vmem:[%s414_s1 + $0x28] sm:$0xff] }
   0x2   :  { %v301_v1 = vld [vmem:[%s414_s1 + $0x78] sm:$0xff]  ;;  %166 = vmatpush.bf16.msra.mxu0 %v293_v0  ;;  %302 = vmatpush.bf16.msra.mxu2 %v293_v0  ;;  %v300_v3 = vld [vmem:[%s414_s1 + $0x70] sm:$0xff]  ;;  %v299_v5 = vld [vmem:[%s414_s1 + $0x68] sm:$0xff] }
   0x3   :  { %184 = vmatpush.bf16.msra.mxu1 %v301_v1  ;;  %310 = vmatpush.bf16.msra.mxu3 %v301_v1  ;;  %v290_v6 = vld [vmem:[%s414_s1 + $0x20] sm:$0xff]  ;;  %v289_v8 = vld [vmem:[%s414_s1 + $0x18] sm:$0xff]  ;;  %v288_v10 = vld [vmem:[%s414_s1 + $0x10] sm:$0xff] }
   0x4   :  { %v298_v7 = vld [vmem:[%s414_s1 + $0x60] sm:$0xff]  ;;  %v297_v9 = vld [vmem:[%s414_s1 + $0x58] sm:$0xff]  ;;  %v296_v11 = vld [vmem:[%s414_s1 + $0x50] sm:$0xff] }
   0x5   :  { %v287_v12 = vld [vmem:[%s414_s1 + $0x8] sm:$0xff]  ;;  %v16_v13 = vld [vmem:[%s416_s0 + $0x10] sm:$0xff]  ;;  %v286_v16 = vld [vmem:[%s414_s1] sm:$0xff] }
   0x6   :  { %167 = vmatpush.bf16.msra.mxu0 %v292_v2  ;;  %303 = vmatpush.bf16.msra.mxu2 %v292_v2  ;;  %v295_v14 = vld [vmem:[%s414_s1 + $0x48] sm:$0xff]  ;;  %v60_v15 = vunpack.c.l.b16 %v16_v13  ;;  %v214_v17 = vld [vmem:[%s416_s0] sm:$0xf]  ;;  %v61_v19 = vunpack.c.h.b16 %v16_v13  ;;  %v284_v21 = vld [vmem:[%s416_s0 + $0x4] sm:$0xf] }
   0x7   :  { %185 = vmatpush.bf16.msra.mxu1 %v300_v3  ;;  %311 = vmatpush.bf16.msra.mxu3 %v300_v3  ;;  %v285_v18 = vld [vmem:[%s416_s0 + $0x4] sm:$0xf0]  ;;  %v294_v20 = vld [vmem:[%s414_s1 + $0x40] sm:$0xff]  ;;  %v216_v22 = vld [vmem:[%s416_s0 + $0x8] sm:$0xf0] }
   0x8   :  { %v215_v23 = vor.u32 %v285_v18, %v214_v17  ;;  %v64_v24 = vpack.c.b16 %v60_v15, %v60_v15  ;;  %v219_v25 = vor.u32 %v284_v21, %v216_v22  ;;  %v65_v26 = vpack.c.b16 %v61_v19, %v61_v19  ;;  %v318_v27 = vld [vmem:[%s415_s2] ss:$0 sm:$0xff] }
   0xa   :  { %168 = vmatpush.bf16.msra.mxu0 %v291_v4  ;;  %304 = vmatpush.bf16.msra.mxu2 %v291_v4 }
   0xb   :  { %186 = vmatpush.bf16.msra.mxu1 %v299_v5  ;;  %312 = vmatpush.bf16.msra.mxu3 %v299_v5 }
   0xe   :  { %169 = vmatpush.bf16.msra.mxu0 %v290_v6  ;;  %305 = vmatpush.bf16.msra.mxu2 %v290_v6 }
   0xf   :  { %187 = vmatpush.bf16.msra.mxu1 %v298_v7  ;;  %313 = vmatpush.bf16.msra.mxu3 %v298_v7 }
  0x12   :  { %170 = vmatpush.bf16.msra.mxu0 %v289_v8  ;;  %306 = vmatpush.bf16.msra.mxu2 %v289_v8 }
  0x13   :  { %188 = vmatpush.bf16.msra.mxu1 %v297_v9  ;;  %314 = vmatpush.bf16.msra.mxu3 %v297_v9 }
  0x16   :  { %171 = vmatpush.bf16.msra.mxu0 %v288_v10  ;;  %307 = vmatpush.bf16.msra.mxu2 %v288_v10 }
  0x17   :  { %189 = vmatpush.bf16.msra.mxu1 %v296_v11  ;;  %315 = vmatpush.bf16.msra.mxu3 %v296_v11 }
  0x1a   :  { %172 = vmatpush.bf16.msra.mxu0 %v287_v12  ;;  %308 = vmatpush.bf16.msra.mxu2 %v287_v12 }
  0x1b   :  { %190 = vmatpush.bf16.msra.mxu1 %v295_v14  ;;  %316 = vmatpush.bf16.msra.mxu3 %v295_v14 }
  0x1e   :  { %173 = vmatpush.bf16.msra.mxu0 %v286_v16  ;;  %309 = vmatpush.bf16.msra.mxu2 %v286_v16 }
  0x1f   :  { %191 = vmatpush.bf16.msra.mxu1 %v294_v20  ;;  %317 = vmatpush.bf16.msra.mxu3 %v294_v20 }
  0x21   :  { %174 = vmatmul.bf16.vlgmr.msra.gmra.mxu0 %v215_v23  ;;  %179 = vmatmul.bf16.vlgmr.msra.gmra.mxu2 %v64_v24 }
  0x22   :  { %192 = vmatmul.bf16.vlgmr.msra.gmra.mxu1 %v219_v25  ;;  %197 = vmatmul.bf16.vlgmr.msra.gmra.mxu3 %v65_v26 }
  0x9e   :  { %v175_v28 = vpop.f32.mrf.mxu0 }
  0x9f   :  { %v176_v29 = vadd.f32 %v318_v27, %v175_v28  ;;  %v193_v30 = vpop.f32.mrf.mxu1 }
  0xa1   :  { %v194_v31 = vadd.f32 %v193_v30, %v176_v29 }
  0xa3   :  { %v202_v32 = vmax.f32 %v194_v31, 0.0 }
  0xa4   :  { %v180_v33 = vpop.f32.mrf.mxu2 }
  0xa5   :  { %205 = vst [vmem:[%s417_s3] sm:$0xff] %v202_v32  ;;  %v181_v34 = vadd.f32 %v318_v27, %v180_v33  ;;  %v198_v35 = vpop.f32.mrf.mxu3 }
  0xa6   :  { %v177_v36 = vpop.f32.mrf.mxu0 }
  0xa7   :  { %v199_v37 = vadd.f32 %v198_v35, %v181_v34  ;;  %v178_v38 = vadd.f32 %v318_v27, %v177_v36  ;;  %v195_v39 = vpop.f32.mrf.mxu1 }
  0xa9   :  { %v204_v40 = vmax.f32 %v199_v37, 0.0  ;;  %v196_v41 = vadd.f32 %v195_v39, %v178_v38 }
  0xab   :  { %207 = vst [vmem:[%s417_s3 + $0x10] sm:$0xff] %v204_v40  ;;  %v203_v42 = vmax.f32 %v196_v41, 0.0 }
  0xac   :  { %v182_v43 = vpop.f32.mrf.mxu2 }
  0xad   :  { %206 = vst [vmem:[%s417_s3 + $0x8] sm:$0xff] %v203_v42  ;;  %v200_v44 = vpop.f32.mrf.mxu3 }

// kernel: nldnn_forward.36
= control target key start
LH: loop header
LB: loop body
LE: loop exit
PB: predicated region body
PF: predicated region fallthrough
CT: control target
= control target key end

     0   :  { %s411_s1 = inlined_call_operand.vmem [shape: bf16[256,128], index: 1, kind: input, shape index: {}]   ;;  %s412_s2 = inlined_call_operand.vmem [shape: f32[1,128], index: 2, kind: input, shape index: {}]   ;;  %s413_s0 = inlined_call_operand.vmem [shape: bf16[24,256], index: 0, kind: input, shape index: {}]   ;;  %s414_s3 = inlined_call_operand.vmem [shape: f32[24,128], index: 3, kind: output, shape index: {}]  }
   0x1   :  { %v290_v0 = vld [vmem:[%s411_s1 + $0x38] sm:$0xff]  ;;  %v289_v2 = vld [vmem:[%s411_s1 + $0x30] sm:$0xff]  ;;  %v288_v4 = vld [vmem:[%s411_s1 + $0x28] sm:$0xff] }
   0x2   :  { %v298_v1 = vld [vmem:[%s411_s1 + $0x78] sm:$0xff]  ;;  %166 = vmatpush.bf16.msra.mxu0 %v290_v0  ;;  %299 = vmatpush.bf16.msra.mxu2 %v290_v0  ;;  %v297_v3 = vld [vmem:[%s411_s1 + $0x70] sm:$0xff]  ;;  %v296_v5 = vld [vmem:[%s411_s1 + $0x68] sm:$0xff] }
   0x3   :  { %184 = vmatpush.bf16.msra.mxu1 %v298_v1  ;;  %307 = vmatpush.bf16.msra.mxu3 %v298_v1  ;;  %v287_v6 = vld [vmem:[%s411_s1 + $0x20] sm:$0xff]  ;;  %v286_v8 = vld [vmem:[%s411_s1 + $0x18] sm:$0xff]  ;;  %v285_v10 = vld [vmem:[%s411_s1 + $0x10] sm:$0xff] }
   0x4   :  { %v295_v7 = vld [vmem:[%s411_s1 + $0x60] sm:$0xff]  ;;  %v294_v9 = vld [vmem:[%s411_s1 + $0x58] sm:$0xff]  ;;  %v293_v11 = vld [vmem:[%s411_s1 + $0x50] sm:$0xff] }
   0x5   :  { %v284_v12 = vld [vmem:[%s411_s1 + $0x8] sm:$0xff]  ;;  %v16_v13 = vld [vmem:[%s413_s0 + $0x10] sm:$0xff]  ;;  %v283_v16 = vld [vmem:[%s411_s1] sm:$0xff] }
   0x6   :  { %167 = vmatpush.bf16.msra.mxu0 %v289_v2  ;;  %300 = vmatpush.bf16.msra.mxu2 %v289_v2  ;;  %v292_v14 = vld [vmem:[%s411_s1 + $0x48] sm:$0xff]  ;;  %v60_v15 = vunpack.c.l.b16 %v16_v13  ;;  %v211_v17 = vld [vmem:[%s413_s0] sm:$0xf]  ;;  %v61_v19 = vunpack.c.h.b16 %v16_v13  ;;  %v281_v21 = vld [vmem:[%s413_s0 + $0x4] sm:$0xf] }
   0x7   :  { %185 = vmatpush.bf16.msra.mxu1 %v297_v3  ;;  %308 = vmatpush.bf16.msra.mxu3 %v297_v3  ;;  %v282_v18 = vld [vmem:[%s413_s0 + $0x4] sm:$0xf0]  ;;  %v291_v20 = vld [vmem:[%s411_s1 + $0x40] sm:$0xff]  ;;  %v213_v22 = vld [vmem:[%s413_s0 + $0x8] sm:$0xf0] }
   0x8   :  { %v212_v23 = vor.u32 %v282_v18, %v211_v17  ;;  %v64_v24 = vpack.c.b16 %v60_v15, %v60_v15  ;;  %v216_v25 = vor.u32 %v281_v21, %v213_v22  ;;  %v65_v26 = vpack.c.b16 %v61_v19, %v61_v19  ;;  %v315_v27 = vld [vmem:[%s412_s2] ss:$0 sm:$0xff] }
   0xa   :  { %168 = vmatpush.bf16.msra.mxu0 %v288_v4  ;;  %301 = vmatpush.bf16.msra.mxu2 %v288_v4 }
   0xb   :  { %186 = vmatpush.bf16.msra.mxu1 %v296_v5  ;;  %309 = vmatpush.bf16.msra.mxu3 %v296_v5 }
   0xe   :  { %169 = vmatpush.bf16.msra.mxu0 %v287_v6  ;;  %302 = vmatpush.bf16.msra.mxu2 %v287_v6 }
   0xf   :  { %187 = vmatpush.bf16.msra.mxu1 %v295_v7  ;;  %310 = vmatpush.bf16.msra.mxu3 %v295_v7 }
  0x12   :  { %170 = vmatpush.bf16.msra.mxu0 %v286_v8  ;;  %303 = vmatpush.bf16.msra.mxu2 %v286_v8 }
  0x13   :  { %188 = vmatpush.bf16.msra.mxu1 %v294_v9  ;;  %311 = vmatpush.bf16.msra.mxu3 %v294_v9 }
  0x16   :  { %171 = vmatpush.bf16.msra.mxu0 %v285_v10  ;;  %304 = vmatpush.bf16.msra.mxu2 %v285_v10 }
  0x17   :  { %189 = vmatpush.bf16.msra.mxu1 %v293_v11  ;;  %312 = vmatpush.bf16.msra.mxu3 %v293_v11 }
  0x1a   :  { %172 = vmatpush.bf16.msra.mxu0 %v284_v12  ;;  %305 = vmatpush.bf16.msra.mxu2 %v284_v12 }
  0x1b   :  { %190 = vmatpush.bf16.msra.mxu1 %v292_v14  ;;  %313 = vmatpush.bf16.msra.mxu3 %v292_v14 }
  0x1e   :  { %173 = vmatpush.bf16.msra.mxu0 %v283_v16  ;;  %306 = vmatpush.bf16.msra.mxu2 %v283_v16 }
  0x1f   :  { %191 = vmatpush.bf16.msra.mxu1 %v291_v20  ;;  %314 = vmatpush.bf16.msra.mxu3 %v291_v20 }
  0x21   :  { %174 = vmatmul.bf16.vlgmr.msra.gmra.mxu0 %v212_v23  ;;  %179 = vmatmul.bf16.vlgmr.msra.gmra.mxu2 %v64_v24 }
  0x22   :  { %192 = vmatmul.bf16.vlgmr.msra.gmra.mxu1 %v216_v25  ;;  %197 = vmatmul.bf16.vlgmr.msra.gmra.mxu3 %v65_v26 }
  0x9e   :  { %v175_v28 = vpop.f32.mrf.mxu0 }
  0x9f   :  { %v176_v29 = vadd.f32 %v315_v27, %v175_v28  ;;  %v193_v30 = vpop.f32.mrf.mxu1 }
  0xa1   :  { %v194_v31 = vadd.f32 %v193_v30, %v176_v29 }
  0xa3   :  { %202 = vst [vmem:[%s414_s3] sm:$0xff] %v194_v31 }
  0xa4   :  { %v180_v32 = vpop.f32.mrf.mxu2 }
  0xa5   :  { %v181_v33 = vadd.f32 %v315_v27, %v180_v32  ;;  %v198_v34 = vpop.f32.mrf.mxu3 }
  0xa6   :  { %v177_v35 = vpop.f32.mrf.mxu0 }
  0xa7   :  { %v199_v36 = vadd.f32 %v198_v34, %v181_v33  ;;  %v178_v37 = vadd.f32 %v315_v27, %v177_v35  ;;  %v195_v38 = vpop.f32.mrf.mxu1 }
  0xa9   :  { %204 = vst [vmem:[%s414_s3 + $0x10] sm:$0xff] %v199_v36  ;;  %v196_v39 = vadd.f32 %v195_v38, %v178_v37 }
  0xab   :  { %203 = vst [vmem:[%s414_s3 + $0x8] sm:$0xff] %v196_v39 }
  0xac   :  { %v182_v40 = vpop.f32.mrf.mxu2 }
  0xad   :  { %v200_v41 = vpop.f32.mrf.mxu3 }

</bundles_post_ra>
